<compile_context>
chip_gen: v6e
topology: v6e:2x2x1
jax: 0.10.0
libtpu: 0.0.40
codegen_flags: <defaults>
</compile_context>

<pallas_src>
import jax
import jax.numpy as jnp
from jax import lax
from jax.experimental import pallas as pl
from jax.experimental.pallas import tpu as pltpu

EMBED_LEN = 100          # PyTorch embed_len
EMBED_PAD = 128          # lane-aligned padded input size for layer 0
HIDDEN_DIM = 128
NUM_LAYERS = 2
NUM_CLASS = 4
CLASS_PAD = 128          # lane-padded classifier width (unmasked output store)
SUBLANE = 8


def _round_up(x, m):
    return ((x + m - 1) // m) * m


# -----------------------------------------------------------------------------
# Fused kernel: embedding gather + layer-0 bi-RNN + layer-1 bi-RNN + linear head.
#   tok_ref:    (T*Bp, 1) int32   time-major token ids (batch zero-padded to Bp)
#   emb_ref:    (Vp, 128)         padded frozen embedding table
#   wih0_ref:   (128, 2H)         [Wih_l0_f^T | Wih_l0_b^T]  (rows 100->128 zero-padded)
#   whh0_ref:   (2H, 2H)          block-diag(Whh_l0_f^T, Whh_l0_b^T)
#   b0_ref:     (1, 2H)           [b_ih_f+b_hh_f | b_ih_b+b_hh_b]
#   wih1f_ref:  (H, 2H)           rows of [Wih_l1_f^T | Wih_l1_b^T] hit by layer-0 fwd output
#   wih1b_ref:  (H, 2H)           rows hit by layer-0 bwd output
#   whh1_ref:   (2H, 2H)          block-diag(Whh_l1_f^T, Whh_l1_b^T)
#   b1_ref:     (1, 2H)
#   linw_ref:   (2H, 128)         W_lin^T, lane-padded NUM_CLASS -> 128
#   linb_ref:   (1, 128)
#   out_ref:    (Bp, 128)         padded logits
# -----------------------------------------------------------------------------
def _rnn_tunned_kernel(tok_ref, emb_ref,
                       wih0_ref, whh0_ref, b0_ref,
                       wih1f_ref, wih1b_ref, whh1_ref, b1_ref,
                       linw_ref, linb_ref,
                       out_ref,
                       proj0_sc, out0f_sc, out0b_sc, proj1_sc):
    TBp, H2 = proj0_sc.shape
    H = H2 // 2
    Bp = out_ref.shape[0]
    T = TBp // Bp
    Vp = emb_ref.shape[0]

    # ---- embedding gather: one-hot MXU matmul (tiny, VMEM-resident table) ----
    # TODO(synk): for large vocabularies keep the table in HBM (pl.ANY) and DMA-gather rows.
    ids = tok_ref[...]                                                     # (TBp, 1) int32
    onehot = (ids == lax.broadcasted_iota(jnp.int32, (TBp, Vp), 1)).astype(jnp.float32)
    x0 = jnp.dot(onehot, emb_ref[...], preferred_element_type=jnp.float32)  # (TBp, 128)

    # ---- layer 0: hoisted input projection (both directions, one matmul) ----
    proj0_sc[...] = (jnp.dot(x0, wih0_ref[...], preferred_element_type=jnp.float32)
                     + b0_ref[...])

    whh0 = whh0_ref[...]                                                   # (2H, 2H) blkdiag
    whh1 = whh1_ref[...]
    lane_is_fwd = lax.broadcasted_iota(jnp.int32, (Bp, H2), 1) < H         # hoisted out of loops

    unroll = True if T <= 32 else 8

    def step0(t, h):
        tb = T - 1 - t
        pf = proj0_sc[pl.ds(pl.multiple_of(t * Bp, SUBLANE), Bp), :]
        pb = proj0_sc[pl.ds(pl.multiple_of(tb * Bp, SUBLANE), Bp), :]
        p = jnp.where(lane_is_fwd, pf, pb)         # fwd lanes <- time t, bwd lanes <- time T-1-t
        h = jnp.tanh(p + jnp.dot(h, whh0, preferred_element_type=jnp.float32))
        out0f_sc[pl.ds(pl.multiple_of(t * Bp, SUBLANE), Bp), :] = h[:, :H]
        out0b_sc[pl.ds(pl.multiple_of(tb * Bp, SUBLANE), Bp), :] = h[:, H:]
        return h

    lax.fori_loop(0, T, step0, jnp.zeros((Bp, H2), jnp.float32), unroll=unroll)

    # ---- layer 1: hoisted input projection over the merged layer-0 outputs ----
    proj1_sc[...] = (
        jnp.dot(out0f_sc[...], wih1f_ref[...], preferred_element_type=jnp.float32)
        + jnp.dot(out0b_sc[...], wih1b_ref[...], preferred_element_type=jnp.float32)
        + b1_ref[...])

    def step1(t, h):
        tb = T - 1 - t
        pf = proj1_sc[pl.ds(pl.multiple_of(t * Bp, SUBLANE), Bp), :]
        pb = proj1_sc[pl.ds(pl.multiple_of(tb * Bp, SUBLANE), Bp), :]
        p = jnp.where(lane_is_fwd, pf, pb)
        return jnp.tanh(p + jnp.dot(h, whh1, preferred_element_type=jnp.float32))

    h1 = lax.fori_loop(0, T, step1, jnp.zeros((Bp, H2), jnp.float32), unroll=unroll)

    # ---- fused classifier: h1 already is [hidden[-2] | hidden[-1]] (Bp, 2H) ----
    out_ref[...] = (jnp.dot(h1, linw_ref[...], preferred_element_type=jnp.float32)
                    + linb_ref[...])


# -----------------------------------------------------------------------------
# Parameter construction (PyTorch-matching shapes, pre-packed for the kernel).
# -----------------------------------------------------------------------------
def init_params(key, vocab_size, hidden_dim, num_class):
    H = hidden_dim
    k = key

    def uni(kk, shape, bound):
        return jax.random.uniform(kk, shape, jnp.float32, -bound, bound)

    def blkdiag(a, b):
        z = jnp.zeros((H, H), jnp.float32)
        return jnp.concatenate(
            [jnp.concatenate([a, z], axis=1), jnp.concatenate([z, b], axis=1)], axis=0)

    params = {}

    # Frozen ("pretrained") embedding table, zero-padded rows -> Vp, cols 100 -> 128.
    k, sub = jax.random.split(k)
    emb = jax.random.normal(sub, (vocab_size, EMBED_LEN), jnp.float32)
    Vp = _round_up(max(vocab_size, 128), 128)
    params["emb_padded"] = (jnp.zeros((Vp, EMBED_PAD), jnp.float32)
                            .at[:vocab_size, :EMBED_LEN].set(emb))

    bound = 1.0 / (H ** 0.5)

    # ---- layer 0 ----
    k, k1, k2, k3, k4, k5, k6, k7, k8 = jax.random.split(k, 9)
    wih0_f = uni(k1, (H, EMBED_LEN), bound)       # weight_ih_l0
    whh0_f = uni(k2, (H, H), bound)               # weight_hh_l0
    b0_f = uni(k3, (H,), bound) + uni(k4, (H,), bound)
    wih0_b = uni(k5, (H, EMBED_LEN), bound)       # weight_ih_l0_reverse
    whh0_b = uni(k6, (H, H), bound)
    b0_b = uni(k7, (H,), bound) + uni(k8, (H,), bound)

    wih0_f_t = jnp.pad(wih0_f.T, ((0, EMBED_PAD - EMBED_LEN), (0, 0)))    # (128, H)
    wih0_b_t = jnp.pad(wih0_b.T, ((0, EMBED_PAD - EMBED_LEN), (0, 0)))    # (128, H)
    params["wih_all_l0"] = jnp.concatenate([wih0_f_t, wih0_b_t], axis=1)   # (128, 2H)
    params["whh_blk_l0"] = blkdiag(whh0_f.T, whh0_b.T)                     # (2H, 2H)
    params["b_all_l0"] = jnp.concatenate([b0_f, b0_b])[None, :]            # (1, 2H)

    # ---- layer 1 ----
    k, k1, k2, k3, k4, k5, k6, k7, k8 = jax.random.split(k, 9)
    wih1_f = uni(k1, (H, 2 * H), bound)           # weight_ih_l1
    whh1_f = uni(k2, (H, H), bound)
    b1_f = uni(k3, (H,), bound) + uni(k4, (H,), bound)
    wih1_b = uni(k5, (H, 2 * H), bound)           # weight_ih_l1_reverse
    whh1_b = uni(k6, (H, H), bound)
    b1_b = uni(k7, (H,), bound) + uni(k8, (H,), bound)

    wih_all_l1 = jnp.concatenate([wih1_f.T, wih1_b.T], axis=1)             # (2H, 2H)
    params["wih_l1_from_f"] = wih_all_l1[:H, :]                            # rows hit by x_fwd
    params["wih_l1_from_b"] = wih_all_l1[H:, :]                            # rows hit by x_bwd
    params["whh_blk_l1"] = blkdiag(whh1_f.T, whh1_b.T)
    params["b_all_l1"] = jnp.concatenate([b1_f, b1_b])[None, :]            # (1, 2H)

    # ---- classifier (lane-padded NUM_CLASS -> 128 for an unmasked output store) ----
    k, k1, k2 = jax.random.split(k, 3)
    lin_bound = 1.0 / ((2 * H) ** 0.5)
    lin_w = uni(k1, (num_class, 2 * H), lin_bound)
    lin_b = uni(k2, (num_class,), lin_bound)
    params["lin_w_t"] = (jnp.zeros((2 * H, CLASS_PAD), jnp.float32)
                         .at[:, :num_class].set(lin_w.T))                  # (2H, 128)
    params["lin_b"] = (jnp.zeros((1, CLASS_PAD), jnp.float32)
                       .at[0, :num_class].set(lin_b))                      # (1, 128)
    return params


# -----------------------------------------------------------------------------
# Full forward pass (matches RNNTunned.forward in eval mode; dropouts are identities).
# -----------------------------------------------------------------------------
@jax.jit
def rnn_tunned_forward(text, params):
    B, T = text.shape
    H = HIDDEN_DIM
    Bp = _round_up(max(B, SUBLANE), SUBLANE)      # pad batch to full sublanes
    TBp = T * Bp

    text_p = jnp.pad(text.astype(jnp.int32), ((0, Bp - B), (0, 0)))
    tok = text_p.T.reshape(TBp, 1)                # time-major (T, Bp) flattened

    operands = (tok, params["emb_padded"],
                params["wih_all_l0"], params["whh_blk_l0"], params["b_all_l0"],
                params["wih_l1_from_f"], params["wih_l1_from_b"],
                params["whh_blk_l1"], params["b_all_l1"],
                params["lin_w_t"], params["lin_b"])

    in_specs = [pl.BlockSpec(op.shape, lambda: (0, 0)) for op in operands]
    out_spec = pl.BlockSpec((Bp, CLASS_PAD), lambda: (0, 0))

    scratch_shapes = [
        pltpu.VMEM((TBp, 2 * H), jnp.float32),    # layer-0 hoisted projection
        pltpu.VMEM((TBp, H), jnp.float32),        # layer-0 fwd outputs
        pltpu.VMEM((TBp, H), jnp.float32),        # layer-0 bwd outputs (stored at orig. time)
        pltpu.VMEM((TBp, 2 * H), jnp.float32),    # layer-1 hoisted projection
    ]

    # Advisory cost estimate + explicit VMEM budget (matters on v7x's 64 MiB VMEM).
    Vp = params["emb_padded"].shape[0]
    flops = (2 * TBp * Vp * EMBED_PAD                 # one-hot embedding matmul
             + 2 * TBp * EMBED_PAD * 2 * H            # layer-0 input projection
             + 2 * T * Bp * (2 * H) * (2 * H)         # layer-0 recurrence (block-diag)
             + 2 * (2 * TBp * H * 2 * H)              # layer-1 input projection
             + 2 * T * Bp * (2 * H) * (2 * H)         # layer-1 recurrence
             + 2 * Bp * 2 * H * CLASS_PAD)            # classifier
    transcendentals = 2 * 2 * T * Bp * H              # tanh, both layers/directions
    operand_bytes = sum(int(op.size) * op.dtype.itemsize for op in operands)
    out_bytes = Bp * CLASS_PAD * 4
    scratch_bytes = sum((2 * TBp * 2 * H + 2 * TBp * H) * 4 for _ in (0,)) // 1
    vmem_limit = int(min(max(3 * (operand_bytes + out_bytes + scratch_bytes), 8 << 20),
                         48 << 20))

    logits_p = pl.pallas_call(
        _rnn_tunned_kernel,
        out_shape=jax.ShapeDtypeStruct((Bp, CLASS_PAD), jnp.float32),
        in_specs=in_specs,
        out_specs=out_spec,
        scratch_shapes=scratch_shapes,
        compiler_params=pltpu.CompilerParams(vmem_limit_bytes=vmem_limit),
        cost_estimate=pl.CostEstimate(flops=int(flops),
                                      transcendentals=int(transcendentals),
                                      bytes_accessed=int(operand_bytes + out_bytes)),
    )(*operands)

    return logits_p[:B, :NUM_CLASS]


if __name__ == "__main__":
    vocab_size = 50
    B, T = 2, 8

    key = jax.random.PRNGKey(0)
    k_par, k_tok = jax.random.split(key)

    params = init_params(k_par, vocab_size, HIDDEN_DIM, NUM_CLASS)
    text = jax.random.randint(k_tok, (B, T), 0, vocab_size, dtype=jnp.int32)

    logits = rnn_tunned_forward(text, params)
    jax.block_until_ready(logits)

    assert logits.shape == (B, NUM_CLASS)
    print("KERNEL_OK")
</pallas_src>

<mosaic_0001>
module attributes {stable_mosaic.version = 11 : i64} {
  func.func @_rnn_tunned_kernel(%arg0: memref<64x1xi32, #tpu.memory_space<vmem>>, %arg1: memref<128x128xf32, #tpu.memory_space<vmem>>, %arg2: memref<128x256xf32, #tpu.memory_space<vmem>>, %arg3: memref<256x256xf32, #tpu.memory_space<vmem>>, %arg4: memref<1x256xf32, #tpu.memory_space<vmem>>, %arg5: memref<128x256xf32, #tpu.memory_space<vmem>>, %arg6: memref<128x256xf32, #tpu.memory_space<vmem>>, %arg7: memref<256x256xf32, #tpu.memory_space<vmem>>, %arg8: memref<1x256xf32, #tpu.memory_space<vmem>>, %arg9: memref<256x128xf32, #tpu.memory_space<vmem>>, %arg10: memref<1x128xf32, #tpu.memory_space<vmem>>, %arg11: memref<8x128xf32, #tpu.memory_space<vmem>>, %arg12: memref<64x256xf32, #tpu.memory_space<vmem>>, %arg13: memref<64x128xf32, #tpu.memory_space<vmem>>, %arg14: memref<64x128xf32, #tpu.memory_space<vmem>>, %arg15: memref<64x256xf32, #tpu.memory_space<vmem>>) attributes {dimension_semantics = [], scalar_prefetch = 0 : i64, scratch_operands = 4 : i64, tpu.core_type = #tpu.core_type<tc>} {
    %c0 = arith.constant 0 : index
    %c0_0 = arith.constant 0 : index
    %0 = vector.load %arg0[%c0, %c0_0] : memref<64x1xi32, #tpu.memory_space<vmem>>, vector<64x1xi32>
    %1 = tpu.iota {dimensions = array<i32: 1>} : vector<64x128xi32>
    %2 = vector.broadcast %0 : vector<64x1xi32> to vector<64x128xi32>
    %3 = arith.cmpi eq, %2, %1 : vector<64x128xi32>
    %4 = arith.extui %3 : vector<64x128xi1> to vector<64x128xi32>
    %5 = arith.sitofp %4 : vector<64x128xi32> to vector<64x128xf32>
    %c0_1 = arith.constant 0 : index
    %c0_2 = arith.constant 0 : index
    %6 = vector.load %arg1[%c0_1, %c0_2] : memref<128x128xf32, #tpu.memory_space<vmem>>, vector<128x128xf32>
    %cst = arith.constant dense<0.000000e+00> : vector<64x128xf32>
    %7 = tpu.matmul %5, %6, %cst {dimension_numbers = #tpu.dot_dimension_numbers<[1], [0], [0], [1], [0, 0, 1, 1], [], []>} : vector<64x128xf32>, vector<128x128xf32>, vector<64x128xf32> -> vector<64x128xf32>
    %c0_3 = arith.constant 0 : index
    %c0_4 = arith.constant 0 : index
    %8 = vector.load %arg2[%c0_3, %c0_4] : memref<128x256xf32, #tpu.memory_space<vmem>>, vector<128x256xf32>
    %cst_5 = arith.constant dense<0.000000e+00> : vector<64x256xf32>
    %9 = tpu.matmul %7, %8, %cst_5 {dimension_numbers = #tpu.dot_dimension_numbers<[1], [0], [0], [1], [0, 0, 1, 1], [], []>} : vector<64x128xf32>, vector<128x256xf32>, vector<64x256xf32> -> vector<64x256xf32>
    %c0_6 = arith.constant 0 : index
    %c0_7 = arith.constant 0 : index
    %10 = vector.load %arg4[%c0_6, %c0_7] : memref<1x256xf32, #tpu.memory_space<vmem>>, vector<1x256xf32>
    %11 = vector.broadcast %10 : vector<1x256xf32> to vector<64x256xf32>
    %12 = arith.addf %9, %11 : vector<64x256xf32>
    %c0_8 = arith.constant 0 : index
    %c0_9 = arith.constant 0 : index
    %13 = vector.load %arg12[%c0_8, %c0_9] : memref<64x256xf32, #tpu.memory_space<vmem>>, vector<64x256xf32>
    tpu.vector_store %arg12[%c0_8, %c0_9], %12 {strides = array<i32>} : memref<64x256xf32, #tpu.memory_space<vmem>>, vector<64x256xf32>,
    %c0_10 = arith.constant 0 : index
    %c0_11 = arith.constant 0 : index
    %14 = vector.load %arg3[%c0_10, %c0_11] : memref<256x256xf32, #tpu.memory_space<vmem>>, vector<256x256xf32>
    %c0_12 = arith.constant 0 : index
    %c0_13 = arith.constant 0 : index
    %15 = vector.load %arg7[%c0_12, %c0_13] : memref<256x256xf32, #tpu.memory_space<vmem>>, vector<256x256xf32>
    %16 = tpu.iota {dimensions = array<i32: 1>} : vector<8x256xi32>
    %c128_i32 = arith.constant 128 : i32
    %17 = vector.broadcast %c128_i32 : i32 to vector<8x256xi32>
    %18 = arith.cmpi slt, %16, %17 : vector<8x256xi32>
    %cst_14 = arith.constant 0.000000e+00 : f32
    %19 = vector.broadcast %cst_14 : f32 to vector<8x256xf32>
    %c0_i32 = arith.constant 0 : i32
    %c7_i32 = arith.constant 7 : i32
    %20 = arith.subi %c7_i32, %c0_i32 : i32
    %c8_i32 = arith.constant 8 : i32
    %21 = arith.muli %c0_i32, %c8_i32 : i32
    %22 = tpu.assume_multiple %21, 8 : i32
    %23 = arith.index_cast %22 : i32 to index
    %c0_15 = arith.constant 0 : index
    %24 = vector.load %arg12[%23, %c0_15] : memref<64x256xf32, #tpu.memory_space<vmem>>, vector<8x256xf32>
    %c8_i32_16 = arith.constant 8 : i32
    %25 = arith.muli %20, %c8_i32_16 : i32
    %26 = tpu.assume_multiple %25, 8 : i32
    %27 = arith.index_cast %26 : i32 to index
    %c0_17 = arith.constant 0 : index
    %28 = vector.load %arg12[%27, %c0_17] : memref<64x256xf32, #tpu.memory_space<vmem>>, vector<8x256xf32>
    %29 = arith.select %18, %24, %28 : vector<8x256xi1>, vector<8x256xf32>
    %cst_18 = arith.constant dense<0.000000e+00> : vector<8x256xf32>
    %30 = tpu.matmul %19, %14, %cst_18 {dimension_numbers = #tpu.dot_dimension_numbers<[1], [0], [0], [1], [0, 0, 1, 1], [], []>} : vector<8x256xf32>, vector<256x256xf32>, vector<8x256xf32> -> vector<8x256xf32>
    %31 = arith.addf %29, %30 : vector<8x256xf32>
    %32 = math.tanh %31 : vector<8x256xf32>
    %33 = vector.extract_strided_slice %32 {offsets = [0, 0], sizes = [8, 128], strides = [1, 1]} : vector<8x256xf32> to vector<8x128xf32>
    %c8_i32_19 = arith.constant 8 : i32
    %34 = arith.muli %c0_i32, %c8_i32_19 : i32
    %35 = tpu.assume_multiple %34, 8 : i32
    %36 = arith.index_cast %35 : i32 to index
    %c0_20 = arith.constant 0 : index
    %37 = vector.load %arg13[%36, %c0_20] : memref<64x128xf32, #tpu.memory_space<vmem>>, vector<8x128xf32>
    tpu.vector_store %arg13[%36, %c0_20], %33 {strides = array<i32>} : memref<64x128xf32, #tpu.memory_space<vmem>>, vector<8x128xf32>,
    %38 = vector.extract_strided_slice %32 {offsets = [0, 128], sizes = [8, 128], strides = [1, 1]} : vector<8x256xf32> to vector<8x128xf32>
    %c8_i32_21 = arith.constant 8 : i32
    %39 = arith.muli %20, %c8_i32_21 : i32
    %40 = tpu.assume_multiple %39, 8 : i32
    %41 = arith.index_cast %40 : i32 to index
    %c0_22 = arith.constant 0 : index
    %42 = vector.load %arg14[%41, %c0_22] : memref<64x128xf32, #tpu.memory_space<vmem>>, vector<8x128xf32>
    tpu.vector_store %arg14[%41, %c0_22], %38 {strides = array<i32>} : memref<64x128xf32, #tpu.memory_space<vmem>>, vector<8x128xf32>,
    %c1_i32 = arith.constant 1 : i32
    %c7_i32_23 = arith.constant 7 : i32
    %43 = arith.subi %c7_i32_23, %c1_i32 : i32
    %c8_i32_24 = arith.constant 8 : i32
    %44 = arith.muli %c1_i32, %c8_i32_24 : i32
    %45 = tpu.assume_multiple %44, 8 : i32
    %46 = arith.index_cast %45 : i32 to index
    %c0_25 = arith.constant 0 : index
    %47 = vector.load %arg12[%46, %c0_25] : memref<64x256xf32, #tpu.memory_space<vmem>>, vector<8x256xf32>
    %c8_i32_26 = arith.constant 8 : i32
    %48 = arith.muli %43, %c8_i32_26 : i32
    %49 = tpu.assume_multiple %48, 8 : i32
    %50 = arith.index_cast %49 : i32 to index
    %c0_27 = arith.constant 0 : index
    %51 = vector.load %arg12[%50, %c0_27] : memref<64x256xf32, #tpu.memory_space<vmem>>, vector<8x256xf32>
    %52 = arith.select %18, %47, %51 : vector<8x256xi1>, vector<8x256xf32>
    %cst_28 = arith.constant dense<0.000000e+00> : vector<8x256xf32>
    %53 = tpu.matmul %32, %14, %cst_28 {dimension_numbers = #tpu.dot_dimension_numbers<[1], [0], [0], [1], [0, 0, 1, 1], [], []>} : vector<8x256xf32>, vector<256x256xf32>, vector<8x256xf32> -> vector<8x256xf32>
    %54 = arith.addf %52, %53 : vector<8x256xf32>
    %55 = math.tanh %54 : vector<8x256xf32>
    %56 = vector.extract_strided_slice %55 {offsets = [0, 0], sizes = [8, 128], strides = [1, 1]} : vector<8x256xf32> to vector<8x128xf32>
    %c8_i32_29 = arith.constant 8 : i32
    %57 = arith.muli %c1_i32, %c8_i32_29 : i32
    %58 = tpu.assume_multiple %57, 8 : i32
    %59 = arith.index_cast %58 : i32 to index
    %c0_30 = arith.constant 0 : index
    %60 = vector.load %arg13[%59, %c0_30] : memref<64x128xf32, #tpu.memory_space<vmem>>, vector<8x128xf32>
    tpu.vector_store %arg13[%59, %c0_30], %56 {strides = array<i32>} : memref<64x128xf32, #tpu.memory_space<vmem>>, vector<8x128xf32>,
    %61 = vector.extract_strided_slice %55 {offsets = [0, 128], sizes = [8, 128], strides = [1, 1]} : vector<8x256xf32> to vector<8x128xf32>
    %c8_i32_31 = arith.constant 8 : i32
    %62 = arith.muli %43, %c8_i32_31 : i32
    %63 = tpu.assume_multiple %62, 8 : i32
    %64 = arith.index_cast %63 : i32 to index
    %c0_32 = arith.constant 0 : index
    %65 = vector.load %arg14[%64, %c0_32] : memref<64x128xf32, #tpu.memory_space<vmem>>, vector<8x128xf32>
    tpu.vector_store %arg14[%64, %c0_32], %61 {strides = array<i32>} : memref<64x128xf32, #tpu.memory_space<vmem>>, vector<8x128xf32>,
    %c2_i32 = arith.constant 2 : i32
    %c7_i32_33 = arith.constant 7 : i32
    %66 = arith.subi %c7_i32_33, %c2_i32 : i32
    %c8_i32_34 = arith.constant 8 : i32
    %67 = arith.muli %c2_i32, %c8_i32_34 : i32
    %68 = tpu.assume_multiple %67, 8 : i32
    %69 = arith.index_cast %68 : i32 to index
    %c0_35 = arith.constant 0 : index
    %70 = vector.load %arg12[%69, %c0_35] : memref<64x256xf32, #tpu.memory_space<vmem>>, vector<8x256xf32>
    %c8_i32_36 = arith.constant 8 : i32
    %71 = arith.muli %66, %c8_i32_36 : i32
    %72 = tpu.assume_multiple %71, 8 : i32
    %73 = arith.index_cast %72 : i32 to index
    %c0_37 = arith.constant 0 : index
    %74 = vector.load %arg12[%73, %c0_37] : memref<64x256xf32, #tpu.memory_space<vmem>>, vector<8x256xf32>
    %75 = arith.select %18, %70, %74 : vector<8x256xi1>, vector<8x256xf32>
    %cst_38 = arith.constant dense<0.000000e+00> : vector<8x256xf32>
    %76 = tpu.matmul %55, %14, %cst_38 {dimension_numbers = #tpu.dot_dimension_numbers<[1], [0], [0], [1], [0, 0, 1, 1], [], []>} : vector<8x256xf32>, vector<256x256xf32>, vector<8x256xf32> -> vector<8x256xf32>
    %77 = arith.addf %75, %76 : vector<8x256xf32>
    %78 = math.tanh %77 : vector<8x256xf32>
    %79 = vector.extract_strided_slice %78 {offsets = [0, 0], sizes = [8, 128], strides = [1, 1]} : vector<8x256xf32> to vector<8x128xf32>
    %c8_i32_39 = arith.constant 8 : i32
    %80 = arith.muli %c2_i32, %c8_i32_39 : i32
    %81 = tpu.assume_multiple %80, 8 : i32
    %82 = arith.index_cast %81 : i32 to index
    %c0_40 = arith.constant 0 : index
    %83 = vector.load %arg13[%82, %c0_40] : memref<64x128xf32, #tpu.memory_space<vmem>>, vector<8x128xf32>
    tpu.vector_store %arg13[%82, %c0_40], %79 {strides = array<i32>} : memref<64x128xf32, #tpu.memory_space<vmem>>, vector<8x128xf32>,
    %84 = vector.extract_strided_slice %78 {offsets = [0, 128], sizes = [8, 128], strides = [1, 1]} : vector<8x256xf32> to vector<8x128xf32>
    %c8_i32_41 = arith.constant 8 : i32
    %85 = arith.muli %66, %c8_i32_41 : i32
    %86 = tpu.assume_multiple %85, 8 : i32
    %87 = arith.index_cast %86 : i32 to index
    %c0_42 = arith.constant 0 : index
    %88 = vector.load %arg14[%87, %c0_42] : memref<64x128xf32, #tpu.memory_space<vmem>>, vector<8x128xf32>
    tpu.vector_store %arg14[%87, %c0_42], %84 {strides = array<i32>} : memref<64x128xf32, #tpu.memory_space<vmem>>, vector<8x128xf32>,
    %c3_i32 = arith.constant 3 : i32
    %c7_i32_43 = arith.constant 7 : i32
    %89 = arith.subi %c7_i32_43, %c3_i32 : i32
    %c8_i32_44 = arith.constant 8 : i32
    %90 = arith.muli %c3_i32, %c8_i32_44 : i32
    %91 = tpu.assume_multiple %90, 8 : i32
    %92 = arith.index_cast %91 : i32 to index
    %c0_45 = arith.constant 0 : index
    %93 = vector.load %arg12[%92, %c0_45] : memref<64x256xf32, #tpu.memory_space<vmem>>, vector<8x256xf32>
    %c8_i32_46 = arith.constant 8 : i32
    %94 = arith.muli %89, %c8_i32_46 : i32
    %95 = tpu.assume_multiple %94, 8 : i32
    %96 = arith.index_cast %95 : i32 to index
    %c0_47 = arith.constant 0 : index
    %97 = vector.load %arg12[%96, %c0_47] : memref<64x256xf32, #tpu.memory_space<vmem>>, vector<8x256xf32>
    %98 = arith.select %18, %93, %97 : vector<8x256xi1>, vector<8x256xf32>
    %cst_48 = arith.constant dense<0.000000e+00> : vector<8x256xf32>
    %99 = tpu.matmul %78, %14, %cst_48 {dimension_numbers = #tpu.dot_dimension_numbers<[1], [0], [0], [1], [0, 0, 1, 1], [], []>} : vector<8x256xf32>, vector<256x256xf32>, vector<8x256xf32> -> vector<8x256xf32>
    %100 = arith.addf %98, %99 : vector<8x256xf32>
    %101 = math.tanh %100 : vector<8x256xf32>
    %102 = vector.extract_strided_slice %101 {offsets = [0, 0], sizes = [8, 128], strides = [1, 1]} : vector<8x256xf32> to vector<8x128xf32>
    %c8_i32_49 = arith.constant 8 : i32
    %103 = arith.muli %c3_i32, %c8_i32_49 : i32
    %104 = tpu.assume_multiple %103, 8 : i32
    %105 = arith.index_cast %104 : i32 to index
    %c0_50 = arith.constant 0 : index
    %106 = vector.load %arg13[%105, %c0_50] : memref<64x128xf32, #tpu.memory_space<vmem>>, vector<8x128xf32>
    tpu.vector_store %arg13[%105, %c0_50], %102 {strides = array<i32>} : memref<64x128xf32, #tpu.memory_space<vmem>>, vector<8x128xf32>,
    %107 = vector.extract_strided_slice %101 {offsets = [0, 128], sizes = [8, 128], strides = [1, 1]} : vector<8x256xf32> to vector<8x128xf32>
    %c8_i32_51 = arith.constant 8 : i32
    %108 = arith.muli %89, %c8_i32_51 : i32
    %109 = tpu.assume_multiple %108, 8 : i32
    %110 = arith.index_cast %109 : i32 to index
    %c0_52 = arith.constant 0 : index
    %111 = vector.load %arg14[%110, %c0_52] : memref<64x128xf32, #tpu.memory_space<vmem>>, vector<8x128xf32>
    tpu.vector_store %arg14[%110, %c0_52], %107 {strides = array<i32>} : memref<64x128xf32, #tpu.memory_space<vmem>>, vector<8x128xf32>,
    %c4_i32 = arith.constant 4 : i32
    %c7_i32_53 = arith.constant 7 : i32
    %112 = arith.subi %c7_i32_53, %c4_i32 : i32
    %c8_i32_54 = arith.constant 8 : i32
    %113 = arith.muli %c4_i32, %c8_i32_54 : i32
    %114 = tpu.assume_multiple %113, 8 : i32
    %115 = arith.index_cast %114 : i32 to index
    %c0_55 = arith.constant 0 : index
    %116 = vector.load %arg12[%115, %c0_55] : memref<64x256xf32, #tpu.memory_space<vmem>>, vector<8x256xf32>
    %c8_i32_56 = arith.constant 8 : i32
    %117 = arith.muli %112, %c8_i32_56 : i32
    %118 = tpu.assume_multiple %117, 8 : i32
    %119 = arith.index_cast %118 : i32 to index
    %c0_57 = arith.constant 0 : index
    %120 = vector.load %arg12[%119, %c0_57] : memref<64x256xf32, #tpu.memory_space<vmem>>, vector<8x256xf32>
    %121 = arith.select %18, %116, %120 : vector<8x256xi1>, vector<8x256xf32>
    %cst_58 = arith.constant dense<0.000000e+00> : vector<8x256xf32>
    %122 = tpu.matmul %101, %14, %cst_58 {dimension_numbers = #tpu.dot_dimension_numbers<[1], [0], [0], [1], [0, 0, 1, 1], [], []>} : vector<8x256xf32>, vector<256x256xf32>, vector<8x256xf32> -> vector<8x256xf32>
    %123 = arith.addf %121, %122 : vector<8x256xf32>
    %124 = math.tanh %123 : vector<8x256xf32>
    %125 = vector.extract_strided_slice %124 {offsets = [0, 0], sizes = [8, 128], strides = [1, 1]} : vector<8x256xf32> to vector<8x128xf32>
    %c8_i32_59 = arith.constant 8 : i32
    %126 = arith.muli %c4_i32, %c8_i32_59 : i32
    %127 = tpu.assume_multiple %126, 8 : i32
    %128 = arith.index_cast %127 : i32 to index
    %c0_60 = arith.constant 0 : index
    %129 = vector.load %arg13[%128, %c0_60] : memref<64x128xf32, #tpu.memory_space<vmem>>, vector<8x128xf32>
    tpu.vector_store %arg13[%128, %c0_60], %125 {strides = array<i32>} : memref<64x128xf32, #tpu.memory_space<vmem>>, vector<8x128xf32>,
    %130 = vector.extract_strided_slice %124 {offsets = [0, 128], sizes = [8, 128], strides = [1, 1]} : vector<8x256xf32> to vector<8x128xf32>
    %c8_i32_61 = arith.constant 8 : i32
    %131 = arith.muli %112, %c8_i32_61 : i32
    %132 = tpu.assume_multiple %131, 8 : i32
    %133 = arith.index_cast %132 : i32 to index
    %c0_62 = arith.constant 0 : index
    %134 = vector.load %arg14[%133, %c0_62] : memref<64x128xf32, #tpu.memory_space<vmem>>, vector<8x128xf32>
    tpu.vector_store %arg14[%133, %c0_62], %130 {strides = array<i32>} : memref<64x128xf32, #tpu.memory_space<vmem>>, vector<8x128xf32>,
    %c5_i32 = arith.constant 5 : i32
    %c7_i32_63 = arith.constant 7 : i32
    %135 = arith.subi %c7_i32_63, %c5_i32 : i32
    %c8_i32_64 = arith.constant 8 : i32
    %136 = arith.muli %c5_i32, %c8_i32_64 : i32
    %137 = tpu.assume_multiple %136, 8 : i32
    %138 = arith.index_cast %137 : i32 to index
    %c0_65 = arith.constant 0 : index
    %139 = vector.load %arg12[%138, %c0_65] : memref<64x256xf32, #tpu.memory_space<vmem>>, vector<8x256xf32>
    %c8_i32_66 = arith.constant 8 : i32
    %140 = arith.muli %135, %c8_i32_66 : i32
    %141 = tpu.assume_multiple %140, 8 : i32
    %142 = arith.index_cast %141 : i32 to index
    %c0_67 = arith.constant 0 : index
    %143 = vector.load %arg12[%142, %c0_67] : memref<64x256xf32, #tpu.memory_space<vmem>>, vector<8x256xf32>
    %144 = arith.select %18, %139, %143 : vector<8x256xi1>, vector<8x256xf32>
    %cst_68 = arith.constant dense<0.000000e+00> : vector<8x256xf32>
    %145 = tpu.matmul %124, %14, %cst_68 {dimension_numbers = #tpu.dot_dimension_numbers<[1], [0], [0], [1], [0, 0, 1, 1], [], []>} : vector<8x256xf32>, vector<256x256xf32>, vector<8x256xf32> -> vector<8x256xf32>
    %146 = arith.addf %144, %145 : vector<8x256xf32>
    %147 = math.tanh %146 : vector<8x256xf32>
    %148 = vector.extract_strided_slice %147 {offsets = [0, 0], sizes = [8, 128], strides = [1, 1]} : vector<8x256xf32> to vector<8x128xf32>
    %c8_i32_69 = arith.constant 8 : i32
    %149 = arith.muli %c5_i32, %c8_i32_69 : i32
    %150 = tpu.assume_multiple %149, 8 : i32
    %151 = arith.index_cast %150 : i32 to index
    %c0_70 = arith.constant 0 : index
    %152 = vector.load %arg13[%151, %c0_70] : memref<64x128xf32, #tpu.memory_space<vmem>>, vector<8x128xf32>
    tpu.vector_store %arg13[%151, %c0_70], %148 {strides = array<i32>} : memref<64x128xf32, #tpu.memory_space<vmem>>, vector<8x128xf32>,
    %153 = vector.extract_strided_slice %147 {offsets = [0, 128], sizes = [8, 128], strides = [1, 1]} : vector<8x256xf32> to vector<8x128xf32>
    %c8_i32_71 = arith.constant 8 : i32
    %154 = arith.muli %135, %c8_i32_71 : i32
    %155 = tpu.assume_multiple %154, 8 : i32
    %156 = arith.index_cast %155 : i32 to index
    %c0_72 = arith.constant 0 : index
    %157 = vector.load %arg14[%156, %c0_72] : memref<64x128xf32, #tpu.memory_space<vmem>>, vector<8x128xf32>
    tpu.vector_store %arg14[%156, %c0_72], %153 {strides = array<i32>} : memref<64x128xf32, #tpu.memory_space<vmem>>, vector<8x128xf32>,
    %c6_i32 = arith.constant 6 : i32
    %c7_i32_73 = arith.constant 7 : i32
    %158 = arith.subi %c7_i32_73, %c6_i32 : i32
    %c8_i32_74 = arith.constant 8 : i32
    %159 = arith.muli %c6_i32, %c8_i32_74 : i32
    %160 = tpu.assume_multiple %159, 8 : i32
    %161 = arith.index_cast %160 : i32 to index
    %c0_75 = arith.constant 0 : index
    %162 = vector.load %arg12[%161, %c0_75] : memref<64x256xf32, #tpu.memory_space<vmem>>, vector<8x256xf32>
    %c8_i32_76 = arith.constant 8 : i32
    %163 = arith.muli %158, %c8_i32_76 : i32
    %164 = tpu.assume_multiple %163, 8 : i32
    %165 = arith.index_cast %164 : i32 to index
    %c0_77 = arith.constant 0 : index
    %166 = vector.load %arg12[%165, %c0_77] : memref<64x256xf32, #tpu.memory_space<vmem>>, vector<8x256xf32>
    %167 = arith.select %18, %162, %166 : vector<8x256xi1>, vector<8x256xf32>
    %cst_78 = arith.constant dense<0.000000e+00> : vector<8x256xf32>
    %168 = tpu.matmul %147, %14, %cst_78 {dimension_numbers = #tpu.dot_dimension_numbers<[1], [0], [0], [1], [0, 0, 1, 1], [], []>} : vector<8x256xf32>, vector<256x256xf32>, vector<8x256xf32> -> vector<8x256xf32>
    %169 = arith.addf %167, %168 : vector<8x256xf32>
    %170 = math.tanh %169 : vector<8x256xf32>
    %171 = vector.extract_strided_slice %170 {offsets = [0, 0], sizes = [8, 128], strides = [1, 1]} : vector<8x256xf32> to vector<8x128xf32>
    %c8_i32_79 = arith.constant 8 : i32
    %172 = arith.muli %c6_i32, %c8_i32_79 : i32
    %173 = tpu.assume_multiple %172, 8 : i32
    %174 = arith.index_cast %173 : i32 to index
    %c0_80 = arith.constant 0 : index
    %175 = vector.load %arg13[%174, %c0_80] : memref<64x128xf32, #tpu.memory_space<vmem>>, vector<8x128xf32>
    tpu.vector_store %arg13[%174, %c0_80], %171 {strides = array<i32>} : memref<64x128xf32, #tpu.memory_space<vmem>>, vector<8x128xf32>,
    %176 = vector.extract_strided_slice %170 {offsets = [0, 128], sizes = [8, 128], strides = [1, 1]} : vector<8x256xf32> to vector<8x128xf32>
    %c8_i32_81 = arith.constant 8 : i32
    %177 = arith.muli %158, %c8_i32_81 : i32
    %178 = tpu.assume_multiple %177, 8 : i32
    %179 = arith.index_cast %178 : i32 to index
    %c0_82 = arith.constant 0 : index
    %180 = vector.load %arg14[%179, %c0_82] : memref<64x128xf32, #tpu.memory_space<vmem>>, vector<8x128xf32>
    tpu.vector_store %arg14[%179, %c0_82], %176 {strides = array<i32>} : memref<64x128xf32, #tpu.memory_space<vmem>>, vector<8x128xf32>,
    %c7_i32_83 = arith.constant 7 : i32
    %c7_i32_84 = arith.constant 7 : i32
    %181 = arith.subi %c7_i32_84, %c7_i32_83 : i32
    %c8_i32_85 = arith.constant 8 : i32
    %182 = arith.muli %c7_i32_83, %c8_i32_85 : i32
    %183 = tpu.assume_multiple %182, 8 : i32
    %184 = arith.index_cast %183 : i32 to index
    %c0_86 = arith.constant 0 : index
    %185 = vector.load %arg12[%184, %c0_86] : memref<64x256xf32, #tpu.memory_space<vmem>>, vector<8x256xf32>
    %c8_i32_87 = arith.constant 8 : i32
    %186 = arith.muli %181, %c8_i32_87 : i32
    %187 = tpu.assume_multiple %186, 8 : i32
    %188 = arith.index_cast %187 : i32 to index
    %c0_88 = arith.constant 0 : index
    %189 = vector.load %arg12[%188, %c0_88] : memref<64x256xf32, #tpu.memory_space<vmem>>, vector<8x256xf32>
    %190 = arith.select %18, %185, %189 : vector<8x256xi1>, vector<8x256xf32>
    %cst_89 = arith.constant dense<0.000000e+00> : vector<8x256xf32>
    %191 = tpu.matmul %170, %14, %cst_89 {dimension_numbers = #tpu.dot_dimension_numbers<[1], [0], [0], [1], [0, 0, 1, 1], [], []>} : vector<8x256xf32>, vector<256x256xf32>, vector<8x256xf32> -> vector<8x256xf32>
    %192 = arith.addf %190, %191 : vector<8x256xf32>
    %193 = math.tanh %192 : vector<8x256xf32>
    %194 = vector.extract_strided_slice %193 {offsets = [0, 0], sizes = [8, 128], strides = [1, 1]} : vector<8x256xf32> to vector<8x128xf32>
    %c8_i32_90 = arith.constant 8 : i32
    %195 = arith.muli %c7_i32_83, %c8_i32_90 : i32
    %196 = tpu.assume_multiple %195, 8 : i32
    %197 = arith.index_cast %196 : i32 to index
    %c0_91 = arith.constant 0 : index
    %198 = vector.load %arg13[%197, %c0_91] : memref<64x128xf32, #tpu.memory_space<vmem>>, vector<8x128xf32>
    tpu.vector_store %arg13[%197, %c0_91], %194 {strides = array<i32>} : memref<64x128xf32, #tpu.memory_space<vmem>>, vector<8x128xf32>,
    %199 = vector.extract_strided_slice %193 {offsets = [0, 128], sizes = [8, 128], strides = [1, 1]} : vector<8x256xf32> to vector<8x128xf32>
    %c8_i32_92 = arith.constant 8 : i32
    %200 = arith.muli %181, %c8_i32_92 : i32
    %201 = tpu.assume_multiple %200, 8 : i32
    %202 = arith.index_cast %201 : i32 to index
    %c0_93 = arith.constant 0 : index
    %203 = vector.load %arg14[%202, %c0_93] : memref<64x128xf32, #tpu.memory_space<vmem>>, vector<8x128xf32>
    tpu.vector_store %arg14[%202, %c0_93], %199 {strides = array<i32>} : memref<64x128xf32, #tpu.memory_space<vmem>>, vector<8x128xf32>,
    %c8_i32_94 = arith.constant 8 : i32
    %c0_95 = arith.constant 0 : index
    %c0_96 = arith.constant 0 : index
    %204 = vector.load %arg13[%c0_95, %c0_96] : memref<64x128xf32, #tpu.memory_space<vmem>>, vector<64x128xf32>
    %c0_97 = arith.constant 0 : index
    %c0_98 = arith.constant 0 : index
    %205 = vector.load %arg5[%c0_97, %c0_98] : memref<128x256xf32, #tpu.memory_space<vmem>>, vector<128x256xf32>
    %cst_99 = arith.constant dense<0.000000e+00> : vector<64x256xf32>
    %206 = tpu.matmul %204, %205, %cst_99 {dimension_numbers = #tpu.dot_dimension_numbers<[1], [0], [0], [1], [0, 0, 1, 1], [], []>} : vector<64x128xf32>, vector<128x256xf32>, vector<64x256xf32> -> vector<64x256xf32>
    %c0_100 = arith.constant 0 : index
    %c0_101 = arith.constant 0 : index
    %207 = vector.load %arg14[%c0_100, %c0_101] : memref<64x128xf32, #tpu.memory_space<vmem>>, vector<64x128xf32>
    %c0_102 = arith.constant 0 : index
    %c0_103 = arith.constant 0 : index
    %208 = vector.load %arg6[%c0_102, %c0_103] : memref<128x256xf32, #tpu.memory_space<vmem>>, vector<128x256xf32>
    %cst_104 = arith.constant dense<0.000000e+00> : vector<64x256xf32>
    %209 = tpu.matmul %207, %208, %cst_104 {dimension_numbers = #tpu.dot_dimension_numbers<[1], [0], [0], [1], [0, 0, 1, 1], [], []>} : vector<64x128xf32>, vector<128x256xf32>, vector<64x256xf32> -> vector<64x256xf32>
    %210 = arith.addf %206, %209 : vector<64x256xf32>
    %c0_105 = arith.constant 0 : index
    %c0_106 = arith.constant 0 : index
    %211 = vector.load %arg8[%c0_105, %c0_106] : memref<1x256xf32, #tpu.memory_space<vmem>>, vector<1x256xf32>
    %212 = vector.broadcast %211 : vector<1x256xf32> to vector<64x256xf32>
    %213 = arith.addf %210, %212 : vector<64x256xf32>
    %c0_107 = arith.constant 0 : index
    %c0_108 = arith.constant 0 : index
    %214 = vector.load %arg15[%c0_107, %c0_108] : memref<64x256xf32, #tpu.memory_space<vmem>>, vector<64x256xf32>
    tpu.vector_store %arg15[%c0_107, %c0_108], %213 {strides = array<i32>} : memref<64x256xf32, #tpu.memory_space<vmem>>, vector<64x256xf32>,
    %cst_109 = arith.constant 0.000000e+00 : f32
    %215 = vector.broadcast %cst_109 : f32 to vector<8x256xf32>
    %c0_i32_110 = arith.constant 0 : i32
    %c7_i32_111 = arith.constant 7 : i32
    %216 = arith.subi %c7_i32_111, %c0_i32_110 : i32
    %c8_i32_112 = arith.constant 8 : i32
    %217 = arith.muli %c0_i32_110, %c8_i32_112 : i32
    %218 = tpu.assume_multiple %217, 8 : i32
    %219 = arith.index_cast %218 : i32 to index
    %c0_113 = arith.constant 0 : index
    %220 = vector.load %arg15[%219, %c0_113] : memref<64x256xf32, #tpu.memory_space<vmem>>, vector<8x256xf32>
    %c8_i32_114 = arith.constant 8 : i32
    %221 = arith.muli %216, %c8_i32_114 : i32
    %222 = tpu.assume_multiple %221, 8 : i32
    %223 = arith.index_cast %222 : i32 to index
    %c0_115 = arith.constant 0 : index
    %224 = vector.load %arg15[%223, %c0_115] : memref<64x256xf32, #tpu.memory_space<vmem>>, vector<8x256xf32>
    %225 = arith.select %18, %220, %224 : vector<8x256xi1>, vector<8x256xf32>
    %cst_116 = arith.constant dense<0.000000e+00> : vector<8x256xf32>
    %226 = tpu.matmul %215, %15, %cst_116 {dimension_numbers = #tpu.dot_dimension_numbers<[1], [0], [0], [1], [0, 0, 1, 1], [], []>} : vector<8x256xf32>, vector<256x256xf32>, vector<8x256xf32> -> vector<8x256xf32>
    %227 = arith.addf %225, %226 : vector<8x256xf32>
    %228 = math.tanh %227 : vector<8x256xf32>
    %c1_i32_117 = arith.constant 1 : i32
    %c7_i32_118 = arith.constant 7 : i32
    %229 = arith.subi %c7_i32_118, %c1_i32_117 : i32
    %c8_i32_119 = arith.constant 8 : i32
    %230 = arith.muli %c1_i32_117, %c8_i32_119 : i32
    %231 = tpu.assume_multiple %230, 8 : i32
    %232 = arith.index_cast %231 : i32 to index
    %c0_120 = arith.constant 0 : index
    %233 = vector.load %arg15[%232, %c0_120] : memref<64x256xf32, #tpu.memory_space<vmem>>, vector<8x256xf32>
    %c8_i32_121 = arith.constant 8 : i32
    %234 = arith.muli %229, %c8_i32_121 : i32
    %235 = tpu.assume_multiple %234, 8 : i32
    %236 = arith.index_cast %235 : i32 to index
    %c0_122 = arith.constant 0 : index
    %237 = vector.load %arg15[%236, %c0_122] : memref<64x256xf32, #tpu.memory_space<vmem>>, vector<8x256xf32>
    %238 = arith.select %18, %233, %237 : vector<8x256xi1>, vector<8x256xf32>
    %cst_123 = arith.constant dense<0.000000e+00> : vector<8x256xf32>
    %239 = tpu.matmul %228, %15, %cst_123 {dimension_numbers = #tpu.dot_dimension_numbers<[1], [0], [0], [1], [0, 0, 1, 1], [], []>} : vector<8x256xf32>, vector<256x256xf32>, vector<8x256xf32> -> vector<8x256xf32>
    %240 = arith.addf %238, %239 : vector<8x256xf32>
    %241 = math.tanh %240 : vector<8x256xf32>
    %c2_i32_124 = arith.constant 2 : i32
    %c7_i32_125 = arith.constant 7 : i32
    %242 = arith.subi %c7_i32_125, %c2_i32_124 : i32
    %c8_i32_126 = arith.constant 8 : i32
    %243 = arith.muli %c2_i32_124, %c8_i32_126 : i32
    %244 = tpu.assume_multiple %243, 8 : i32
    %245 = arith.index_cast %244 : i32 to index
    %c0_127 = arith.constant 0 : index
    %246 = vector.load %arg15[%245, %c0_127] : memref<64x256xf32, #tpu.memory_space<vmem>>, vector<8x256xf32>
    %c8_i32_128 = arith.constant 8 : i32
    %247 = arith.muli %242, %c8_i32_128 : i32
    %248 = tpu.assume_multiple %247, 8 : i32
    %249 = arith.index_cast %248 : i32 to index
    %c0_129 = arith.constant 0 : index
    %250 = vector.load %arg15[%249, %c0_129] : memref<64x256xf32, #tpu.memory_space<vmem>>, vector<8x256xf32>
    %251 = arith.select %18, %246, %250 : vector<8x256xi1>, vector<8x256xf32>
    %cst_130 = arith.constant dense<0.000000e+00> : vector<8x256xf32>
    %252 = tpu.matmul %241, %15, %cst_130 {dimension_numbers = #tpu.dot_dimension_numbers<[1], [0], [0], [1], [0, 0, 1, 1], [], []>} : vector<8x256xf32>, vector<256x256xf32>, vector<8x256xf32> -> vector<8x256xf32>
    %253 = arith.addf %251, %252 : vector<8x256xf32>
    %254 = math.tanh %253 : vector<8x256xf32>
    %c3_i32_131 = arith.constant 3 : i32
    %c7_i32_132 = arith.constant 7 : i32
    %255 = arith.subi %c7_i32_132, %c3_i32_131 : i32
    %c8_i32_133 = arith.constant 8 : i32
    %256 = arith.muli %c3_i32_131, %c8_i32_133 : i32
    %257 = tpu.assume_multiple %256, 8 : i32
    %258 = arith.index_cast %257 : i32 to index
    %c0_134 = arith.constant 0 : index
    %259 = vector.load %arg15[%258, %c0_134] : memref<64x256xf32, #tpu.memory_space<vmem>>, vector<8x256xf32>
    %c8_i32_135 = arith.constant 8 : i32
    %260 = arith.muli %255, %c8_i32_135 : i32
    %261 = tpu.assume_multiple %260, 8 : i32
    %262 = arith.index_cast %261 : i32 to index
    %c0_136 = arith.constant 0 : index
    %263 = vector.load %arg15[%262, %c0_136] : memref<64x256xf32, #tpu.memory_space<vmem>>, vector<8x256xf32>
    %264 = arith.select %18, %259, %263 : vector<8x256xi1>, vector<8x256xf32>
    %cst_137 = arith.constant dense<0.000000e+00> : vector<8x256xf32>
    %265 = tpu.matmul %254, %15, %cst_137 {dimension_numbers = #tpu.dot_dimension_numbers<[1], [0], [0], [1], [0, 0, 1, 1], [], []>} : vector<8x256xf32>, vector<256x256xf32>, vector<8x256xf32> -> vector<8x256xf32>
    %266 = arith.addf %264, %265 : vector<8x256xf32>
    %267 = math.tanh %266 : vector<8x256xf32>
    %c4_i32_138 = arith.constant 4 : i32
    %c7_i32_139 = arith.constant 7 : i32
    %268 = arith.subi %c7_i32_139, %c4_i32_138 : i32
    %c8_i32_140 = arith.constant 8 : i32
    %269 = arith.muli %c4_i32_138, %c8_i32_140 : i32
    %270 = tpu.assume_multiple %269, 8 : i32
    %271 = arith.index_cast %270 : i32 to index
    %c0_141 = arith.constant 0 : index
    %272 = vector.load %arg15[%271, %c0_141] : memref<64x256xf32, #tpu.memory_space<vmem>>, vector<8x256xf32>
    %c8_i32_142 = arith.constant 8 : i32
    %273 = arith.muli %268, %c8_i32_142 : i32
    %274 = tpu.assume_multiple %273, 8 : i32
    %275 = arith.index_cast %274 : i32 to index
    %c0_143 = arith.constant 0 : index
    %276 = vector.load %arg15[%275, %c0_143] : memref<64x256xf32, #tpu.memory_space<vmem>>, vector<8x256xf32>
    %277 = arith.select %18, %272, %276 : vector<8x256xi1>, vector<8x256xf32>
    %cst_144 = arith.constant dense<0.000000e+00> : vector<8x256xf32>
    %278 = tpu.matmul %267, %15, %cst_144 {dimension_numbers = #tpu.dot_dimension_numbers<[1], [0], [0], [1], [0, 0, 1, 1], [], []>} : vector<8x256xf32>, vector<256x256xf32>, vector<8x256xf32> -> vector<8x256xf32>
    %279 = arith.addf %277, %278 : vector<8x256xf32>
    %280 = math.tanh %279 : vector<8x256xf32>
    %c5_i32_145 = arith.constant 5 : i32
    %c7_i32_146 = arith.constant 7 : i32
    %281 = arith.subi %c7_i32_146, %c5_i32_145 : i32
    %c8_i32_147 = arith.constant 8 : i32
    %282 = arith.muli %c5_i32_145, %c8_i32_147 : i32
    %283 = tpu.assume_multiple %282, 8 : i32
    %284 = arith.index_cast %283 : i32 to index
    %c0_148 = arith.constant 0 : index
    %285 = vector.load %arg15[%284, %c0_148] : memref<64x256xf32, #tpu.memory_space<vmem>>, vector<8x256xf32>
    %c8_i32_149 = arith.constant 8 : i32
    %286 = arith.muli %281, %c8_i32_149 : i32
    %287 = tpu.assume_multiple %286, 8 : i32
    %288 = arith.index_cast %287 : i32 to index
    %c0_150 = arith.constant 0 : index
    %289 = vector.load %arg15[%288, %c0_150] : memref<64x256xf32, #tpu.memory_space<vmem>>, vector<8x256xf32>
    %290 = arith.select %18, %285, %289 : vector<8x256xi1>, vector<8x256xf32>
    %cst_151 = arith.constant dense<0.000000e+00> : vector<8x256xf32>
    %291 = tpu.matmul %280, %15, %cst_151 {dimension_numbers = #tpu.dot_dimension_numbers<[1], [0], [0], [1], [0, 0, 1, 1], [], []>} : vector<8x256xf32>, vector<256x256xf32>, vector<8x256xf32> -> vector<8x256xf32>
    %292 = arith.addf %290, %291 : vector<8x256xf32>
    %293 = math.tanh %292 : vector<8x256xf32>
    %c6_i32_152 = arith.constant 6 : i32
    %c7_i32_153 = arith.constant 7 : i32
    %294 = arith.subi %c7_i32_153, %c6_i32_152 : i32
    %c8_i32_154 = arith.constant 8 : i32
    %295 = arith.muli %c6_i32_152, %c8_i32_154 : i32
    %296 = tpu.assume_multiple %295, 8 : i32
    %297 = arith.index_cast %296 : i32 to index
    %c0_155 = arith.constant 0 : index
    %298 = vector.load %arg15[%297, %c0_155] : memref<64x256xf32, #tpu.memory_space<vmem>>, vector<8x256xf32>
    %c8_i32_156 = arith.constant 8 : i32
    %299 = arith.muli %294, %c8_i32_156 : i32
    %300 = tpu.assume_multiple %299, 8 : i32
    %301 = arith.index_cast %300 : i32 to index
    %c0_157 = arith.constant 0 : index
    %302 = vector.load %arg15[%301, %c0_157] : memref<64x256xf32, #tpu.memory_space<vmem>>, vector<8x256xf32>
    %303 = arith.select %18, %298, %302 : vector<8x256xi1>, vector<8x256xf32>
    %cst_158 = arith.constant dense<0.000000e+00> : vector<8x256xf32>
    %304 = tpu.matmul %293, %15, %cst_158 {dimension_numbers = #tpu.dot_dimension_numbers<[1], [0], [0], [1], [0, 0, 1, 1], [], []>} : vector<8x256xf32>, vector<256x256xf32>, vector<8x256xf32> -> vector<8x256xf32>
    %305 = arith.addf %303, %304 : vector<8x256xf32>
    %306 = math.tanh %305 : vector<8x256xf32>
    %c7_i32_159 = arith.constant 7 : i32
    %c7_i32_160 = arith.constant 7 : i32
    %307 = arith.subi %c7_i32_160, %c7_i32_159 : i32
    %c8_i32_161 = arith.constant 8 : i32
    %308 = arith.muli %c7_i32_159, %c8_i32_161 : i32
    %309 = tpu.assume_multiple %308, 8 : i32
    %310 = arith.index_cast %309 : i32 to index
    %c0_162 = arith.constant 0 : index
    %311 = vector.load %arg15[%310, %c0_162] : memref<64x256xf32, #tpu.memory_space<vmem>>, vector<8x256xf32>
    %c8_i32_163 = arith.constant 8 : i32
    %312 = arith.muli %307, %c8_i32_163 : i32
    %313 = tpu.assume_multiple %312, 8 : i32
    %314 = arith.index_cast %313 : i32 to index
    %c0_164 = arith.constant 0 : index
    %315 = vector.load %arg15[%314, %c0_164] : memref<64x256xf32, #tpu.memory_space<vmem>>, vector<8x256xf32>
    %316 = arith.select %18, %311, %315 : vector<8x256xi1>, vector<8x256xf32>
    %cst_165 = arith.constant dense<0.000000e+00> : vector<8x256xf32>
    %317 = tpu.matmul %306, %15, %cst_165 {dimension_numbers = #tpu.dot_dimension_numbers<[1], [0], [0], [1], [0, 0, 1, 1], [], []>} : vector<8x256xf32>, vector<256x256xf32>, vector<8x256xf32> -> vector<8x256xf32>
    %318 = arith.addf %316, %317 : vector<8x256xf32>
    %319 = math.tanh %318 : vector<8x256xf32>
    %c8_i32_166 = arith.constant 8 : i32
    %c0_167 = arith.constant 0 : index
    %c0_168 = arith.constant 0 : index
    %320 = vector.load %arg9[%c0_167, %c0_168] : memref<256x128xf32, #tpu.memory_space<vmem>>, vector<256x128xf32>
    %cst_169 = arith.constant dense<0.000000e+00> : vector<8x128xf32>
    %321 = tpu.matmul %319, %320, %cst_169 {dimension_numbers = #tpu.dot_dimension_numbers<[1], [0], [0], [1], [0, 0, 1, 1], [], []>} : vector<8x256xf32>, vector<256x128xf32>, vector<8x128xf32> -> vector<8x128xf32>
    %c0_170 = arith.constant 0 : index
    %c0_171 = arith.constant 0 : index
    %322 = vector.load %arg10[%c0_170, %c0_171] : memref<1x128xf32, #tpu.memory_space<vmem>>, vector<1x128xf32>
    %323 = vector.broadcast %322 : vector<1x128xf32> to vector<8x128xf32>
    %324 = arith.addf %321, %323 : vector<8x128xf32>
    %c0_172 = arith.constant 0 : index
    %c0_173 = arith.constant 0 : index
    %325 = vector.load %arg11[%c0_172, %c0_173] : memref<8x128xf32, #tpu.memory_space<vmem>>, vector<8x128xf32>
    tpu.vector_store %arg11[%c0_172, %c0_173], %324 {strides = array<i32>} : memref<8x128xf32, #tpu.memory_space<vmem>>, vector<8x128xf32>,
    return
  }
}

</mosaic_0001>

<bundles_post_ra>
// kernel: rnn_tunned_forward.1
= control target key start
LH: loop header
LB: loop body
LE: loop exit
PB: predicated region body
PF: predicated region fallthrough
CT: control target
= control target key end

     0   :  { %16 = vsyncpa [#allocation7], 0  ;;  %s4752_s0 = inlined_call_operand.vmem [shape: s32[64,1], index: 0, kind: input, shape index: {}]   ;;  %s4753_s1 = inlined_call_operand.hbm [shape: f32[128,128], index: 1, kind: input, shape index: {}]   ;;  %s4754_s2 = inlined_call_operand.hbm [shape: f32[128,256], index: 2, kind: input, shape index: {}]   ;;  %s4755_s3 = inlined_call_operand.hbm [shape: f32[256,256], index: 3, kind: input, shape index: {}]   ;;  %s4756_s4 = inlined_call_operand.vmem [shape: f32[1,256], index: 4, kind: input, shape index: {}]   ;;  %s4757_s5 = inlined_call_operand.hbm [shape: f32[128,256], index: 5, kind: input, shape index: {}]   ;;  %s4758_s6 = inlined_call_operand.hbm [shape: f32[128,256], index: 6, kind: input, shape index: {}]   ;;  %s4759_s7 = inlined_call_operand.hbm [shape: f32[256,256], index: 7, kind: input, shape index: {}]   ;;  %s4760_s8 = inlined_call_operand.vmem [shape: f32[1,256], index: 8, kind: input, shape index: {}]   ;;  %s4761_s9 = inlined_call_operand.hbm [shape: f32[256,128], index: 9, kind: input, shape index: {}]   ;;  %s4762_s10 = inlined_call_operand.vmem [shape: f32[1,128], index: 10, kind: input, shape index: {}]   ;;  %s4763_s11 = inlined_call_operand.vmem [shape: f32[8,128], index: 11, kind: output, shape index: {}]  }
   0x1   :  { %17 = vsyncpa [#allocation9], 0 }
   0x2   :  { %18 = vsyncpa [#allocation12], 0 }
   0x3   :  { %19 = vsyncpa [#allocation15], 0  ;;  %s2924_s17 = smov [#allocation8]  }
   0x4   :  { %s39_s18 = sshll.u32 %s2924_s17, 4  ;;  %s40_s18 = int_to_ptr.vmem [resolvable:$true] %s39_s18 }
   0x5   :  { %s2784_s19 = scalar_lea.vmem %s40_s18, 4096  ;;  %p2789_p1 = scmp.lt.s32.totalorder %s40_s18, %s40_s18 }
   0x6   :  { %p2785_p0 = scmp.ne.s32.totalorder %s40_s18, %s2784_s19  ;;  %p2790_p2 = scmp.lt.s32.totalorder %s2784_s19, %s2784_s19 }
   0x8   :  { %p2791_p3 = por %p2790_p2, %p2789_p1 }
   0xa   :  { %p2792_p4 = pnand %p2791_p3, %p2785_p0 }
   0xc   :  { %2795 = shalt.err (!%p2792_p4)
}
   0xd   :  { %s2925_s20 = smov 256   ;;  %s2926_s21 = smov 16  }
   0xe   :  { %45 = dma.hbm_to_vmem [thread:$0]  %s4754_s2, 4096, %s40_s18, [#allocation9], %s2925_s20, %s2925_s20, %s2926_s21  }
   0xf   :  { %s2927_s24 = smov [#allocation11]   ;;  %s2928_s26 = smov [#allocation14]  }
  0x10   :  { %s65_s25 = sshll.u32 %s2927_s24, 4  ;;  %s89_s27 = sshll.u32 %s2928_s26, 4  ;;  %s66_s25 = int_to_ptr.vmem [resolvable:$true] %s65_s25  ;;  %s90_s27 = int_to_ptr.vmem [resolvable:$true] %s89_s27 }
  0x11   :  { %s2804_s28 = scalar_lea.vmem %s66_s25, 4096  ;;  %p2809_p6 = scmp.lt.s32.totalorder %s66_s25, %s66_s25 }
  0x12   :  { %p2805_p5 = scmp.ne.s32.totalorder %s66_s25, %s2804_s28  ;;  %p2810_p7 = scmp.lt.s32.totalorder %s2804_s28, %s2804_s28 }
  0x14   :  { %p2811_p8 = por %p2810_p7, %p2809_p6 }
  0x16   :  { %p2812_p9 = pnand %p2811_p8, %p2805_p5 }
  0x18   :  { %2815 = shalt.err (!%p2812_p9)
}
  0x19   :  { %71 = dma.hbm_to_vmem [thread:$0]  %s4757_s5, 4096, %s66_s25, [#allocation12], %s2925_s20, %s2925_s20, %s2926_s21  }
  0x1a   :  { %s2824_s2 = scalar_lea.vmem %s90_s27, 8192  ;;  %p2829_p11 = scmp.lt.s32.totalorder %s90_s27, %s90_s27 }
  0x1b   :  { %p2825_p10 = scmp.ne.s32.totalorder %s90_s27, %s2824_s2  ;;  %p2830_p12 = scmp.lt.s32.totalorder %s2824_s2, %s2824_s2 }
  0x1d   :  { %p2831_p13 = por %p2830_p12, %p2829_p11 }
  0x1f   :  { %p2832_p0 = pnand %p2831_p13, %p2825_p10 }
  0x21   :  { %2835 = shalt.err (!%p2832_p0)
}
  0x22   :  { %95 = dma.hbm_to_vmem [thread:$0]  %s4759_s7, 8192, %s90_s27, [#allocation15], %s2925_s20, %s2925_s20, %s2926_s21  }
  0x23   :  { %s2929_s14 = smov [#allocation6]  }
  0x24   :  { %s27_s15 = sshll.u32 %s2929_s14, 4  ;;  %s28_s15 = int_to_ptr.vmem [resolvable:$true] %s27_s15 }
  0x25   :  { %s2844_s16 = scalar_lea.vmem %s28_s15, 2048  ;;  %p2849_p2 = scmp.lt.s32.totalorder %s28_s15, %s28_s15 }
  0x26   :  { %p2845_p1 = scmp.ne.s32.totalorder %s28_s15, %s2844_s16  ;;  %p2850_p3 = scmp.lt.s32.totalorder %s2844_s16, %s2844_s16 }
  0x28   :  { %p2851_p4 = por %p2850_p3, %p2849_p2 }
  0x2a   :  { %p2852_p5 = pnand %p2851_p4, %p2845_p1 }
  0x2c   :  { %2855 = shalt.err (!%p2852_p5)
}
  0x2d   :  { %s2930_s5 = smov 128   ;;  %s2931_s17 = smov 8  }
  0x2e   :  { %33 = dma.hbm_to_vmem [thread:$0]  %s4753_s1, 2048, %s28_s15, [#allocation7], %s2930_s5, %s2930_s5, %s2931_s17  }
  0x2f   :  { %s2932_s7 = smov [#allocation10]   ;;  %s2933_s23 = smov [#allocation13]  }
  0x30   :  { %s51_s22 = sshll.u32 %s2932_s7, 4  ;;  %s77_s24 = sshll.u32 %s2933_s23, 4  ;;  %s52_s22 = int_to_ptr.vmem [resolvable:$true] %s51_s22  ;;  %s78_s24 = int_to_ptr.vmem [resolvable:$true] %s77_s24 }
  0x31   :  { %s2864_s25 = scalar_lea.vmem %s52_s22, 8192  ;;  %p2869_p7 = scmp.lt.s32.totalorder %s52_s22, %s52_s22 }
  0x32   :  { %p2865_p6 = scmp.ne.s32.totalorder %s52_s22, %s2864_s25  ;;  %p2870_p8 = scmp.lt.s32.totalorder %s2864_s25, %s2864_s25 }
  0x34   :  { %p2871_p9 = por %p2870_p8, %p2869_p7 }
  0x36   :  { %p2872_p10 = pnand %p2871_p9, %p2865_p6 }
  0x38   :  { %2875 = shalt.err (!%p2872_p10)
}
  0x39   :  { %57 = dma.hbm_to_vmem [thread:$0]  %s4755_s3, 8192, %s52_s22, [#allocation9], %s2925_s20, %s2925_s20, %s2926_s21  }
  0x3a   :  { %s2884_s1 = scalar_lea.vmem %s78_s24, 4096  ;;  %p2889_p12 = scmp.lt.s32.totalorder %s78_s24, %s78_s24 }
  0x3b   :  { %p2885_p11 = scmp.ne.s32.totalorder %s78_s24, %s2884_s1  ;;  %p2890_p13 = scmp.lt.s32.totalorder %s2884_s1, %s2884_s1 }
  0x3d   :  { %p2891_p0 = por %p2890_p13, %p2889_p12 }
  0x3f   :  { %p2892_p1 = pnand %p2891_p0, %p2885_p11 }
  0x41   :  { %2895 = shalt.err (!%p2892_p1)
}
  0x42   :  { %83 = dma.hbm_to_vmem [thread:$0]  %s4758_s6, 4096, %s78_s24, [#allocation12], %s2925_s20, %s2925_s20, %s2926_s21  }
  0x43   :  { %s2934_s30 = smov [#allocation16]  }
  0x44   :  { %s103_s2 = sshll.u32 %s2934_s30, 4  ;;  %s104_s2 = int_to_ptr.vmem [resolvable:$true] %s103_s2 }
  0x45   :  { %s2904_s12 = scalar_lea.vmem %s104_s2, 4096  ;;  %p2909_p3 = scmp.lt.s32.totalorder %s104_s2, %s104_s2 }
  0x46   :  { %p2905_p2 = scmp.ne.s32.totalorder %s104_s2, %s2904_s12  ;;  %p2910_p4 = scmp.lt.s32.totalorder %s2904_s12, %s2904_s12 }
  0x48   :  { %p2911_p5 = por %p2910_p4, %p2909_p3 }
  0x4a   :  { %p2912_p6 = pnand %p2911_p5, %p2905_p2 }
  0x4c   :  { %2915 = shalt.err (!%p2912_p6)
}
  0x4d   :  { %109 = dma.hbm_to_vmem [thread:$0]  %s4761_s9, 4096, %s104_s2, [#allocation15], %s2930_s5, %s2930_s5, %s2931_s17  }
  0x4e   :  { %2916 = dma.done.wait [#allocation7], 2048  }
  0x4f   :  { %2917 = vsyncadd [#allocation7], 4294965248 }
  0x50   :  { %2918 = dma.done.wait [#allocation9], 12288  }
  0x51   :  { %2919 = vsyncadd [#allocation9], 4294955008 }
  0x52   :  { %2920 = dma.done.wait [#allocation12], 8192  }
  0x53   :  { %2921 = vsyncadd [#allocation12], 4294959104 }
  0x54   :  { %2922 = dma.done.wait [#allocation15], 12288  }
  0x55   :  { %2923 = vsyncadd [#allocation15], 4294955008  ;;  %v2935_v0 = vmov 0   ;;  %v135_v1 = vld [vmem:[%s4752_s0 + $0x10] sm:$0xff]  ;;  %v133_v2 = vld [vmem:[%s4752_s0] sm:$0xff]  ;;  %v4764_v55 = vlaneseq  ;;  %v2936_v59 = vmov 1.0  }
  0x56   :  { %2583 = vset.pattern.permute.xlu1 %v2935_v0  ;;  %2582 = vset.pattern.permute.xlu0 %v2935_v0  ;;  %v136_v3 = vld [vmem:[%s4752_s0 + $0x18] sm:$0xff]  ;;  %v134_v4 = vld [vmem:[%s4752_s0 + $0x8] sm:$0xff]  ;;  %v205_v6 = vld [vmem:[#allocation6 + $0x70] sm:$0xff] }
  0x57   :  { %150 = vperm.xlu1 %2583, %v135_v1   ;;  %144 = vperm.xlu0 %2582, %v133_v2   ;;  %v206_v5 = vld [vmem:[#allocation6 + $0x78] sm:$0xff]  ;;  %v204_v7 = vld [vmem:[#allocation6 + $0x68] sm:$0xff]  ;;  %v137_v9 = vld [vmem:[%s4752_s0 + $0x20] sm:$0xff]  ;;  %v142_v56 = vand.u32 127, %v4764_v55 }
  0x58   :  { %2524 = vmatprep.subr.mxu0 %v206_v5  ;;  %v138_v8 = vld [vmem:[%s4752_s0 + $0x28] sm:$0xff]  ;;  %v203_v10 = vld [vmem:[#allocation6 + $0x60] sm:$0xff]  ;;  %v140_v11 = vld [vmem:[%s4752_s0 + $0x38] sm:$0xff] }
  0x59   :  { %2525 = vmatpush3.msra.mxu0 %v206_v5  ;;  %v139_v12 = vld [vmem:[%s4752_s0 + $0x30] sm:$0xff]  ;;  %v202_v13 = vld [vmem:[#allocation6 + $0x58] sm:$0xff]  ;;  %v200_v15 = vld [vmem:[#allocation6 + $0x48] sm:$0xff] }
  0x5a   :  { %2526 = vmatprep.subr.mxu0 %v205_v6  ;;  %v201_v14 = vld [vmem:[#allocation6 + $0x50] sm:$0xff]  ;;  %v199_v16 = vld [vmem:[#allocation6 + $0x40] sm:$0xff]  ;;  %v198_v17 = vld [vmem:[#allocation6 + $0x38] sm:$0xff] }
  0x5b   :  { %153 = vperm.xlu1 %2583, %v136_v3   ;;  %147 = vperm.xlu0 %2582, %v134_v4   ;;  %v197_v18 = vld [vmem:[#allocation6 + $0x30] sm:$0xff]  ;;  %v196_v19 = vld [vmem:[#allocation6 + $0x28] sm:$0xff]  ;;  %v195_v20 = vld [vmem:[#allocation6 + $0x20] sm:$0xff] }
  0x5c   :  { %2527 = vmatpush3.msra.mxu0 %v205_v6  ;;  %v194_v21 = vld [vmem:[#allocation6 + $0x18] sm:$0xff]  ;;  %v193_v22 = vld [vmem:[#allocation6 + $0x10] sm:$0xff]  ;;  %v192_v23 = vld [vmem:[#allocation6 + $0x8] sm:$0xff] }
  0x5d   :  { %2528 = vmatprep.subr.mxu0 %v204_v7  ;;  %v343_v24 = vld [vmem:[#allocation8 + $0xf8] sm:$0xff]  ;;  %v342_v25 = vld [vmem:[#allocation8 + $0xf0] sm:$0xff]  ;;  %v191_v26 = vld [vmem:[#allocation6] sm:$0xff] }
  0x5e   :  { %2529 = vmatpush3.msra.mxu0 %v204_v7  ;;  %356 = vmatprep.subr.mxu1 %v343_v24  ;;  %v341_v27 = vld [vmem:[#allocation8 + $0xe8] sm:$0xff]  ;;  %v340_v28 = vld [vmem:[#allocation8 + $0xe0] sm:$0xff]  ;;  %v3064_v29 = vld [vmem:[#allocation10 + $0xf8] sm:$0xff] }
  0x5f   :  { %159 = vperm.xlu1 %2583, %v138_v8   ;;  %156 = vperm.xlu0 %2582, %v137_v9   ;;  %4895 = vst [vmem:[#allocation21_spill] sm:$0xff] %v3064_v29  ;;  %v339_v30 = vld [vmem:[#allocation8 + $0xd8] sm:$0xff]  ;;  %v338_v31 = vld [vmem:[#allocation8 + $0xd0] sm:$0xff]  ;;  %v337_v32 = vld [vmem:[#allocation8 + $0xc8] sm:$0xff] }
  0x60   :  { %2530 = vmatprep.subr.mxu0 %v203_v10  ;;  %357 = vmatpush1.msra.mxu1 %v342_v25  ;;  %v336_v33 = vld [vmem:[#allocation8 + $0xc0] sm:$0xff]  ;;  %v335_v34 = vld [vmem:[#allocation8 + $0xb8] sm:$0xff]  ;;  %v334_v35 = vld [vmem:[#allocation8 + $0xb0] sm:$0xff] }
  0x61   :  { %2531 = vmatpush3.msra.mxu0 %v203_v10  ;;  %358 = vmatprep.subr.mxu1 %v341_v27  ;;  %v333_v36 = vld [vmem:[#allocation8 + $0xa8] sm:$0xff]  ;;  %v332_v37 = vld [vmem:[#allocation8 + $0xa0] sm:$0xff]  ;;  %v331_v38 = vld [vmem:[#allocation8 + $0x98] sm:$0xff] }
  0x62   :  { %2532 = vmatprep.subr.mxu0 %v202_v13  ;;  %359 = vmatpush1.msra.mxu1 %v340_v28  ;;  %v330_v39 = vld [vmem:[#allocation8 + $0x90] sm:$0xff]  ;;  %v329_v40 = vld [vmem:[#allocation8 + $0x88] sm:$0xff]  ;;  %v328_v41 = vld [vmem:[#allocation8 + $0x80] sm:$0xff] }
  0x63   :  { %165 = vperm.xlu1 %2583, %v140_v11   ;;  %162 = vperm.xlu0 %2582, %v139_v12   ;;  %v327_v42 = vld [vmem:[#allocation8 + $0x78] sm:$0xff]  ;;  %v326_v43 = vld [vmem:[#allocation8 + $0x70] sm:$0xff]  ;;  %v325_v44 = vld [vmem:[#allocation8 + $0x68] sm:$0xff] }
  0x64   :  { %2533 = vmatpush3.msra.mxu0 %v202_v13  ;;  %360 = vmatprep.subr.mxu1 %v339_v30  ;;  %v324_v45 = vld [vmem:[#allocation8 + $0x60] sm:$0xff]  ;;  %v323_v46 = vld [vmem:[#allocation8 + $0x58] sm:$0xff]  ;;  %v322_v47 = vld [vmem:[#allocation8 + $0x50] sm:$0xff] }
  0x65   :  { %2534 = vmatprep.subr.mxu0 %v201_v14  ;;  %361 = vmatpush1.msra.mxu1 %v338_v31  ;;  %v321_v48 = vld [vmem:[#allocation8 + $0x48] sm:$0xff]  ;;  %v320_v49 = vld [vmem:[#allocation8 + $0x40] sm:$0xff]  ;;  %v319_v50 = vld [vmem:[#allocation8 + $0x38] sm:$0xff] }
  0x66   :  { %2535 = vmatpush3.msra.mxu0 %v201_v14  ;;  %362 = vmatprep.subr.mxu1 %v337_v32  ;;  %v318_v51 = vld [vmem:[#allocation8 + $0x30] sm:$0xff]  ;;  %v317_v52 = vld [vmem:[#allocation8 + $0x28] sm:$0xff]  ;;  %v316_v53 = vld [vmem:[#allocation8 + $0x20] sm:$0xff] }
  0x67   :  { %2536 = vmatprep.subr.mxu0 %v200_v15  ;;  %363 = vmatpush1.msra.mxu1 %v336_v33  ;;  %v315_v54 = vld [vmem:[#allocation8 + $0x18] sm:$0xff]  ;;  %v3068_v62 = vld [vmem:[#allocation10 + $0xf0] sm:$0xff]  ;;  %v3070_v63 = vld [vmem:[#allocation10 + $0xe8] sm:$0xff] }
  0x68   :  { %2537 = vmatpush3.msra.mxu0 %v200_v15  ;;  %364 = vmatprep.subr.mxu1 %v335_v34  ;;  %v3072_v0 = vld [vmem:[#allocation10 + $0xe0] sm:$0xff]  ;;  %v3075_v1 = vld [vmem:[#allocation10 + $0xd8] sm:$0xff]  ;;  %v3078_v4 = vld [vmem:[#allocation10 + $0xd0] sm:$0xff] }
  0x69   :  { %2538 = vmatprep.subr.mxu0 %v199_v16  ;;  %365 = vmatpush1.msra.mxu1 %v334_v35  ;;  %v3081_v5 = vld [vmem:[#allocation10 + $0xc8] sm:$0xff]  ;;  %v3084_v6 = vld [vmem:[#allocation10 + $0xc0] sm:$0xff]  ;;  %v3087_v7 = vld [vmem:[#allocation10 + $0xb8] sm:$0xff] }
  0x6a   :  { %2539 = vmatpush3.msra.mxu0 %v199_v16  ;;  %366 = vmatprep.subr.mxu1 %v333_v36  ;;  %v3090_v9 = vld [vmem:[#allocation10 + $0xb0] sm:$0xff]  ;;  %v3093_v10 = vld [vmem:[#allocation10 + $0xa8] sm:$0xff]  ;;  %v3096_v12 = vld [vmem:[#allocation10 + $0xa0] sm:$0xff] }
  0x6b   :  { %2540 = vmatprep.subr.mxu0 %v198_v17  ;;  %367 = vmatpush1.msra.mxu1 %v332_v37  ;;  %v3099_v13 = vld [vmem:[#allocation10 + $0x98] sm:$0xff]  ;;  %v3102_v14 = vld [vmem:[#allocation10 + $0x90] sm:$0xff]  ;;  %v3105_v15 = vld [vmem:[#allocation10 + $0x88] sm:$0xff] }
  0x6c   :  { %2541 = vmatpush3.msra.mxu0 %v198_v17  ;;  %368 = vmatprep.subr.mxu1 %v331_v38  ;;  %v3108_v16 = vld [vmem:[#allocation10 + $0x80] sm:$0xff]  ;;  %v3111_v17 = vld [vmem:[#allocation10 + $0x78] sm:$0xff]  ;;  %v3141_v27 = vld [vmem:[#allocation10 + $0x28] sm:$0xff] }
  0x6d   :  { %2542 = vmatprep.subr.mxu0 %v197_v18  ;;  %369 = vmatpush1.msra.mxu1 %v330_v39  ;;  %v3132_v24 = vld [vmem:[#allocation10 + $0x40] sm:$0xff]  ;;  %v3135_v25 = vld [vmem:[#allocation10 + $0x38] sm:$0xff]  ;;  %v3150_v31 = vld [vmem:[#allocation10 + $0x10] sm:$0xff] }
  0x6e   :  { %2543 = vmatpush3.msra.mxu0 %v197_v18  ;;  %370 = vmatprep.subr.mxu1 %v329_v40  ;;  %v3114_v18 = vld [vmem:[#allocation10 + $0x70] sm:$0xff]  ;;  %v3144_v28 = vld [vmem:[#allocation10 + $0x20] sm:$0xff]  ;;  %v3147_v30 = vld [vmem:[#allocation10 + $0x18] sm:$0xff] }
  0x6f   :  { %2544 = vmatprep.subr.mxu0 %v196_v19  ;;  %371 = vmatpush1.msra.mxu1 %v328_v41  ;;  %v3153_v32 = vld [vmem:[#allocation10 + $0x8] sm:$0xff]  ;;  %v3156_v33 = vld [vmem:[#allocation10] sm:$0xff]  ;;  %v3159_v34 = vld [vmem:[#allocation10 + $0x1f8] sm:$0xff] }
  0x70   :  { %2545 = vmatpush3.msra.mxu0 %v196_v19  ;;  %372 = vmatprep.subr.mxu1 %v327_v42  ;;  %v3117_v19 = vld [vmem:[#allocation10 + $0x68] sm:$0xff]  ;;  %v3162_v35 = vld [vmem:[#allocation10 + $0x1f0] sm:$0xff]  ;;  %v3168_v37 = vld [vmem:[#allocation10 + $0x1e0] sm:$0xff] }
  0x71   :  { %2546 = vmatprep.subr.mxu0 %v195_v20  ;;  %373 = vmatpush1.msra.mxu1 %v326_v43  ;;  %v3165_v36 = vld [vmem:[#allocation10 + $0x1e8] sm:$0xff]  ;;  %v3171_v38 = vld [vmem:[#allocation10 + $0x1d8] sm:$0xff]  ;;  %v3174_v39 = vld [vmem:[#allocation10 + $0x1d0] sm:$0xff] }
  0x72   :  { %2547 = vmatpush3.msra.mxu0 %v195_v20  ;;  %374 = vmatprep.subr.mxu1 %v325_v44  ;;  %v3120_v20 = vld [vmem:[#allocation10 + $0x60] sm:$0xff]  ;;  %v3177_v40 = vld [vmem:[#allocation10 + $0x1c8] sm:$0xff]  ;;  %v3183_v42 = vld [vmem:[#allocation10 + $0x1b8] sm:$0xff] }
  0x73   :  { %2548 = vmatprep.subr.mxu0 %v194_v21  ;;  %375 = vmatpush1.msra.mxu1 %v324_v45  ;;  %v3180_v41 = vld [vmem:[#allocation10 + $0x1c0] sm:$0xff]  ;;  %v3186_v43 = vld [vmem:[#allocation10 + $0x1b0] sm:$0xff]  ;;  %v3189_v44 = vld [vmem:[#allocation10 + $0x1a8] sm:$0xff] }
  0x74   :  { %2549 = vmatpush3.msra.mxu0 %v194_v21  ;;  %376 = vmatprep.subr.mxu1 %v323_v46  ;;  %v3123_v21 = vld [vmem:[#allocation10 + $0x58] sm:$0xff]  ;;  %v3192_v45 = vld [vmem:[#allocation10 + $0x1a0] sm:$0xff] }
  0x75   :  { %2550 = vmatprep.subr.mxu0 %v193_v22  ;;  %377 = vmatpush1.msra.mxu1 %v322_v47  ;;  %v3195_v46 = vld [vmem:[#allocation10 + $0x198] sm:$0xff]  ;;  %v3198_v47 = vld [vmem:[#allocation10 + $0x190] sm:$0xff]  ;;  %v312_v55 = vld [vmem:[#allocation8] sm:$0xff] }
  0x76   :  { %2551 = vmatpush3.msra.mxu0 %v193_v22  ;;  %378 = vmatprep.subr.mxu1 %v321_v48  ;;  %v3126_v22 = vld [vmem:[#allocation10 + $0x50] sm:$0xff]  ;;  %v3201_v48 = vld [vmem:[#allocation10 + $0x188] sm:$0xff] }
  0x77   :  { %2552 = vmatprep.subr.mxu0 %v192_v23  ;;  %379 = vmatpush1.msra.mxu1 %v320_v49  ;;  %4896 = vst [vmem:[#allocation22_spill] sm:$0xff] %v3201_v48  ;;  %v3204_v49 = vld [vmem:[#allocation10 + $0x180] sm:$0xff] }
  0x78   :  { %2553 = vmatpush3.msra.mxu0 %v192_v23  ;;  %380 = vmatprep.subr.mxu1 %v319_v50  ;;  %v3129_v23 = vld [vmem:[#allocation10 + $0x48] sm:$0xff]  ;;  %4897 = vst [vmem:[#allocation23_spill] sm:$0xff] %v3204_v49  ;;  %v3207_v50 = vld [vmem:[#allocation10 + $0x178] sm:$0xff] }
  0x79   :  { %2554 = vmatprep.subr.mxu0 %v191_v26  ;;  %381 = vmatpush1.msra.mxu1 %v318_v51  ;;  %4898 = vst [vmem:[#allocation24_spill] sm:$0xff] %v3207_v50  ;;  %v3210_v51 = vld [vmem:[#allocation10 + $0x170] sm:$0xff] }
  0x7a   :  { %2555 = vmatpush3.msra.mxu0 %v191_v26  ;;  %382 = vmatprep.subr.mxu1 %v317_v52  ;;  %v3138_v26 = vld [vmem:[#allocation10 + $0x30] sm:$0xff]  ;;  %4899 = vst [vmem:[#allocation25_spill] sm:$0xff] %v3210_v51  ;;  %v3213_v52 = vld [vmem:[#allocation10 + $0x168] sm:$0xff] }
  0x7b   :  { %628 = vmatprep.subr.mxu0 %v3064_v29  ;;  %383 = vmatpush1.msra.mxu1 %v316_v53  ;;  %4900 = vst [vmem:[#allocation26_spill] sm:$0xff] %v3213_v52  ;;  %v3216_v53 = vld [vmem:[#allocation10 + $0x160] sm:$0xff] }
  0x7c   :  { %384 = vmatprep.subr.mxu1 %v315_v54  ;;  %4901 = vst [vmem:[#allocation27_spill] sm:$0xff] %v3216_v53  ;;  %v3219_v54 = vld [vmem:[#allocation10 + $0x158] sm:$0xff] }
  0x7d   :  { %4902 = vst [vmem:[#allocation28_spill] sm:$0xff] %v3219_v54 }
  0xd2   :  { %v151_v57 = vpop.permute.xlu1 %150  ;;  %v145_v58 = vpop.permute.xlu0 %144 }
  0xd3   :  { %vm167_vm0 = vcmp.eq.s32.totalorder %v145_v58, %v142_v56  ;;  %vm169_vm1 = vcmp.eq.s32.totalorder %v151_v57, %v142_v56  ;;  %v3225_v57 = vld [vmem:[#allocation10 + $0x148] sm:$0xff]  ;;  %v3228_v58 = vld [vmem:[#allocation10 + $0x140] sm:$0xff] }
  0xd4   :  { %2556 = vmatprep.mubr.msk.f32.mxu0 %vm167_vm0, %v2936_v59  ;;  %4904 = vst [vmem:[#allocation30_spill] sm:$0xff] %v3225_v57  ;;  %4905 = vst [vmem:[#allocation31_spill] sm:$0xff] %v3228_v58 }
  0xd6   :  { %v154_v60 = vpop.permute.xlu1 %153  ;;  %v148_v61 = vpop.permute.xlu0 %147 }
  0xd7   :  { %vm168_vm2 = vcmp.eq.s32.totalorder %v148_v61, %v142_v56  ;;  %vm170_vm3 = vcmp.eq.s32.totalorder %v154_v60, %v142_v56  ;;  %v3234_v60 = vld [vmem:[#allocation10 + $0x130] sm:$0xff]  ;;  %v3237_v61 = vld [vmem:[#allocation10 + $0x128] sm:$0xff] }
  0xd8   :  { %2557 = vmatmul.mubr.msk.f32.vlgmr.msra.gmra.mxu0 %vm168_vm2, %v2936_v59  ;;  %4907 = vst [vmem:[#allocation33_spill] sm:$0xff] %v3234_v60  ;;  %4908 = vst [vmem:[#allocation34_spill] sm:$0xff] %v3237_v61 }
  0xd9   :  { %2559 = vmatprep.mubr.msk.f32.mxu0 %vm169_vm1, %v2936_v59  ;;  %629 = vmatpush1.msra.mxu0 %v3068_v62 }
  0xda   :  { %v160_v2 = vpop.permute.xlu1 %159  ;;  %v157_v3 = vpop.permute.xlu0 %156  ;;  %630 = vmatprep.subr.mxu0 %v3070_v63 }
  0xdb   :  { %vm171_vm4 = vcmp.eq.s32.totalorder %v157_v3, %v142_v56  ;;  %631 = vmatpush1.msra.mxu0 %v3072_v0  ;;  %vm172_vm5 = vcmp.eq.s32.totalorder %v160_v2, %v142_v56  ;;  %v314_v2 = vld [vmem:[#allocation8 + $0x10] sm:$0xff]  ;;  %v3242_v3 = vld [vmem:[#allocation10 + $0x120] sm:$0xff] }
  0xdc   :  { %2560 = vmatmul.mubr.msk.f32.gmra.mxu0 %vm170_vm3, %v2936_v59  ;;  %632 = vmatprep.subr.mxu0 %v3075_v1  ;;  %4909 = vst [vmem:[#allocation35_spill] sm:$0xff] %v3242_v3 }
  0xdd   :  { %2562 = vmatprep.mubr.msk.f32.mxu0 %vm171_vm4, %v2936_v59  ;;  %633 = vmatpush1.msra.mxu0 %v3078_v4 }
  0xde   :  { %v163_v8 = vpop.permute.xlu0 %162  ;;  %634 = vmatprep.subr.mxu0 %v3081_v5  ;;  %v166_v11 = vpop.permute.xlu1 %165  ;;  %385 = vmatpush1.msra.mxu1 %v314_v2  ;;  %v3254_v2 = vld [vmem:[#allocation10 + $0x100] sm:$0xff] }
  0xdf   :  { %vm173_vm6 = vcmp.eq.s32.totalorder %v163_v8, %v142_v56  ;;  %635 = vmatpush1.msra.mxu0 %v3084_v6  ;;  %vm174_vm7 = vcmp.eq.s32.totalorder %v166_v11, %v142_v56  ;;  %v3222_v56 = vld [vmem:[#allocation10 + $0x150] sm:$0xff]  ;;  %v313_v8 = vld [vmem:[#allocation8 + $0x8] sm:$0xff]  ;;  %v3245_v11 = vld [vmem:[#allocation10 + $0x118] sm:$0xff]  ;;  %4913 = vst [vmem:[#allocation39_spill] sm:$0xff] %v3254_v2 }
  0xe0   :  { %2563 = vmatmul.mubr.msk.f32.gmra.mxu0 %vm172_vm5, %v2936_v59  ;;  %636 = vmatprep.subr.mxu0 %v3087_v7  ;;  %4903 = vst [vmem:[#allocation29_spill] sm:$0xff] %v3222_v56  ;;  %4910 = vst [vmem:[#allocation36_spill] sm:$0xff] %v3245_v11 }
  0xe1   :  { %2565 = vmatprep.mubr.msk.f32.mxu0 %vm173_vm6, %v2936_v59  ;;  %637 = vmatpush1.msra.mxu0 %v3090_v9 }
  0xe2   :  { %638 = vmatprep.subr.mxu0 %v3093_v10  ;;  %386 = vmatprep.subr.mxu1 %v313_v8 }
  0xe3   :  { %639 = vmatpush1.msra.mxu0 %v3096_v12  ;;  %387 = vmatpush1.msra.mxu1 %v312_v55  ;;  %v4914_v55 = vld [vmem:[#allocation31_spill] sm:$0xff] }
  0xe4   :  { %2566 = vmatmul.mubr.msk.f32.gmra.mxu0 %vm174_vm7, %v2936_v59  ;;  %640 = vmatprep.subr.mxu0 %v3099_v13  ;;  %v3231_v59 = vld [vmem:[#allocation10 + $0x138] sm:$0xff] }
  0xe5   :  { %641 = vmatpush1.msra.mxu0 %v3102_v14  ;;  %4906 = vst [vmem:[#allocation32_spill] sm:$0xff] %v3231_v59  ;;  %718 = vmatprep.subr.mxu1 %v3064_v29 }
  0xe6   :  { %642 = vmatprep.subr.mxu0 %v3105_v15 }
  0xe7   :  { %643 = vmatpush1.msra.mxu0 %v3108_v16 }
  0xe8   :  { %644 = vmatprep.subr.mxu0 %v3111_v17 }
  0xe9   :  { %645 = vmatpush1.msra.mxu0 %v3114_v18 }
  0xea   :  { %646 = vmatprep.subr.mxu0 %v3117_v19 }
  0xeb   :  { %647 = vmatpush1.msra.mxu0 %v3120_v20 }
  0xec   :  { %648 = vmatprep.subr.mxu0 %v3123_v21  ;;  %v4915_v8 = vld [vmem:[#allocation32_spill] sm:$0xff] }
  0xed   :  { %649 = vmatpush1.msra.mxu0 %v3126_v22 }
  0xee   :  { %650 = vmatprep.subr.mxu0 %v3129_v23 }
  0xef   :  { %651 = vmatpush1.msra.mxu0 %v3132_v24 }
  0xf0   :  { %652 = vmatprep.subr.mxu0 %v3135_v25 }
  0xf1   :  { %653 = vmatpush1.msra.mxu0 %v3138_v26 }
  0xf2   :  { %654 = vmatprep.subr.mxu0 %v3141_v27 }
  0xf3   :  { %655 = vmatpush1.msra.mxu0 %v3144_v28 }
  0xf4   :  { %656 = vmatprep.subr.mxu0 %v3147_v30 }
  0xf5   :  { %657 = vmatpush1.msra.mxu0 %v3150_v31 }
  0xf6   :  { %658 = vmatprep.subr.mxu0 %v3153_v32 }
  0xf7   :  { %659 = vmatpush1.msra.mxu0 %v3156_v33 }
  0xf8   :  { %660 = vmatprep.subr.mxu0 %v3159_v34 }
  0xf9   :  { %661 = vmatpush2.msra.mxu0 %v3162_v35 }
  0xfa   :  { %662 = vmatprep.subr.mxu0 %v3165_v36 }
  0xfb   :  { %663 = vmatpush2.msra.mxu0 %v3168_v37 }
  0xfc   :  { %664 = vmatprep.subr.mxu0 %v3171_v38 }
  0xfd   :  { %665 = vmatpush2.msra.mxu0 %v3174_v39 }
  0xfe   :  { %666 = vmatprep.subr.mxu0 %v3177_v40 }
  0xff   :  { %667 = vmatpush2.msra.mxu0 %v3180_v41 }
 0x100   :  { %668 = vmatprep.subr.mxu0 %v3183_v42 }
 0x101   :  { %669 = vmatpush2.msra.mxu0 %v3186_v43 }
 0x102   :  { %670 = vmatprep.subr.mxu0 %v3189_v44 }
 0x103   :  { %671 = vmatpush2.msra.mxu0 %v3192_v45 }
 0x104   :  { %672 = vmatprep.subr.mxu0 %v3195_v46 }
 0x105   :  { %673 = vmatpush2.msra.mxu0 %v3198_v47 }
 0x106   :  { %674 = vmatprep.subr.mxu0 %v3201_v48 }
 0x107   :  { %675 = vmatpush2.msra.mxu0 %v3204_v49 }
 0x108   :  { %676 = vmatprep.subr.mxu0 %v3207_v50 }
 0x109   :  { %677 = vmatpush2.msra.mxu0 %v3210_v51 }
 0x10a   :  { %678 = vmatprep.subr.mxu0 %v3213_v52 }
 0x10b   :  { %679 = vmatpush2.msra.mxu0 %v3216_v53 }
 0x10c   :  { %680 = vmatprep.subr.mxu0 %v3219_v54 }
 0x10d   :  { %681 = vmatpush2.msra.mxu0 %v3222_v56 }
 0x10e   :  { %682 = vmatprep.subr.mxu0 %v3225_v57 }
 0x10f   :  { %683 = vmatpush2.msra.mxu0 %v3228_v58  ;;  %v3248_v58 = vld [vmem:[#allocation10 + $0x110] sm:$0xff] }
 0x110   :  { %684 = vmatprep.subr.mxu0 %v3231_v59  ;;  %4911 = vst [vmem:[#allocation37_spill] sm:$0xff] %v3248_v58  ;;  %v4771_v59 = vmov 0.0  }
 0x111   :  { %685 = vmatpush2.msra.mxu0 %v3234_v60  ;;  %420 = vmatprep.mubr.f32.mxu1 %v4771_v59 }
 0x112   :  { %686 = vmatprep.subr.mxu0 %v3237_v61  ;;  %v3251_v61 = vld [vmem:[#allocation10 + $0x108] sm:$0xff]  ;;  %692 = vmatprep.mubr.f32.mxu0 %v4771_v59 }
 0x113   :  { %687 = vmatpush2.msra.mxu0 %v3242_v3  ;;  %4912 = vst [vmem:[#allocation38_spill] sm:$0xff] %v3251_v61 }
 0x114   :  { %688 = vmatprep.subr.mxu0 %v3245_v11 }
 0x115   :  { %689 = vmatpush2.msra.mxu0 %v3248_v58 }
 0x116   :  { %690 = vmatprep.subr.mxu0 %v3251_v61 }
 0x117   :  { %691 = vmatpush2.msra.mxu0 %v3254_v2 }
 0x118   :  { %693 = vmatmul.mubr.f32.vlgmr.msra.gmra.mxu0 %v4771_v59  ;;  %809 = vmatprep.subr.mxu0 %v3064_v29  ;;  %v4916_v59 = vld [vmem:[#allocation34_spill] sm:$0xff] }
 0x119   :  { %810 = vmatpush1.msra.mxu0 %v3068_v62 }
 0x11a   :  { %811 = vmatprep.subr.mxu0 %v3070_v63 }
 0x11b   :  { %812 = vmatpush1.msra.mxu0 %v3072_v0 }
 0x11c   :  { %813 = vmatprep.subr.mxu0 %v3075_v1 }
 0x11d   :  { %814 = vmatpush1.msra.mxu0 %v3078_v4 }
 0x11e   :  { %815 = vmatprep.subr.mxu0 %v3081_v5 }
 0x11f   :  { %816 = vmatpush1.msra.mxu0 %v3084_v6 }
 0x120   :  { %817 = vmatprep.subr.mxu0 %v3087_v7 }
 0x121   :  { %818 = vmatpush1.msra.mxu0 %v3090_v9 }
 0x122   :  { %819 = vmatprep.subr.mxu0 %v3093_v10 }
 0x123   :  { %820 = vmatpush1.msra.mxu0 %v3096_v12 }
 0x124   :  { %821 = vmatprep.subr.mxu0 %v3099_v13 }
 0x125   :  { %822 = vmatpush1.msra.mxu0 %v3102_v14 }
 0x126   :  { %823 = vmatprep.subr.mxu0 %v3105_v15 }
 0x127   :  { %824 = vmatpush1.msra.mxu0 %v3108_v16 }
 0x128   :  { %825 = vmatprep.subr.mxu0 %v3111_v17 }
 0x129   :  { %826 = vmatpush1.msra.mxu0 %v3114_v18 }
 0x12a   :  { %827 = vmatprep.subr.mxu0 %v3117_v19 }
 0x12b   :  { %828 = vmatpush1.msra.mxu0 %v3120_v20 }
 0x12c   :  { %829 = vmatprep.subr.mxu0 %v3123_v21 }
 0x12d   :  { %830 = vmatpush1.msra.mxu0 %v3126_v22 }
 0x12e   :  { %831 = vmatprep.subr.mxu0 %v3129_v23 }
 0x12f   :  { %832 = vmatpush1.msra.mxu0 %v3132_v24 }
 0x130   :  { %833 = vmatprep.subr.mxu0 %v3135_v25 }
 0x131   :  { %834 = vmatpush1.msra.mxu0 %v3138_v26 }
 0x132   :  { %835 = vmatprep.subr.mxu0 %v3141_v27 }
 0x133   :  { %836 = vmatpush1.msra.mxu0 %v3144_v28 }
 0x134   :  { %837 = vmatprep.subr.mxu0 %v3147_v30 }
 0x135   :  { %838 = vmatpush1.msra.mxu0 %v3150_v31 }
 0x136   :  { %839 = vmatprep.subr.mxu0 %v3153_v32 }
 0x137   :  { %840 = vmatpush1.msra.mxu0 %v3156_v33 }
 0x138   :  { %841 = vmatprep.subr.mxu0 %v3159_v34 }
 0x139   :  { %842 = vmatpush2.msra.mxu0 %v3162_v35 }
 0x13a   :  { %843 = vmatprep.subr.mxu0 %v3165_v36 }
 0x13b   :  { %844 = vmatpush2.msra.mxu0 %v3168_v37 }
 0x13c   :  { %845 = vmatprep.subr.mxu0 %v3171_v38 }
 0x13d   :  { %846 = vmatpush2.msra.mxu0 %v3174_v39 }
 0x13e   :  { %847 = vmatprep.subr.mxu0 %v3177_v40 }
 0x13f   :  { %848 = vmatpush2.msra.mxu0 %v3180_v41 }
 0x140   :  { %849 = vmatprep.subr.mxu0 %v3183_v42 }
 0x141   :  { %850 = vmatpush2.msra.mxu0 %v3186_v43 }
 0x142   :  { %851 = vmatprep.subr.mxu0 %v3189_v44 }
 0x143   :  { %852 = vmatpush2.msra.mxu0 %v3192_v45 }
 0x144   :  { %853 = vmatprep.subr.mxu0 %v3195_v46 }
 0x145   :  { %854 = vmatpush2.msra.mxu0 %v3198_v47 }
 0x146   :  { %855 = vmatprep.subr.mxu0 %v3201_v48 }
 0x147   :  { %856 = vmatpush2.msra.mxu0 %v3204_v49 }
 0x148   :  { %857 = vmatprep.subr.mxu0 %v3207_v50 }
 0x149   :  { %858 = vmatpush2.msra.mxu0 %v3210_v51 }
 0x14a   :  { %859 = vmatprep.subr.mxu0 %v3213_v52 }
 0x14b   :  { %860 = vmatpush2.msra.mxu0 %v3216_v53 }
 0x14c   :  { %861 = vmatprep.subr.mxu0 %v3219_v54 }
 0x14d   :  { %862 = vmatpush2.msra.mxu0 %v3222_v56 }
 0x14e   :  { %863 = vmatprep.subr.mxu0 %v3225_v57 }
 0x14f   :  { %864 = vmatpush2.msra.mxu0 %v4914_v55 }
 0x150   :  { %865 = vmatprep.subr.mxu0 %v4915_v8  ;;  %v4917_v8 = vmov 0.0  }
 0x151   :  { %866 = vmatpush2.msra.mxu0 %v3234_v60 }
 0x152   :  { %867 = vmatprep.subr.mxu0 %v4916_v59 }
 0x153   :  { %868 = vmatpush2.msra.mxu0 %v3242_v3 }
 0x154   :  { %869 = vmatprep.subr.mxu0 %v3245_v11 }
 0x155   :  { %870 = vmatpush2.msra.mxu0 %v3248_v58 }
 0x156   :  { %871 = vmatprep.subr.mxu0 %v3251_v61 }
 0x157   :  { %872 = vmatpush2.msra.mxu0 %v3254_v2 }
 0x158   :  { %985 = vmatprep.subr.mxu0 %v3064_v29 }
 0x198   :  { %v2558_v57 = vpop.f32.mrf.mxu0 }
 0x19a   :  { %v273_v55 = vpop.f32.mrf.mxu0 }
 0x19b   :  { %421 = vmatmul.mubr.f32.vlgmr.msra.gmra.mxu1 %v273_v55 }
 0x19c   :  { %426 = vmatprep.mubr.f32.mxu1 %v4917_v8  ;;  %719 = vmatpush1.msra.mxu1 %v3068_v62  ;;  %v2561_v3 = vpop.f32.mrf.mxu0 }
 0x19d   :  { %720 = vmatprep.subr.mxu1 %v3070_v63 }
 0x19e   :  { %721 = vmatpush1.msra.mxu1 %v3072_v0  ;;  %v283_v29 = vpop.f32.mrf.mxu0 }
 0x19f   :  { %427 = vmatmul.mubr.f32.gmra.mxu1 %v2558_v57  ;;  %722 = vmatprep.subr.mxu1 %v3075_v1 }
 0x1a0   :  { %432 = vmatprep.mubr.f32.mxu1 %v4917_v8  ;;  %723 = vmatpush1.msra.mxu1 %v3078_v4  ;;  %v2564_v57 = vpop.f32.mrf.mxu0 }
 0x1a1   :  { %724 = vmatprep.subr.mxu1 %v3081_v5 }
 0x1a2   :  { %725 = vmatpush1.msra.mxu1 %v3084_v6 }
 0x1a3   :  { %433 = vmatmul.mubr.f32.gmra.mxu1 %v283_v29  ;;  %726 = vmatprep.subr.mxu1 %v3087_v7  ;;  %v293_v29 = vpop.f32.mrf.mxu0 }
 0x1a4   :  { %438 = vmatprep.mubr.f32.mxu1 %v4917_v8  ;;  %727 = vmatpush1.msra.mxu1 %v3090_v9 }
 0x1a5   :  { %728 = vmatprep.subr.mxu1 %v3093_v10 }
 0x1a6   :  { %729 = vmatpush1.msra.mxu1 %v3096_v12 }
 0x1a7   :  { %439 = vmatmul.mubr.f32.gmra.mxu1 %v2561_v3  ;;  %730 = vmatprep.subr.mxu1 %v3099_v13  ;;  %v2567_v3 = vpop.f32.mrf.mxu0 }
 0x1a8   :  { %444 = vmatprep.mubr.f32.mxu1 %v4917_v8  ;;  %731 = vmatpush1.msra.mxu1 %v3102_v14 }
 0x1a9   :  { %732 = vmatprep.subr.mxu1 %v3105_v15  ;;  %v303_v55 = vpop.f32.mrf.mxu0 }
 0x1aa   :  { %733 = vmatpush1.msra.mxu1 %v3108_v16 }
 0x1ab   :  { %445 = vmatmul.mubr.f32.gmra.mxu1 %v293_v29  ;;  %734 = vmatprep.subr.mxu1 %v3111_v17  ;;  %v4919_v29 = vld [vmem:[#allocation31_spill] sm:$0xff] }
 0x1ac   :  { %450 = vmatprep.mubr.f32.mxu1 %v4917_v8  ;;  %735 = vmatpush1.msra.mxu1 %v3114_v18 }
 0x1ad   :  { %736 = vmatprep.subr.mxu1 %v3117_v19 }
 0x1ae   :  { %737 = vmatpush1.msra.mxu1 %v3120_v20 }
 0x1af   :  { %451 = vmatmul.mubr.f32.gmra.mxu1 %v2564_v57  ;;  %738 = vmatprep.subr.mxu1 %v3123_v21  ;;  %v4918_v57 = vld [vmem:[#allocation30_spill] sm:$0xff] }
 0x1b0   :  { %456 = vmatprep.mubr.f32.mxu1 %v4917_v8  ;;  %739 = vmatpush1.msra.mxu1 %v3126_v22 }
 0x1b1   :  { %740 = vmatprep.subr.mxu1 %v3129_v23 }
 0x1b2   :  { %741 = vmatpush1.msra.mxu1 %v3132_v24 }
 0x1b3   :  { %457 = vmatmul.mubr.f32.gmra.mxu1 %v303_v55  ;;  %742 = vmatprep.subr.mxu1 %v3135_v25  ;;  %v4921_v55 = vld [vmem:[#allocation35_spill] sm:$0xff] }
 0x1b4   :  { %462 = vmatprep.mubr.f32.mxu1 %v4917_v8  ;;  %743 = vmatpush1.msra.mxu1 %v3138_v26  ;;  %v4922_v8 = vld [vmem:[#allocation21_spill] sm:$0xff] }
 0x1b5   :  { %744 = vmatprep.subr.mxu1 %v3141_v27 }
 0x1b6   :  { %745 = vmatpush1.msra.mxu1 %v3144_v28 }
 0x1b7   :  { %463 = vmatmul.mubr.f32.gmra.mxu1 %v2567_v3  ;;  %746 = vmatprep.subr.mxu1 %v3147_v30  ;;  %v4920_v3 = vld [vmem:[#allocation32_spill] sm:$0xff] }
 0x1b8   :  { %747 = vmatpush1.msra.mxu1 %v3150_v31 }
 0x1b9   :  { %748 = vmatprep.subr.mxu1 %v3153_v32 }
 0x1ba   :  { %749 = vmatpush1.msra.mxu1 %v3156_v33 }
 0x1bb   :  { %750 = vmatprep.subr.mxu1 %v3159_v34 }
 0x1bc   :  { %751 = vmatpush2.msra.mxu1 %v3162_v35 }
 0x1bd   :  { %752 = vmatprep.subr.mxu1 %v3165_v36 }
 0x1be   :  { %753 = vmatpush2.msra.mxu1 %v3168_v37 }
 0x1bf   :  { %754 = vmatprep.subr.mxu1 %v3171_v38 }
 0x1c0   :  { %755 = vmatpush2.msra.mxu1 %v3174_v39 }
 0x1c1   :  { %756 = vmatprep.subr.mxu1 %v3177_v40 }
 0x1c2   :  { %757 = vmatpush2.msra.mxu1 %v3180_v41 }
 0x1c3   :  { %758 = vmatprep.subr.mxu1 %v3183_v42 }
 0x1c4   :  { %759 = vmatpush2.msra.mxu1 %v3186_v43 }
 0x1c5   :  { %760 = vmatprep.subr.mxu1 %v3189_v44 }
 0x1c6   :  { %761 = vmatpush2.msra.mxu1 %v3192_v45 }
 0x1c7   :  { %762 = vmatprep.subr.mxu1 %v3195_v46 }
 0x1c8   :  { %763 = vmatpush2.msra.mxu1 %v3198_v47 }
 0x1c9   :  { %764 = vmatprep.subr.mxu1 %v3201_v48 }
 0x1ca   :  { %765 = vmatpush2.msra.mxu1 %v3204_v49 }
 0x1cb   :  { %766 = vmatprep.subr.mxu1 %v3207_v50 }
 0x1cc   :  { %767 = vmatpush2.msra.mxu1 %v3210_v51 }
 0x1cd   :  { %768 = vmatprep.subr.mxu1 %v3213_v52 }
 0x1ce   :  { %769 = vmatpush2.msra.mxu1 %v3216_v53 }
 0x1cf   :  { %770 = vmatprep.subr.mxu1 %v3219_v54 }
 0x1d0   :  { %771 = vmatpush2.msra.mxu1 %v3222_v56 }
 0x1d1   :  { %772 = vmatprep.subr.mxu1 %v4918_v57  ;;  %v4923_v57 = vlaneseq }
 0x1d2   :  { %773 = vmatpush2.msra.mxu1 %v4919_v29 }
 0x1d3   :  { %774 = vmatprep.subr.mxu1 %v4920_v3  ;;  %v3398_v29 = vshrl.u32 %v4923_v57, 7 }
 0x1d4   :  { %775 = vmatpush2.msra.mxu1 %v3234_v60 }
 0x1d5   :  { %776 = vmatprep.subr.mxu1 %v4916_v59  ;;  %4924 = vst [vmem:[#allocation40_spill] sm:$0xff] %v3398_v29  ;;  %v4803_v3 = vsub.s32 1, %v3398_v29  ;;  %v344_v59 = vld [vmem:[%s4756_s4] sm:$0x3] }
 0x1d6   :  { %777 = vmatpush2.msra.mxu1 %v4921_v55  ;;  %v4810_v55 = vsub.s32 0, %v3398_v29 }
 0x1d7   :  { %778 = vmatprep.subr.mxu1 %v3245_v11 }
 0x1d8   :  { %779 = vmatpush2.msra.mxu1 %v3248_v58  ;;  %v353_v58 = vrot.slane %v344_v59, %v4803_v3 }
 0x1d9   :  { %780 = vmatprep.subr.mxu1 %v3251_v61 }
 0x1da   :  { %781 = vmatpush2.msra.mxu1 %v3254_v2  ;;  %v349_v2 = vrot.slane %v344_v59, %v4810_v55 }
 0x1db   :  { %900 = vmatprep.subr.mxu1 %v4922_v8 }
 0x25b   :  { %v422_v11 = vpop.f32.mrf.mxu1 }
 0x25d   :  { %v424_v61 = vpop.f32.mrf.mxu1 }
 0x25e   :  { %v3409_v8 = vadd.f32 %v424_v61, %v353_v58 }
 0x25f   :  { %v428_v57 = vpop.f32.mrf.mxu1 }
 0x260   :  { %4925 = vst [vmem:[#allocation41_spill] sm:$0xff] %v3409_v8  ;;  %v3411_v60 = vadd.f32 %v428_v57, %v349_v2 }
 0x261   :  { %v430_v56 = vpop.f32.mrf.mxu1 }
 0x262   :  { %4926 = vst [vmem:[#allocation42_spill] sm:$0xff] %v3411_v60  ;;  %v3413_v54 = vadd.f32 %v430_v56, %v353_v58 }
 0x263   :  { %v434_v53 = vpop.f32.mrf.mxu1 }
 0x264   :  { %4927 = vst [vmem:[#allocation43_spill] sm:$0xff] %v3413_v54  ;;  %v3415_v52 = vadd.f32 %v434_v53, %v349_v2 }
 0x265   :  { %v436_v51 = vpop.f32.mrf.mxu1 }
 0x266   :  { %4928 = vst [vmem:[#allocation44_spill] sm:$0xff] %v3415_v52  ;;  %v3417_v50 = vadd.f32 %v436_v51, %v353_v58  ;;  %v694_v52 = vpop.f32.mrf.mxu0 }
 0x267   :  { %v440_v3 = vpop.f32.mrf.mxu1 }
 0x268   :  { %4929 = vst [vmem:[#allocation45_spill] sm:$0xff] %v3417_v50  ;;  %v3419_v49 = vadd.f32 %v440_v3, %v349_v2  ;;  %v696_v60 = vpop.f32.mrf.mxu0 }
 0x269   :  { %v442_v48 = vpop.f32.mrf.mxu1 }
 0x26a   :  { %4930 = vst [vmem:[#allocation46_spill] sm:$0xff] %v3419_v49  ;;  %v3421_v29 = vadd.f32 %v442_v48, %v353_v58  ;;  %v423_v48 = vadd.f32 %v422_v11, %v349_v2  ;;  %v4943_v11 = vld [vmem:[#allocation25_spill] sm:$0xff] }
 0x26b   :  { %v446_v59 = vpop.f32.mrf.mxu1 }
 0x26c   :  { %4931 = vst [vmem:[#allocation47_spill] sm:$0xff] %v3421_v29  ;;  %v3423_v61 = vadd.f32 %v446_v59, %v349_v2 }
 0x26d   :  { %v448_v57 = vpop.f32.mrf.mxu1 }
 0x26e   :  { %4932 = vst [vmem:[#allocation48_spill] sm:$0xff] %v3423_v61  ;;  %v3425_v55 = vadd.f32 %v448_v57, %v353_v58 }
 0x26f   :  { %v452_v56 = vpop.f32.mrf.mxu1 }
 0x270   :  { %4933 = vst [vmem:[#allocation49_spill] sm:$0xff] %v3425_v55  ;;  %v3427_v8 = vadd.f32 %v452_v56, %v349_v2  ;;  %v699_v55 = vadd.f32 %v694_v52, %v423_v48  ;;  %v4940_v52 = vld [vmem:[#allocation22_spill] sm:$0xff]  ;;  %v4950_v48 = vld [vmem:[#allocation32_spill] sm:$0xff] }
 0x271   :  { %v454_v53 = vpop.f32.mrf.mxu1 }
 0x272   :  { %4934 = vst [vmem:[#allocation50_spill] sm:$0xff] %v3427_v8  ;;  %v3429_v54 = vadd.f32 %v454_v53, %v353_v58 }
 0x273   :  { %v458_v51 = vpop.f32.mrf.mxu1 }
 0x274   :  { %4935 = vst [vmem:[#allocation51_spill] sm:$0xff] %v3429_v54  ;;  %v3431_v50 = vadd.f32 %v458_v51, %v349_v2  ;;  %v4948_v51 = vld [vmem:[#allocation30_spill] sm:$0xff]  ;;  %v4957_v54 = vld [vmem:[#allocation39_spill] sm:$0xff] }
 0x275   :  { %v460_v3 = vpop.f32.mrf.mxu1 }
 0x276   :  { %4936 = vst [vmem:[#allocation52_spill] sm:$0xff] %v3431_v50  ;;  %v3433_v49 = vadd.f32 %v460_v3, %v353_v58  ;;  %v4949_v3 = vld [vmem:[#allocation31_spill] sm:$0xff]  ;;  %v4956_v50 = vld [vmem:[#allocation38_spill] sm:$0xff] }
 0x277   :  { %v464_v29 = vpop.f32.mrf.mxu1 }
 0x278   :  { %v3435_v59 = vadd.f32 %v464_v29, %v349_v2  ;;  %v4944_v2 = vld [vmem:[#allocation26_spill] sm:$0xff]  ;;  %v4945_v29 = vld [vmem:[#allocation27_spill] sm:$0xff] }
 0x279   :  { %v466_v61 = vpop.f32.mrf.mxu1 }
 0x27a   :  { %4937 = vst [vmem:[#allocation53_spill] sm:$0xff] %v3435_v59  ;;  %v467_v57 = vadd.f32 %v466_v61, %v353_v58  ;;  %v4941_v58 = vld [vmem:[#allocation23_spill] sm:$0xff]  ;;  %v4947_v61 = vld [vmem:[#allocation29_spill] sm:$0xff]  ;;  %v4954_v59 = vld [vmem:[#allocation36_spill] sm:$0xff] }
 0x27c   :  { %v700_v56 = vadd.f32 %v696_v60, %v467_v57  ;;  %v4942_v60 = vld [vmem:[#allocation24_spill] sm:$0xff]  ;;  %v4951_v57 = vld [vmem:[#allocation33_spill] sm:$0xff] }
 0x27e   :  { %2584 = vtanh.f32 %v700_v56  ;;  %v4952_v56 = vld [vmem:[#allocation34_spill] sm:$0xff] }
 0x27f   :  { %2586 = vtanh.f32 %v699_v55  ;;  %v4946_v55 = vld [vmem:[#allocation28_spill] sm:$0xff] }
 0x28b   :  { %v3437_v53 = vpop.eup %2584 }
 0x28c   :  { %4938 = vst [vmem:[#allocation54_spill] sm:$0xff] %v3437_v53  ;;  %v3439_v8 = vpop.eup %2586  ;;  %782 = vmatprep.mubr.f32.mxu1 %v3437_v53  ;;  %v4953_v53 = vld [vmem:[#allocation35_spill] sm:$0xff] }
 0x28d   :  { %4939 = vst [vmem:[#allocation55_spill] sm:$0xff] %v3439_v8  ;;  %783 = vmatmul.mubr.f32.vlgmr.msra.gmra.mxu1 %v3439_v8  ;;  %v4955_v8 = vld [vmem:[#allocation37_spill] sm:$0xff] }
 0x28e   :  { %901 = vmatpush1.msra.mxu1 %v3068_v62 }
 0x28f   :  { %902 = vmatprep.subr.mxu1 %v3070_v63 }
 0x290   :  { %903 = vmatpush1.msra.mxu1 %v3072_v0 }
 0x291   :  { %904 = vmatprep.subr.mxu1 %v3075_v1 }
 0x292   :  { %905 = vmatpush1.msra.mxu1 %v3078_v4 }
 0x293   :  { %906 = vmatprep.subr.mxu1 %v3081_v5 }
 0x294   :  { %907 = vmatpush1.msra.mxu1 %v3084_v6 }
 0x295   :  { %908 = vmatprep.subr.mxu1 %v3087_v7 }
 0x296   :  { %909 = vmatpush1.msra.mxu1 %v3090_v9 }
 0x297   :  { %910 = vmatprep.subr.mxu1 %v3093_v10 }
 0x298   :  { %911 = vmatpush1.msra.mxu1 %v3096_v12 }
 0x299   :  { %912 = vmatprep.subr.mxu1 %v3099_v13 }
 0x29a   :  { %913 = vmatpush1.msra.mxu1 %v3102_v14 }
 0x29b   :  { %914 = vmatprep.subr.mxu1 %v3105_v15 }
 0x29c   :  { %915 = vmatpush1.msra.mxu1 %v3108_v16 }
 0x29d   :  { %916 = vmatprep.subr.mxu1 %v3111_v17 }
 0x29e   :  { %917 = vmatpush1.msra.mxu1 %v3114_v18 }
 0x29f   :  { %918 = vmatprep.subr.mxu1 %v3117_v19 }
 0x2a0   :  { %919 = vmatpush1.msra.mxu1 %v3120_v20 }
 0x2a1   :  { %920 = vmatprep.subr.mxu1 %v3123_v21 }
 0x2a2   :  { %921 = vmatpush1.msra.mxu1 %v3126_v22 }
 0x2a3   :  { %922 = vmatprep.subr.mxu1 %v3129_v23 }
 0x2a4   :  { %923 = vmatpush1.msra.mxu1 %v3132_v24 }
 0x2a5   :  { %924 = vmatprep.subr.mxu1 %v3135_v25 }
 0x2a6   :  { %925 = vmatpush1.msra.mxu1 %v3138_v26 }
 0x2a7   :  { %926 = vmatprep.subr.mxu1 %v3141_v27 }
 0x2a8   :  { %927 = vmatpush1.msra.mxu1 %v3144_v28 }
 0x2a9   :  { %928 = vmatprep.subr.mxu1 %v3147_v30 }
 0x2aa   :  { %929 = vmatpush1.msra.mxu1 %v3150_v31 }
 0x2ab   :  { %930 = vmatprep.subr.mxu1 %v3153_v32 }
 0x2ac   :  { %931 = vmatpush1.msra.mxu1 %v3156_v33 }
 0x2ad   :  { %932 = vmatprep.subr.mxu1 %v3159_v34 }
 0x2ae   :  { %933 = vmatpush2.msra.mxu1 %v3162_v35 }
 0x2af   :  { %934 = vmatprep.subr.mxu1 %v3165_v36 }
 0x2b0   :  { %935 = vmatpush2.msra.mxu1 %v3168_v37 }
 0x2b1   :  { %936 = vmatprep.subr.mxu1 %v3171_v38 }
 0x2b2   :  { %937 = vmatpush2.msra.mxu1 %v3174_v39 }
 0x2b3   :  { %938 = vmatprep.subr.mxu1 %v3177_v40 }
 0x2b4   :  { %939 = vmatpush2.msra.mxu1 %v3180_v41 }
 0x2b5   :  { %940 = vmatprep.subr.mxu1 %v3183_v42 }
 0x2b6   :  { %941 = vmatpush2.msra.mxu1 %v3186_v43 }
 0x2b7   :  { %942 = vmatprep.subr.mxu1 %v3189_v44 }
 0x2b8   :  { %943 = vmatpush2.msra.mxu1 %v3192_v45 }
 0x2b9   :  { %944 = vmatprep.subr.mxu1 %v3195_v46 }
 0x2ba   :  { %945 = vmatpush2.msra.mxu1 %v3198_v47 }
 0x2bb   :  { %946 = vmatprep.subr.mxu1 %v4940_v52 }
 0x2bc   :  { %947 = vmatpush2.msra.mxu1 %v4941_v58 }
 0x2bd   :  { %948 = vmatprep.subr.mxu1 %v4942_v60 }
 0x2be   :  { %949 = vmatpush2.msra.mxu1 %v4943_v11 }
 0x2bf   :  { %950 = vmatprep.subr.mxu1 %v4944_v2 }
 0x2c0   :  { %951 = vmatpush2.msra.mxu1 %v4945_v29 }
 0x2c1   :  { %952 = vmatprep.subr.mxu1 %v4946_v55 }
 0x2c2   :  { %953 = vmatpush2.msra.mxu1 %v4947_v61  ;;  %v4958_v61 = vld [vmem:[#allocation21_spill] sm:$0xff] }
 0x2c3   :  { %954 = vmatprep.subr.mxu1 %v4948_v51 }
 0x2c4   :  { %955 = vmatpush2.msra.mxu1 %v4949_v3  ;;  %v4959_v3 = vld [vmem:[#allocation42_spill] sm:$0xff] }
 0x2c5   :  { %956 = vmatprep.subr.mxu1 %v4950_v48 }
 0x2c6   :  { %957 = vmatpush2.msra.mxu1 %v4951_v57 }
 0x2c7   :  { %958 = vmatprep.subr.mxu1 %v4952_v56 }
 0x2c8   :  { %959 = vmatpush2.msra.mxu1 %v4953_v53 }
 0x2c9   :  { %960 = vmatprep.subr.mxu1 %v4954_v59 }
 0x2ca   :  { %961 = vmatpush2.msra.mxu1 %v4955_v8 }
 0x2cb   :  { %962 = vmatprep.subr.mxu1 %v4956_v50 }
 0x2cc   :  { %963 = vmatpush2.msra.mxu1 %v4957_v54 }
 0x2cd   :  { %1070 = vmatprep.subr.mxu1 %v4958_v61  ;;  %v4964_v61 = vld [vmem:[#allocation30_spill] sm:$0xff] }
 0x34d   :  { %v784_v51 = vpop.f32.mrf.mxu1 }
 0x34e   :  { %v789_v55 = vadd.f32 %v784_v51, %v4959_v3  ;;  %v4965_v51 = vld [vmem:[#allocation31_spill] sm:$0xff]  ;;  %v4966_v3 = vld [vmem:[#allocation32_spill] sm:$0xff] }
 0x34f   :  { %v786_v48 = vpop.f32.mrf.mxu1 }
 0x350   :  { %v790_v57 = vadd.f32 %v786_v48, %v3433_v49  ;;  %v4962_v49 = vld [vmem:[#allocation28_spill] sm:$0xff]  ;;  %v4967_v48 = vld [vmem:[#allocation33_spill] sm:$0xff] }
 0x352   :  { %2588 = vtanh.f32 %v790_v57  ;;  %v4968_v57 = vld [vmem:[#allocation34_spill] sm:$0xff] }
 0x353   :  { %2590 = vtanh.f32 %v789_v55  ;;  %v4963_v55 = vld [vmem:[#allocation29_spill] sm:$0xff] }
 0x35f   :  { %v3509_v56 = vpop.eup %2588 }
 0x360   :  { %4960 = vst [vmem:[#allocation22_spill] sm:$0xff] %v3509_v56  ;;  %v3511_v53 = vpop.eup %2590  ;;  %873 = vmatprep.mubr.f32.mxu0 %v3509_v56  ;;  %v4969_v56 = vld [vmem:[#allocation35_spill] sm:$0xff] }
 0x361   :  { %4961 = vst [vmem:[#allocation23_spill] sm:$0xff] %v3511_v53  ;;  %874 = vmatmul.mubr.f32.vlgmr.msra.gmra.mxu0 %v3511_v53  ;;  %v3578_v53 = vld [vmem:[#allocation10 + $0xf8] sm:$0xff] }
 0x362   :  { %986 = vmatpush1.msra.mxu0 %v3068_v62 }
 0x363   :  { %987 = vmatprep.subr.mxu0 %v3070_v63 }
 0x364   :  { %988 = vmatpush1.msra.mxu0 %v3072_v0 }
 0x365   :  { %989 = vmatprep.subr.mxu0 %v3075_v1 }
 0x366   :  { %990 = vmatpush1.msra.mxu0 %v3078_v4 }
 0x367   :  { %991 = vmatprep.subr.mxu0 %v3081_v5 }
 0x368   :  { %992 = vmatpush1.msra.mxu0 %v3084_v6 }
 0x369   :  { %993 = vmatprep.subr.mxu0 %v3087_v7 }
 0x36a   :  { %994 = vmatpush1.msra.mxu0 %v3090_v9 }
 0x36b   :  { %995 = vmatprep.subr.mxu0 %v3093_v10 }
 0x36c   :  { %996 = vmatpush1.msra.mxu0 %v3096_v12 }
 0x36d   :  { %997 = vmatprep.subr.mxu0 %v3099_v13 }
 0x36e   :  { %998 = vmatpush1.msra.mxu0 %v3102_v14 }
 0x36f   :  { %999 = vmatprep.subr.mxu0 %v3105_v15 }
 0x370   :  { %1000 = vmatpush1.msra.mxu0 %v3108_v16 }
 0x371   :  { %1001 = vmatprep.subr.mxu0 %v3111_v17 }
 0x372   :  { %1002 = vmatpush1.msra.mxu0 %v3114_v18 }
 0x373   :  { %1003 = vmatprep.subr.mxu0 %v3117_v19 }
 0x374   :  { %1004 = vmatpush1.msra.mxu0 %v3120_v20 }
 0x375   :  { %1005 = vmatprep.subr.mxu0 %v3123_v21 }
 0x376   :  { %1006 = vmatpush1.msra.mxu0 %v3126_v22 }
 0x377   :  { %1007 = vmatprep.subr.mxu0 %v3129_v23 }
 0x378   :  { %1008 = vmatpush1.msra.mxu0 %v3132_v24 }
 0x379   :  { %1009 = vmatprep.subr.mxu0 %v3135_v25 }
 0x37a   :  { %1010 = vmatpush1.msra.mxu0 %v3138_v26 }
 0x37b   :  { %1011 = vmatprep.subr.mxu0 %v3141_v27 }
 0x37c   :  { %1012 = vmatpush1.msra.mxu0 %v3144_v28 }
 0x37d   :  { %1013 = vmatprep.subr.mxu0 %v3147_v30 }
 0x37e   :  { %1014 = vmatpush1.msra.mxu0 %v3150_v31 }
 0x37f   :  { %1015 = vmatprep.subr.mxu0 %v3153_v32 }
 0x380   :  { %1016 = vmatpush1.msra.mxu0 %v3156_v33 }
 0x381   :  { %1017 = vmatprep.subr.mxu0 %v3159_v34 }
 0x382   :  { %1018 = vmatpush2.msra.mxu0 %v3162_v35 }
 0x383   :  { %1019 = vmatprep.subr.mxu0 %v3165_v36 }
 0x384   :  { %1020 = vmatpush2.msra.mxu0 %v3168_v37 }
 0x385   :  { %1021 = vmatprep.subr.mxu0 %v3171_v38 }
 0x386   :  { %1022 = vmatpush2.msra.mxu0 %v3174_v39 }
 0x387   :  { %1023 = vmatprep.subr.mxu0 %v3177_v40 }
 0x388   :  { %1024 = vmatpush2.msra.mxu0 %v3180_v41 }
 0x389   :  { %1025 = vmatprep.subr.mxu0 %v3183_v42 }
 0x38a   :  { %1026 = vmatpush2.msra.mxu0 %v3186_v43 }
 0x38b   :  { %1027 = vmatprep.subr.mxu0 %v3189_v44 }
 0x38c   :  { %1028 = vmatpush2.msra.mxu0 %v3192_v45 }
 0x38d   :  { %1029 = vmatprep.subr.mxu0 %v3195_v46 }
 0x38e   :  { %1030 = vmatpush2.msra.mxu0 %v3198_v47 }
 0x38f   :  { %1031 = vmatprep.subr.mxu0 %v4940_v52 }
 0x390   :  { %1032 = vmatpush2.msra.mxu0 %v4941_v58 }
 0x391   :  { %1033 = vmatprep.subr.mxu0 %v4942_v60 }
 0x392   :  { %1034 = vmatpush2.msra.mxu0 %v4943_v11 }
 0x393   :  { %1035 = vmatprep.subr.mxu0 %v4944_v2 }
 0x394   :  { %1036 = vmatpush2.msra.mxu0 %v4945_v29 }
 0x395   :  { %1037 = vmatprep.subr.mxu0 %v4962_v49 }
 0x396   :  { %1038 = vmatpush2.msra.mxu0 %v4963_v55  ;;  %v4971_v55 = vld [vmem:[#allocation51_spill] sm:$0xff] }
 0x397   :  { %1039 = vmatprep.subr.mxu0 %v4964_v61 }
 0x398   :  { %1040 = vmatpush2.msra.mxu0 %v4965_v51 }
 0x399   :  { %1041 = vmatprep.subr.mxu0 %v4966_v3  ;;  %v4970_v3 = vld [vmem:[#allocation44_spill] sm:$0xff] }
 0x39a   :  { %1042 = vmatpush2.msra.mxu0 %v4967_v48 }
 0x39b   :  { %1043 = vmatprep.subr.mxu0 %v4968_v57 }
 0x39c   :  { %1044 = vmatpush2.msra.mxu0 %v4969_v56 }
 0x39d   :  { %1045 = vmatprep.subr.mxu0 %v4954_v59 }
 0x39e   :  { %1046 = vmatpush2.msra.mxu0 %v4955_v8 }
 0x39f   :  { %1047 = vmatprep.subr.mxu0 %v4956_v50 }
 0x3a0   :  { %1048 = vmatpush2.msra.mxu0 %v4957_v54 }
 0x3a1   :  { %1155 = vmatprep.subr.mxu0 %v3578_v53 }
 0x421   :  { %v875_v51 = vpop.f32.mrf.mxu0 }
 0x422   :  { %v880_v61 = vadd.f32 %v875_v51, %v4970_v3  ;;  %v3772_v51 = vld [vmem:[#allocation10 + $0x1c8] sm:$0xff]  ;;  %v3775_v3 = vld [vmem:[#allocation10 + $0x1c0] sm:$0xff] }
 0x423   :  { %v877_v48 = vpop.f32.mrf.mxu0 }
 0x424   :  { %v881_v57 = vadd.f32 %v877_v48, %v4971_v55  ;;  %v3766_v55 = vld [vmem:[#allocation10 + $0x1d8] sm:$0xff] }
 0x425   :  { %v3778_v48 = vld [vmem:[#allocation10 + $0x1b8] sm:$0xff] }
 0x426   :  { %2592 = vtanh.f32 %v881_v57  ;;  %v3781_v57 = vld [vmem:[#allocation10 + $0x1b0] sm:$0xff] }
 0x427   :  { %2594 = vtanh.f32 %v880_v61  ;;  %v3769_v61 = vld [vmem:[#allocation10 + $0x1d0] sm:$0xff] }
 0x433   :  { %v3583_v56 = vpop.eup %2592 }
 0x434   :  { %4972 = vst [vmem:[#allocation24_spill] sm:$0xff] %v3583_v56  ;;  %v3585_v59 = vpop.eup %2594  ;;  %964 = vmatprep.mubr.f32.mxu1 %v3583_v56  ;;  %v3802_v56 = vld [vmem:[#allocation10 + $0x178] sm:$0xff] }
 0x435   :  { %965 = vmatmul.mubr.f32.vlgmr.msra.gmra.mxu1 %v3585_v59 }
 0x436   :  { %1071 = vmatpush1.msra.mxu1 %v3068_v62  ;;  %v4973_v62 = vld [vmem:[#allocation29_spill] sm:$0xff] }
 0x437   :  { %1072 = vmatprep.subr.mxu1 %v3070_v63  ;;  %v4974_v63 = vld [vmem:[#allocation30_spill] sm:$0xff] }
 0x438   :  { %1073 = vmatpush1.msra.mxu1 %v3072_v0  ;;  %v4975_v0 = vld [vmem:[#allocation31_spill] sm:$0xff] }
 0x439   :  { %1074 = vmatprep.subr.mxu1 %v3075_v1  ;;  %v4976_v1 = vld [vmem:[#allocation32_spill] sm:$0xff] }
 0x43a   :  { %1075 = vmatpush1.msra.mxu1 %v3078_v4  ;;  %v4977_v4 = vld [vmem:[#allocation33_spill] sm:$0xff] }
 0x43b   :  { %1076 = vmatprep.subr.mxu1 %v3081_v5  ;;  %v4978_v5 = vld [vmem:[#allocation34_spill] sm:$0xff] }
 0x43c   :  { %1077 = vmatpush1.msra.mxu1 %v3084_v6  ;;  %v4979_v6 = vld [vmem:[#allocation35_spill] sm:$0xff] }
 0x43d   :  { %1078 = vmatprep.subr.mxu1 %v3087_v7  ;;  %v4980_v7 = vld [vmem:[#allocation36_spill] sm:$0xff] }
 0x43e   :  { %1079 = vmatpush1.msra.mxu1 %v3090_v9 }
 0x43f   :  { %1080 = vmatprep.subr.mxu1 %v3093_v10  ;;  %v4981_v10 = vld [vmem:[#allocation46_spill] sm:$0xff] }
 0x440   :  { %1081 = vmatpush1.msra.mxu1 %v3096_v12 }
 0x441   :  { %1082 = vmatprep.subr.mxu1 %v3099_v13 }
 0x442   :  { %1083 = vmatpush1.msra.mxu1 %v3102_v14  ;;  %v4982_v14 = vld [vmem:[#allocation49_spill] sm:$0xff] }
 0x443   :  { %1084 = vmatprep.subr.mxu1 %v3105_v15 }
 0x444   :  { %1085 = vmatpush1.msra.mxu1 %v3108_v16 }
 0x445   :  { %1086 = vmatprep.subr.mxu1 %v3111_v17 }
 0x446   :  { %1087 = vmatpush1.msra.mxu1 %v3114_v18  ;;  %v3661_v18 = vld [vmem:[#allocation10 + $0xf0] sm:$0xff] }
 0x447   :  { %1088 = vmatprep.subr.mxu1 %v3117_v19  ;;  %v3664_v19 = vld [vmem:[#allocation10 + $0xe8] sm:$0xff] }
 0x448   :  { %1089 = vmatpush1.msra.mxu1 %v3120_v20  ;;  %v3667_v20 = vld [vmem:[#allocation10 + $0xe0] sm:$0xff] }
 0x449   :  { %1090 = vmatprep.subr.mxu1 %v3123_v21  ;;  %v3670_v21 = vld [vmem:[#allocation10 + $0xd8] sm:$0xff] }
 0x44a   :  { %1091 = vmatpush1.msra.mxu1 %v3126_v22  ;;  %v3673_v22 = vld [vmem:[#allocation10 + $0xd0] sm:$0xff] }
 0x44b   :  { %1092 = vmatprep.subr.mxu1 %v3129_v23  ;;  %v3676_v23 = vld [vmem:[#allocation10 + $0xc8] sm:$0xff] }
 0x44c   :  { %1093 = vmatpush1.msra.mxu1 %v3132_v24  ;;  %v3679_v24 = vld [vmem:[#allocation10 + $0xc0] sm:$0xff] }
 0x44d   :  { %1094 = vmatprep.subr.mxu1 %v3135_v25  ;;  %v3682_v25 = vld [vmem:[#allocation10 + $0xb8] sm:$0xff] }
 0x44e   :  { %1095 = vmatpush1.msra.mxu1 %v3138_v26  ;;  %v3685_v26 = vld [vmem:[#allocation10 + $0xb0] sm:$0xff] }
 0x44f   :  { %1096 = vmatprep.subr.mxu1 %v3141_v27  ;;  %v3688_v27 = vld [vmem:[#allocation10 + $0xa8] sm:$0xff] }
 0x450   :  { %1097 = vmatpush1.msra.mxu1 %v3144_v28  ;;  %v3691_v28 = vld [vmem:[#allocation10 + $0xa0] sm:$0xff] }
 0x451   :  { %1098 = vmatprep.subr.mxu1 %v3147_v30  ;;  %v3694_v30 = vld [vmem:[#allocation10 + $0x98] sm:$0xff] }
 0x452   :  { %1099 = vmatpush1.msra.mxu1 %v3150_v31  ;;  %v3697_v31 = vld [vmem:[#allocation10 + $0x90] sm:$0xff] }
 0x453   :  { %1100 = vmatprep.subr.mxu1 %v3153_v32  ;;  %v3700_v32 = vld [vmem:[#allocation10 + $0x88] sm:$0xff] }
 0x454   :  { %1101 = vmatpush1.msra.mxu1 %v3156_v33  ;;  %v3703_v33 = vld [vmem:[#allocation10 + $0x80] sm:$0xff] }
 0x455   :  { %1102 = vmatprep.subr.mxu1 %v3159_v34  ;;  %v3706_v34 = vld [vmem:[#allocation10 + $0x78] sm:$0xff] }
 0x456   :  { %1103 = vmatpush2.msra.mxu1 %v3162_v35  ;;  %v3709_v35 = vld [vmem:[#allocation10 + $0x70] sm:$0xff] }
 0x457   :  { %1104 = vmatprep.subr.mxu1 %v3165_v36  ;;  %v3712_v36 = vld [vmem:[#allocation10 + $0x68] sm:$0xff] }
 0x458   :  { %1105 = vmatpush2.msra.mxu1 %v3168_v37  ;;  %v3715_v37 = vld [vmem:[#allocation10 + $0x60] sm:$0xff] }
 0x459   :  { %1106 = vmatprep.subr.mxu1 %v3171_v38  ;;  %v3718_v38 = vld [vmem:[#allocation10 + $0x58] sm:$0xff] }
 0x45a   :  { %1107 = vmatpush2.msra.mxu1 %v3174_v39  ;;  %v3721_v39 = vld [vmem:[#allocation10 + $0x50] sm:$0xff] }
 0x45b   :  { %1108 = vmatprep.subr.mxu1 %v3177_v40  ;;  %v3724_v40 = vld [vmem:[#allocation10 + $0x48] sm:$0xff] }
 0x45c   :  { %1109 = vmatpush2.msra.mxu1 %v3180_v41  ;;  %v3727_v41 = vld [vmem:[#allocation10 + $0x40] sm:$0xff] }
 0x45d   :  { %1110 = vmatprep.subr.mxu1 %v3183_v42  ;;  %v3730_v42 = vld [vmem:[#allocation10 + $0x38] sm:$0xff] }
 0x45e   :  { %1111 = vmatpush2.msra.mxu1 %v3186_v43  ;;  %v3733_v43 = vld [vmem:[#allocation10 + $0x30] sm:$0xff] }
 0x45f   :  { %1112 = vmatprep.subr.mxu1 %v3189_v44  ;;  %v3736_v44 = vld [vmem:[#allocation10 + $0x28] sm:$0xff] }
 0x460   :  { %1113 = vmatpush2.msra.mxu1 %v3192_v45  ;;  %v3739_v45 = vld [vmem:[#allocation10 + $0x20] sm:$0xff] }
 0x461   :  { %1114 = vmatprep.subr.mxu1 %v3195_v46  ;;  %v3742_v46 = vld [vmem:[#allocation10 + $0x18] sm:$0xff] }
 0x462   :  { %1115 = vmatpush2.msra.mxu1 %v3198_v47  ;;  %v3745_v47 = vld [vmem:[#allocation10 + $0x10] sm:$0xff] }
 0x463   :  { %1116 = vmatprep.subr.mxu1 %v4940_v52  ;;  %v3751_v52 = vld [vmem:[#allocation10] sm:$0xff] }
 0x464   :  { %1117 = vmatpush2.msra.mxu1 %v4941_v58  ;;  %v3754_v58 = vld [vmem:[#allocation10 + $0x1f8] sm:$0xff] }
 0x465   :  { %1118 = vmatprep.subr.mxu1 %v4942_v60  ;;  %v3757_v60 = vld [vmem:[#allocation10 + $0x1f0] sm:$0xff] }
 0x466   :  { %1119 = vmatpush2.msra.mxu1 %v4943_v11  ;;  %v3760_v11 = vld [vmem:[#allocation10 + $0x1e8] sm:$0xff] }
 0x467   :  { %1120 = vmatprep.subr.mxu1 %v4944_v2  ;;  %v3763_v2 = vld [vmem:[#allocation10 + $0x1e0] sm:$0xff] }
 0x468   :  { %1121 = vmatpush2.msra.mxu1 %v4945_v29 }
 0x469   :  { %1122 = vmatprep.subr.mxu1 %v4962_v49 }
 0x46a   :  { %1123 = vmatpush2.msra.mxu1 %v4973_v62 }
 0x46b   :  { %1124 = vmatprep.subr.mxu1 %v4974_v63 }
 0x46c   :  { %1125 = vmatpush2.msra.mxu1 %v4975_v0 }
 0x46d   :  { %1126 = vmatprep.subr.mxu1 %v4976_v1 }
 0x46e   :  { %1127 = vmatpush2.msra.mxu1 %v4977_v4 }
 0x46f   :  { %1128 = vmatprep.subr.mxu1 %v4978_v5 }
 0x470   :  { %1129 = vmatpush2.msra.mxu1 %v4979_v6 }
 0x471   :  { %1130 = vmatprep.subr.mxu1 %v4980_v7 }
 0x472   :  { %1131 = vmatpush2.msra.mxu1 %v4955_v8 }
 0x473   :  { %1132 = vmatprep.subr.mxu1 %v4956_v50 }
 0x474   :  { %1133 = vmatpush2.msra.mxu1 %v4957_v54 }
 0x475   :  { %1240 = vmatprep.subr.mxu1 %v3578_v53  ;;  %v3748_v53 = vld [vmem:[#allocation10 + $0x8] sm:$0xff] }
 0x4f5   :  { %v966_v9 = vpop.f32.mrf.mxu1 }
 0x4f6   :  { %v971_v12 = vadd.f32 %v966_v9, %v4981_v10  ;;  %v3784_v9 = vld [vmem:[#allocation10 + $0x1a8] sm:$0xff]  ;;  %v3787_v10 = vld [vmem:[#allocation10 + $0x1a0] sm:$0xff] }
 0x4f7   :  { %v968_v13 = vpop.f32.mrf.mxu1 }
 0x4f8   :  { %v972_v15 = vadd.f32 %v968_v13, %v4982_v14  ;;  %v3793_v13 = vld [vmem:[#allocation10 + $0x190] sm:$0xff]  ;;  %v3796_v14 = vld [vmem:[#allocation10 + $0x188] sm:$0xff] }
 0x4fa   :  { %2596 = vtanh.f32 %v972_v15  ;;  %v3799_v15 = vld [vmem:[#allocation10 + $0x180] sm:$0xff] }
 0x4fb   :  { %2598 = vtanh.f32 %v971_v12  ;;  %v3790_v12 = vld [vmem:[#allocation10 + $0x198] sm:$0xff] }
 0x507   :  { %v3655_v16 = vpop.eup %2596 }
 0x508   :  { %4983 = vst [vmem:[#allocation25_spill] sm:$0xff] %v3655_v16  ;;  %v3657_v17 = vpop.eup %2598  ;;  %1049 = vmatprep.mubr.f32.mxu0 %v3655_v16  ;;  %v3805_v16 = vld [vmem:[#allocation10 + $0x170] sm:$0xff] }
 0x509   :  { %4984 = vst [vmem:[#allocation26_spill] sm:$0xff] %v3657_v17  ;;  %1050 = vmatmul.mubr.f32.vlgmr.msra.gmra.mxu0 %v3657_v17  ;;  %v3808_v17 = vld [vmem:[#allocation10 + $0x168] sm:$0xff] }
 0x50a   :  { %1156 = vmatpush1.msra.mxu0 %v3661_v18 }
 0x50b   :  { %1157 = vmatprep.subr.mxu0 %v3664_v19 }
 0x50c   :  { %1158 = vmatpush1.msra.mxu0 %v3667_v20 }
 0x50d   :  { %1159 = vmatprep.subr.mxu0 %v3670_v21 }
 0x50e   :  { %1160 = vmatpush1.msra.mxu0 %v3673_v22 }
 0x50f   :  { %1161 = vmatprep.subr.mxu0 %v3676_v23 }
 0x510   :  { %1162 = vmatpush1.msra.mxu0 %v3679_v24 }
 0x511   :  { %1163 = vmatprep.subr.mxu0 %v3682_v25 }
 0x512   :  { %1164 = vmatpush1.msra.mxu0 %v3685_v26 }
 0x513   :  { %1165 = vmatprep.subr.mxu0 %v3688_v27 }
 0x514   :  { %1166 = vmatpush1.msra.mxu0 %v3691_v28 }
 0x515   :  { %1167 = vmatprep.subr.mxu0 %v3694_v30 }
 0x516   :  { %1168 = vmatpush1.msra.mxu0 %v3697_v31 }
 0x517   :  { %1169 = vmatprep.subr.mxu0 %v3700_v32 }
 0x518   :  { %1170 = vmatpush1.msra.mxu0 %v3703_v33 }
 0x519   :  { %1171 = vmatprep.subr.mxu0 %v3706_v34 }
 0x51a   :  { %1172 = vmatpush1.msra.mxu0 %v3709_v35 }
 0x51b   :  { %1173 = vmatprep.subr.mxu0 %v3712_v36 }
 0x51c   :  { %1174 = vmatpush1.msra.mxu0 %v3715_v37 }
 0x51d   :  { %1175 = vmatprep.subr.mxu0 %v3718_v38 }
 0x51e   :  { %1176 = vmatpush1.msra.mxu0 %v3721_v39 }
 0x51f   :  { %1177 = vmatprep.subr.mxu0 %v3724_v40 }
 0x520   :  { %1178 = vmatpush1.msra.mxu0 %v3727_v41 }
 0x521   :  { %1179 = vmatprep.subr.mxu0 %v3730_v42 }
 0x522   :  { %1180 = vmatpush1.msra.mxu0 %v3733_v43 }
 0x523   :  { %1181 = vmatprep.subr.mxu0 %v3736_v44 }
 0x524   :  { %1182 = vmatpush1.msra.mxu0 %v3739_v45 }
 0x525   :  { %1183 = vmatprep.subr.mxu0 %v3742_v46 }
 0x526   :  { %1184 = vmatpush1.msra.mxu0 %v3745_v47 }
 0x527   :  { %1185 = vmatprep.subr.mxu0 %v3748_v53 }
 0x528   :  { %1186 = vmatpush1.msra.mxu0 %v3751_v52 }
 0x529   :  { %1187 = vmatprep.subr.mxu0 %v3754_v58 }
 0x52a   :  { %1188 = vmatpush2.msra.mxu0 %v3757_v60 }
 0x52b   :  { %1189 = vmatprep.subr.mxu0 %v3760_v11 }
 0x52c   :  { %1190 = vmatpush2.msra.mxu0 %v3763_v2 }
 0x52d   :  { %1191 = vmatprep.subr.mxu0 %v3766_v55 }
 0x52e   :  { %1192 = vmatpush2.msra.mxu0 %v3769_v61 }
 0x52f   :  { %1193 = vmatprep.subr.mxu0 %v3772_v51 }
 0x530   :  { %1194 = vmatpush2.msra.mxu0 %v3775_v3 }
 0x531   :  { %1195 = vmatprep.subr.mxu0 %v3778_v48 }
 0x532   :  { %1196 = vmatpush2.msra.mxu0 %v3781_v57 }
 0x533   :  { %1197 = vmatprep.subr.mxu0 %v3784_v9 }
 0x534   :  { %1198 = vmatpush2.msra.mxu0 %v3787_v10 }
 0x535   :  { %1199 = vmatprep.subr.mxu0 %v3790_v12 }
 0x536   :  { %1200 = vmatpush2.msra.mxu0 %v3793_v13 }
 0x537   :  { %1201 = vmatprep.subr.mxu0 %v3796_v14 }
 0x538   :  { %1202 = vmatpush2.msra.mxu0 %v3799_v15 }
 0x539   :  { %1203 = vmatprep.subr.mxu0 %v3802_v56 }
 0x53a   :  { %1204 = vmatpush2.msra.mxu0 %v3805_v16 }
 0x53b   :  { %1205 = vmatprep.subr.mxu0 %v3808_v17 }
 0x53c   :  { %1206 = vmatpush2.msra.mxu0 %v4945_v29 }
 0x53d   :  { %1207 = vmatprep.subr.mxu0 %v4962_v49  ;;  %v4985_v49 = vld [vmem:[#allocation48_spill] sm:$0xff] }
 0x53e   :  { %1208 = vmatpush2.msra.mxu0 %v4973_v62 }
 0x53f   :  { %1209 = vmatprep.subr.mxu0 %v4974_v63 }
 0x540   :  { %1210 = vmatpush2.msra.mxu0 %v4975_v0  ;;  %v4986_v0 = vld [vmem:[#allocation47_spill] sm:$0xff] }
 0x541   :  { %1211 = vmatprep.subr.mxu0 %v4976_v1 }
 0x542   :  { %1212 = vmatpush2.msra.mxu0 %v4977_v4 }
 0x543   :  { %1213 = vmatprep.subr.mxu0 %v4978_v5 }
 0x544   :  { %1214 = vmatpush2.msra.mxu0 %v4979_v6  ;;  %v2702_v6 = vld [vmem:[#allocation10 + $0x148] sm:$0xff] }
 0x545   :  { %1215 = vmatprep.subr.mxu0 %v4980_v7  ;;  %v2703_v7 = vld [vmem:[#allocation10 + $0x140] sm:$0xff] }
 0x546   :  { %1216 = vmatpush2.msra.mxu0 %v4955_v8  ;;  %v2701_v8 = vld [vmem:[#allocation10 + $0x150] sm:$0xff] }
 0x547   :  { %1217 = vmatprep.subr.mxu0 %v4956_v50  ;;  %v2699_v50 = vld [vmem:[#allocation10 + $0x160] sm:$0xff] }
 0x548   :  { %1218 = vmatpush2.msra.mxu0 %v4957_v54  ;;  %v2700_v54 = vld [vmem:[#allocation10 + $0x158] sm:$0xff] }
 0x5c9   :  { %v1051_v29 = vpop.f32.mrf.mxu0 }
 0x5ca   :  { %v1056_v62 = vadd.f32 %v1051_v29, %v4985_v49  ;;  %v1346_v29 = vld [vmem:[#allocation11 + $0xa0] sm:$0xff]  ;;  %v1345_v49 = vld [vmem:[#allocation11 + $0x98] sm:$0xff] }
 0x5cb   :  { %v1053_v63 = vpop.f32.mrf.mxu0 }
 0x5cc   :  { %v1057_v1 = vadd.f32 %v1053_v63, %v4986_v0  ;;  %v1343_v63 = vld [vmem:[#allocation11 + $0x88] sm:$0xff]  ;;  %v1342_v0 = vld [vmem:[#allocation11 + $0x80] sm:$0xff] }
 0x5ce   :  { %2600 = vtanh.f32 %v1057_v1  ;;  %v1341_v1 = vld [vmem:[#allocation11 + $0x78] sm:$0xff] }
 0x5cf   :  { %2602 = vtanh.f32 %v1056_v62  ;;  %v1344_v62 = vld [vmem:[#allocation11 + $0x90] sm:$0xff] }
 0x5db   :  { %v3826_v4 = vpop.eup %2600 }
 0x5dc   :  { %v3828_v5 = vpop.eup %2602  ;;  %1134 = vmatprep.mubr.f32.mxu1 %v3826_v4 }
 0x5dd   :  { %1135 = vmatmul.mubr.f32.vlgmr.msra.gmra.mxu1 %v3828_v5 }
 0x5de   :  { %1241 = vmatpush1.msra.mxu1 %v3661_v18  ;;  %v2704_v18 = vld [vmem:[#allocation10 + $0x138] sm:$0xff] }
 0x5df   :  { %1242 = vmatprep.subr.mxu1 %v3664_v19  ;;  %v2705_v19 = vld [vmem:[#allocation10 + $0x130] sm:$0xff] }
 0x5e0   :  { %1243 = vmatpush1.msra.mxu1 %v3667_v20  ;;  %v2706_v20 = vld [vmem:[#allocation10 + $0x128] sm:$0xff] }
 0x5e1   :  { %1244 = vmatprep.subr.mxu1 %v3670_v21  ;;  %v2710_v21 = vld [vmem:[#allocation10 + $0x108] sm:$0xff] }
 0x5e2   :  { %1245 = vmatpush1.msra.mxu1 %v3673_v22  ;;  %v2711_v22 = vld [vmem:[#allocation10 + $0x100] sm:$0xff] }
 0x5e3   :  { %1246 = vmatprep.subr.mxu1 %v3676_v23 }
 0x5e4   :  { %1247 = vmatpush1.msra.mxu1 %v3679_v24  ;;  %v4987_v24 = vld [vmem:[#allocation50_spill] sm:$0xff] }
 0x5e5   :  { %1248 = vmatprep.subr.mxu1 %v3682_v25 }
 0x5e6   :  { %1249 = vmatpush1.msra.mxu1 %v3685_v26 }
 0x5e7   :  { %1250 = vmatprep.subr.mxu1 %v3688_v27  ;;  %v4988_v27 = vld [vmem:[#allocation45_spill] sm:$0xff] }
 0x5e8   :  { %1251 = vmatpush1.msra.mxu1 %v3691_v28 }
 0x5e9   :  { %1252 = vmatprep.subr.mxu1 %v3694_v30 }
 0x5ea   :  { %1253 = vmatpush1.msra.mxu1 %v3697_v31 }
 0x5eb   :  { %1254 = vmatprep.subr.mxu1 %v3700_v32  ;;  %v4989_v32 = vmov 0.0  }
 0x5ec   :  { %1255 = vmatpush1.msra.mxu1 %v3703_v33  ;;  %v1357_v33 = vld [vmem:[#allocation11 + $0xf8] sm:$0xff] }
 0x5ed   :  { %1256 = vmatprep.subr.mxu1 %v3706_v34  ;;  %v1397_v34 = vld [vmem:[#allocation13 + $0xf8] sm:$0xff] }
 0x5ee   :  { %1257 = vmatpush1.msra.mxu1 %v3709_v35  ;;  %v1396_v35 = vld [vmem:[#allocation13 + $0xf0] sm:$0xff]  ;;  %1398 = vmatprep.subr.mxu0 %v1397_v34 }
 0x5ef   :  { %1258 = vmatprep.subr.mxu1 %v3712_v36  ;;  %v1395_v36 = vld [vmem:[#allocation13 + $0xe8] sm:$0xff]  ;;  %v1380_v34 = vld [vmem:[#allocation13 + $0x70] sm:$0xff] }
 0x5f0   :  { %1259 = vmatpush1.msra.mxu1 %v3715_v37  ;;  %v1394_v37 = vld [vmem:[#allocation13 + $0xe0] sm:$0xff] }
 0x5f1   :  { %1260 = vmatprep.subr.mxu1 %v3718_v38  ;;  %v1393_v38 = vld [vmem:[#allocation13 + $0xd8] sm:$0xff] }
 0x5f2   :  { %1261 = vmatpush1.msra.mxu1 %v3721_v39  ;;  %v1392_v39 = vld [vmem:[#allocation13 + $0xd0] sm:$0xff] }
 0x5f3   :  { %1262 = vmatprep.subr.mxu1 %v3724_v40  ;;  %v1391_v40 = vld [vmem:[#allocation13 + $0xc8] sm:$0xff] }
 0x5f4   :  { %1263 = vmatpush1.msra.mxu1 %v3727_v41  ;;  %v1390_v41 = vld [vmem:[#allocation13 + $0xc0] sm:$0xff] }
 0x5f5   :  { %1264 = vmatprep.subr.mxu1 %v3730_v42  ;;  %v1389_v42 = vld [vmem:[#allocation13 + $0xb8] sm:$0xff] }
 0x5f6   :  { %1265 = vmatpush1.msra.mxu1 %v3733_v43  ;;  %v1388_v43 = vld [vmem:[#allocation13 + $0xb0] sm:$0xff] }
 0x5f7   :  { %1266 = vmatprep.subr.mxu1 %v3736_v44  ;;  %v1387_v44 = vld [vmem:[#allocation13 + $0xa8] sm:$0xff] }
 0x5f8   :  { %1267 = vmatpush1.msra.mxu1 %v3739_v45  ;;  %v1386_v45 = vld [vmem:[#allocation13 + $0xa0] sm:$0xff] }
 0x5f9   :  { %1268 = vmatprep.subr.mxu1 %v3742_v46  ;;  %v1385_v46 = vld [vmem:[#allocation13 + $0x98] sm:$0xff] }
 0x5fa   :  { %1269 = vmatpush1.msra.mxu1 %v3745_v47  ;;  %v1384_v47 = vld [vmem:[#allocation13 + $0x90] sm:$0xff] }
 0x5fb   :  { %1270 = vmatprep.subr.mxu1 %v3748_v53 }
 0x5fc   :  { %1271 = vmatpush1.msra.mxu1 %v3751_v52  ;;  %v4990_v52 = vld [vmem:[#allocation52_spill] sm:$0xff] }
 0x5fd   :  { %1272 = vmatprep.subr.mxu1 %v3754_v58 }
 0x5fe   :  { %1273 = vmatpush2.msra.mxu1 %v3757_v60 }
 0x5ff   :  { %1274 = vmatprep.subr.mxu1 %v3760_v11  ;;  %v4991_v11 = vld [vmem:[#allocation43_spill] sm:$0xff] }
 0x600   :  { %1275 = vmatpush2.msra.mxu1 %v3763_v2 }
 0x601   :  { %1276 = vmatprep.subr.mxu1 %v3766_v55 }
 0x602   :  { %1277 = vmatpush2.msra.mxu1 %v3769_v61  ;;  %v1356_v61 = vld [vmem:[#allocation11 + $0xf0] sm:$0xff] }
 0x603   :  { %1278 = vmatprep.subr.mxu1 %v3772_v51 }
 0x604   :  { %1279 = vmatpush2.msra.mxu1 %v3775_v3  ;;  %v1355_v3 = vld [vmem:[#allocation11 + $0xe8] sm:$0xff] }
 0x605   :  { %1280 = vmatprep.subr.mxu1 %v3778_v48  ;;  %v1354_v48 = vld [vmem:[#allocation11 + $0xe0] sm:$0xff] }
 0x606   :  { %1281 = vmatpush2.msra.mxu1 %v3781_v57  ;;  %v1353_v57 = vld [vmem:[#allocation11 + $0xd8] sm:$0xff] }
 0x607   :  { %1282 = vmatprep.subr.mxu1 %v3784_v9  ;;  %v1352_v9 = vld [vmem:[#allocation11 + $0xd0] sm:$0xff] }
 0x608   :  { %1283 = vmatpush2.msra.mxu1 %v3787_v10  ;;  %v1351_v10 = vld [vmem:[#allocation11 + $0xc8] sm:$0xff] }
 0x609   :  { %1284 = vmatprep.subr.mxu1 %v3790_v12  ;;  %v1350_v12 = vld [vmem:[#allocation11 + $0xc0] sm:$0xff] }
 0x60a   :  { %1285 = vmatpush2.msra.mxu1 %v3793_v13  ;;  %v1349_v13 = vld [vmem:[#allocation11 + $0xb8] sm:$0xff] }
 0x60b   :  { %1286 = vmatprep.subr.mxu1 %v3796_v14  ;;  %v1348_v14 = vld [vmem:[#allocation11 + $0xb0] sm:$0xff] }
 0x60c   :  { %1287 = vmatpush2.msra.mxu1 %v3799_v15  ;;  %v1347_v15 = vld [vmem:[#allocation11 + $0xa8] sm:$0xff] }
 0x60d   :  { %1288 = vmatprep.subr.mxu1 %v3802_v56  ;;  %v2707_v56 = vld [vmem:[#allocation10 + $0x120] sm:$0xff] }
 0x60e   :  { %1289 = vmatpush2.msra.mxu1 %v3805_v16  ;;  %v2708_v16 = vld [vmem:[#allocation10 + $0x118] sm:$0xff] }
 0x60f   :  { %1290 = vmatprep.subr.mxu1 %v3808_v17  ;;  %v2709_v17 = vld [vmem:[#allocation10 + $0x110] sm:$0xff] }
 0x610   :  { %1291 = vmatpush2.msra.mxu1 %v2699_v50  ;;  %v1340_v50 = vld [vmem:[#allocation11 + $0x70] sm:$0xff] }
 0x611   :  { %1292 = vmatprep.subr.mxu1 %v2700_v54  ;;  %v1339_v54 = vld [vmem:[#allocation11 + $0x68] sm:$0xff] }
 0x612   :  { %1293 = vmatpush2.msra.mxu1 %v2701_v8  ;;  %v1338_v8 = vld [vmem:[#allocation11 + $0x60] sm:$0xff] }
 0x613   :  { %1294 = vmatprep.subr.mxu1 %v2702_v6  ;;  %v1337_v6 = vld [vmem:[#allocation11 + $0x58] sm:$0xff] }
 0x614   :  { %1295 = vmatpush2.msra.mxu1 %v2703_v7  ;;  %v1336_v7 = vld [vmem:[#allocation11 + $0x50] sm:$0xff] }
 0x615   :  { %1296 = vmatprep.subr.mxu1 %v2704_v18  ;;  %v1335_v18 = vld [vmem:[#allocation11 + $0x48] sm:$0xff] }
 0x616   :  { %1297 = vmatpush2.msra.mxu1 %v2705_v19  ;;  %v1334_v19 = vld [vmem:[#allocation11 + $0x40] sm:$0xff] }
 0x617   :  { %1298 = vmatprep.subr.mxu1 %v2706_v20  ;;  %v1333_v20 = vld [vmem:[#allocation11 + $0x38] sm:$0xff] }
 0x618   :  { %1299 = vmatpush2.msra.mxu1 %v2707_v56  ;;  %v1332_v56 = vld [vmem:[#allocation11 + $0x30] sm:$0xff] }
 0x619   :  { %1300 = vmatprep.subr.mxu1 %v2708_v16  ;;  %v1331_v16 = vld [vmem:[#allocation11 + $0x28] sm:$0xff] }
 0x61a   :  { %1301 = vmatpush2.msra.mxu1 %v2709_v17  ;;  %v1330_v17 = vld [vmem:[#allocation11 + $0x20] sm:$0xff] }
 0x61b   :  { %1302 = vmatprep.subr.mxu1 %v2710_v21  ;;  %v1329_v21 = vld [vmem:[#allocation11 + $0x18] sm:$0xff] }
 0x61c   :  { %1303 = vmatpush2.msra.mxu1 %v2711_v22  ;;  %v1328_v22 = vld [vmem:[#allocation11 + $0x10] sm:$0xff] }
 0x61d   :  { %1511 = vmatprep.subr.mxu1 %v1357_v33  ;;  %v1381_v33 = vld [vmem:[#allocation13 + $0x78] sm:$0xff] }
 0x69d   :  { %v1136_v23 = vpop.f32.mrf.mxu1 }
 0x69e   :  { %v1141_v25 = vadd.f32 %v1136_v23, %v4987_v24  ;;  %v1327_v23 = vld [vmem:[#allocation11 + $0x8] sm:$0xff]  ;;  %v1326_v24 = vld [vmem:[#allocation11] sm:$0xff] }
 0x69f   :  { %v1138_v26 = vpop.f32.mrf.mxu1 }
 0x6a0   :  { %v1142_v28 = vadd.f32 %v1138_v26, %v4988_v27  ;;  %v4993_v26 = vld [vmem:[#allocation23_spill] sm:$0xff]  ;;  %v4994_v27 = vld [vmem:[#allocation26_spill] sm:$0xff] }
 0x6a2   :  { %2604 = vtanh.f32 %v1142_v28  ;;  %v1383_v28 = vld [vmem:[#allocation13 + $0x88] sm:$0xff] }
 0x6a3   :  { %2606 = vtanh.f32 %v1141_v25  ;;  %v4992_v25 = vld [vmem:[#allocation55_spill] sm:$0xff] }
 0x6af   :  { %v3884_v30 = vpop.eup %2604 }
 0x6b0   :  { %v3886_v31 = vpop.eup %2606  ;;  %1219 = vmatprep.mubr.f32.mxu0 %v3884_v30 }
 0x6b1   :  { %1220 = vmatmul.mubr.f32.vlgmr.msra.gmra.mxu0 %v3886_v31 }
 0x6b2   :  { %1462 = vmatprep.mubr.f32.mxu0 %v4989_v32  ;;  %1399 = vmatpush1.msra.mxu0 %v1396_v35  ;;  %v1379_v35 = vld [vmem:[#allocation13 + $0x68] sm:$0xff] }
 0x6b3   :  { %1400 = vmatprep.subr.mxu0 %v1395_v36  ;;  %v1377_v36 = vld [vmem:[#allocation13 + $0x58] sm:$0xff] }
 0x6b4   :  { %1401 = vmatpush1.msra.mxu0 %v1394_v37  ;;  %v1376_v37 = vld [vmem:[#allocation13 + $0x50] sm:$0xff] }
 0x6b5   :  { %1402 = vmatprep.subr.mxu0 %v1393_v38  ;;  %v1374_v38 = vld [vmem:[#allocation13 + $0x40] sm:$0xff] }
 0x6b6   :  { %1403 = vmatpush1.msra.mxu0 %v1392_v39  ;;  %v1373_v39 = vld [vmem:[#allocation13 + $0x38] sm:$0xff] }
 0x6b7   :  { %1404 = vmatprep.subr.mxu0 %v1391_v40  ;;  %v1372_v40 = vld [vmem:[#allocation13 + $0x30] sm:$0xff] }
 0x6b8   :  { %1405 = vmatpush1.msra.mxu0 %v1390_v41  ;;  %v1371_v41 = vld [vmem:[#allocation13 + $0x28] sm:$0xff] }
 0x6b9   :  { %1406 = vmatprep.subr.mxu0 %v1389_v42  ;;  %v1370_v42 = vld [vmem:[#allocation13 + $0x20] sm:$0xff] }
 0x6ba   :  { %1407 = vmatpush1.msra.mxu0 %v1388_v43  ;;  %v1369_v43 = vld [vmem:[#allocation13 + $0x18] sm:$0xff] }
 0x6bb   :  { %1408 = vmatprep.subr.mxu0 %v1387_v44  ;;  %v1368_v44 = vld [vmem:[#allocation13 + $0x10] sm:$0xff] }
 0x6bc   :  { %1409 = vmatpush1.msra.mxu0 %v1386_v45  ;;  %v1367_v45 = vld [vmem:[#allocation13 + $0x8] sm:$0xff] }
 0x6bd   :  { %1410 = vmatprep.subr.mxu0 %v1385_v46  ;;  %v1366_v46 = vld [vmem:[#allocation13] sm:$0xff] }
 0x6be   :  { %1411 = vmatpush1.msra.mxu0 %v1384_v47  ;;  %v3914_v47 = vld [vmem:[#allocation14 + $0xf8] sm:$0xff] }
 0x6bf   :  { %1412 = vmatprep.subr.mxu0 %v1383_v28  ;;  %4995 = vst [vmem:[#allocation27_spill] sm:$0xff] %v3914_v47  ;;  %v4040_v28 = vld [vmem:[#allocation14 + $0x1a8] sm:$0xff] }
 0x6c0   :  { %5002 = vst [vmem:[#allocation44_spill] sm:$0xff] %v4040_v28 }
 0x771   :  { %v1221_v53 = vpop.f32.mrf.mxu0 }
 0x772   :  { %v1226_v58 = vadd.f32 %v1221_v53, %v4990_v52  ;;  %v3918_v53 = vld [vmem:[#allocation14 + $0xf0] sm:$0xff]  ;;  %v3920_v52 = vld [vmem:[#allocation14 + $0xe8] sm:$0xff] }
 0x773   :  { %v1223_v60 = vpop.f32.mrf.mxu0 }
 0x774   :  { %v1227_v2 = vadd.f32 %v1223_v60, %v4991_v11  ;;  %v3926_v60 = vld [vmem:[#allocation14 + $0xd8] sm:$0xff]  ;;  %v3929_v11 = vld [vmem:[#allocation14 + $0xd0] sm:$0xff] }
 0x776   :  { %2608 = vtanh.f32 %v1227_v2  ;;  %v3932_v2 = vld [vmem:[#allocation14 + $0xc8] sm:$0xff] }
 0x777   :  { %2610 = vtanh.f32 %v1226_v58  ;;  %v3923_v58 = vld [vmem:[#allocation14 + $0xe0] sm:$0xff] }
 0x783   :  { %v3893_v55 = vpop.eup %2608 }
 0x784   :  { %v3895_v51 = vpop.eup %2610  ;;  %1304 = vmatprep.mubr.f32.mxu1 %v3893_v55 }
 0x785   :  { %1305 = vmatmul.mubr.f32.vlgmr.msra.gmra.mxu1 %v3895_v51 }
 0x786   :  { %1512 = vmatpush1.msra.mxu1 %v1356_v61  ;;  %1575 = vmatprep.mubr.f32.mxu1 %v4989_v32  ;;  %v3935_v61 = vld [vmem:[#allocation14 + $0xc0] sm:$0xff] }
 0x787   :  { %1513 = vmatprep.subr.mxu1 %v1355_v3  ;;  %v3941_v3 = vld [vmem:[#allocation14 + $0xb0] sm:$0xff] }
 0x788   :  { %1514 = vmatpush1.msra.mxu1 %v1354_v48  ;;  %v3944_v48 = vld [vmem:[#allocation14 + $0xa8] sm:$0xff] }
 0x789   :  { %1515 = vmatprep.subr.mxu1 %v1353_v57  ;;  %v3947_v57 = vld [vmem:[#allocation14 + $0xa0] sm:$0xff] }
 0x78a   :  { %1516 = vmatpush1.msra.mxu1 %v1352_v9  ;;  %v3950_v9 = vld [vmem:[#allocation14 + $0x98] sm:$0xff] }
 0x78b   :  { %1517 = vmatprep.subr.mxu1 %v1351_v10  ;;  %v3953_v10 = vld [vmem:[#allocation14 + $0x90] sm:$0xff] }
 0x78c   :  { %1518 = vmatpush1.msra.mxu1 %v1350_v12  ;;  %v3956_v12 = vld [vmem:[#allocation14 + $0x88] sm:$0xff] }
 0x78d   :  { %1519 = vmatprep.subr.mxu1 %v1349_v13  ;;  %v3959_v13 = vld [vmem:[#allocation14 + $0x80] sm:$0xff] }
 0x78e   :  { %1520 = vmatpush1.msra.mxu1 %v1348_v14  ;;  %v3962_v14 = vld [vmem:[#allocation14 + $0x78] sm:$0xff] }
 0x78f   :  { %1521 = vmatprep.subr.mxu1 %v1347_v15  ;;  %v3965_v15 = vld [vmem:[#allocation14 + $0x70] sm:$0xff] }
 0x790   :  { %1522 = vmatpush1.msra.mxu1 %v1346_v29  ;;  %v3968_v29 = vld [vmem:[#allocation14 + $0x68] sm:$0xff] }
 0x791   :  { %1523 = vmatprep.subr.mxu1 %v1345_v49  ;;  %v3971_v49 = vld [vmem:[#allocation14 + $0x60] sm:$0xff] }
 0x792   :  { %1524 = vmatpush1.msra.mxu1 %v1344_v62  ;;  %v3974_v62 = vld [vmem:[#allocation14 + $0x58] sm:$0xff] }
 0x793   :  { %1525 = vmatprep.subr.mxu1 %v1343_v63  ;;  %v3977_v63 = vld [vmem:[#allocation14 + $0x50] sm:$0xff] }
 0x794   :  { %1526 = vmatpush1.msra.mxu1 %v1342_v0  ;;  %v3980_v0 = vld [vmem:[#allocation14 + $0x48] sm:$0xff] }
 0x795   :  { %1527 = vmatprep.subr.mxu1 %v1341_v1  ;;  %v3983_v1 = vld [vmem:[#allocation14 + $0x40] sm:$0xff] }
 0x796   :  { %1528 = vmatpush1.msra.mxu1 %v1340_v50  ;;  %v3986_v50 = vld [vmem:[#allocation14 + $0x38] sm:$0xff] }
 0x797   :  { %1529 = vmatprep.subr.mxu1 %v1339_v54  ;;  %v3989_v54 = vld [vmem:[#allocation14 + $0x30] sm:$0xff] }
 0x798   :  { %1530 = vmatpush1.msra.mxu1 %v1338_v8  ;;  %v3992_v8 = vld [vmem:[#allocation14 + $0x28] sm:$0xff] }
 0x799   :  { %1531 = vmatprep.subr.mxu1 %v1337_v6  ;;  %v3995_v6 = vld [vmem:[#allocation14 + $0x20] sm:$0xff] }
 0x79a   :  { %1532 = vmatpush1.msra.mxu1 %v1336_v7  ;;  %v3998_v7 = vld [vmem:[#allocation14 + $0x18] sm:$0xff] }
 0x79b   :  { %1533 = vmatprep.subr.mxu1 %v1335_v18  ;;  %v4001_v18 = vld [vmem:[#allocation14 + $0x10] sm:$0xff] }
 0x79c   :  { %1534 = vmatpush1.msra.mxu1 %v1334_v19  ;;  %v4004_v19 = vld [vmem:[#allocation14 + $0x8] sm:$0xff] }
 0x79d   :  { %1535 = vmatprep.subr.mxu1 %v1333_v20  ;;  %v4007_v20 = vld [vmem:[#allocation14] sm:$0xff] }
 0x79e   :  { %1536 = vmatpush1.msra.mxu1 %v1332_v56  ;;  %v4010_v56 = vld [vmem:[#allocation14 + $0x1f8] sm:$0xff] }
 0x79f   :  { %1537 = vmatprep.subr.mxu1 %v1331_v16  ;;  %v4013_v16 = vld [vmem:[#allocation14 + $0x1f0] sm:$0xff] }
 0x7a0   :  { %1538 = vmatpush1.msra.mxu1 %v1330_v17  ;;  %v4016_v17 = vld [vmem:[#allocation14 + $0x1e8] sm:$0xff] }
 0x7a1   :  { %1539 = vmatprep.subr.mxu1 %v1329_v21  ;;  %v4019_v21 = vld [vmem:[#allocation14 + $0x1e0] sm:$0xff] }
 0x7a2   :  { %1540 = vmatpush1.msra.mxu1 %v1328_v22  ;;  %v4022_v22 = vld [vmem:[#allocation14 + $0x1d8] sm:$0xff] }
 0x7a3   :  { %1541 = vmatprep.subr.mxu1 %v1327_v23  ;;  %4996 = vst [vmem:[#allocation37_spill] sm:$0xff] %v4022_v22  ;;  %v4025_v23 = vld [vmem:[#allocation14 + $0x1d0] sm:$0xff] }
 0x7a4   :  { %1542 = vmatpush1.msra.mxu1 %v1326_v24  ;;  %4997 = vst [vmem:[#allocation38_spill] sm:$0xff] %v4025_v23  ;;  %v4028_v24 = vld [vmem:[#allocation14 + $0x1c8] sm:$0xff] }
 0x7a5   :  { %1576 = vmatmul.mubr.f32.vlgmr.msra.gmra.mxu1 %v4992_v25  ;;  %1763 = vmatprep.subr.mxu1 %v3914_v47  ;;  %4998 = vst [vmem:[#allocation39_spill] sm:$0xff] %v4028_v24  ;;  %v4031_v25 = vld [vmem:[#allocation14 + $0x1c0] sm:$0xff] }
 0x7a6   :  { %1581 = vmatprep.mubr.f32.mxu1 %v4989_v32  ;;  %1764 = vmatpush1.msra.mxu1 %v3918_v53  ;;  %4999 = vst [vmem:[#allocation21_spill] sm:$0xff] %v4031_v25 }
 0x7a7   :  { %1765 = vmatprep.subr.mxu1 %v3920_v52 }
 0x7a8   :  { %1766 = vmatpush1.msra.mxu1 %v3923_v58 }
 0x7a9   :  { %1582 = vmatmul.mubr.f32.gmra.mxu1 %v4993_v26  ;;  %1767 = vmatprep.subr.mxu1 %v3926_v60  ;;  %v4034_v26 = vld [vmem:[#allocation14 + $0x1b8] sm:$0xff] }
 0x7aa   :  { %1587 = vmatprep.mubr.f32.mxu1 %v4989_v32  ;;  %1768 = vmatpush1.msra.mxu1 %v3929_v11  ;;  %5000 = vst [vmem:[#allocation42_spill] sm:$0xff] %v4034_v26 }
 0x7ab   :  { %1769 = vmatprep.subr.mxu1 %v3932_v2 }
 0x7ac   :  { %1770 = vmatpush1.msra.mxu1 %v3935_v61 }
 0x7ad   :  { %1588 = vmatmul.mubr.f32.gmra.mxu1 %v3585_v59  ;;  %v1382_v59 = vld [vmem:[#allocation13 + $0x80] sm:$0xff] }
 0x7ae   :  { %1593 = vmatprep.mubr.f32.mxu1 %v4989_v32  ;;  %1413 = vmatpush1.msra.mxu0 %v1382_v59  ;;  %v4043_v59 = vld [vmem:[#allocation14 + $0x1a0] sm:$0xff] }
 0x7af   :  { %1414 = vmatprep.subr.mxu0 %v1381_v33  ;;  %5003 = vst [vmem:[#allocation51_spill] sm:$0xff] %v4043_v59  ;;  %v4046_v33 = vld [vmem:[#allocation14 + $0x198] sm:$0xff] }
 0x7b0   :  { %1415 = vmatpush1.msra.mxu0 %v1380_v34  ;;  %5004 = vst [vmem:[#allocation29_spill] sm:$0xff] %v4046_v33  ;;  %v4049_v34 = vld [vmem:[#allocation14 + $0x190] sm:$0xff] }
 0x7b1   :  { %1594 = vmatmul.mubr.f32.gmra.mxu1 %v4994_v27  ;;  %1416 = vmatprep.subr.mxu0 %v1379_v35  ;;  %v4037_v27 = vld [vmem:[#allocation14 + $0x1b0] sm:$0xff]  ;;  %5005 = vst [vmem:[#allocation30_spill] sm:$0xff] %v4049_v34  ;;  %v4052_v35 = vld [vmem:[#allocation14 + $0x188] sm:$0xff] }
 0x7b2   :  { %1599 = vmatprep.mubr.f32.mxu1 %v4989_v32  ;;  %5001 = vst [vmem:[#allocation28_spill] sm:$0xff] %v4037_v27  ;;  %5006 = vst [vmem:[#allocation31_spill] sm:$0xff] %v4052_v35 }
 0x7b5   :  { %1600 = vmatmul.mubr.f32.gmra.mxu1 %v3828_v5  ;;  %v1378_v5 = vld [vmem:[#allocation13 + $0x60] sm:$0xff] }
 0x7b6   :  { %1605 = vmatprep.mubr.f32.mxu1 %v4989_v32  ;;  %1417 = vmatpush1.msra.mxu0 %v1378_v5  ;;  %v4055_v5 = vld [vmem:[#allocation14 + $0x180] sm:$0xff] }
 0x7b7   :  { %1418 = vmatprep.subr.mxu0 %v1377_v36  ;;  %5007 = vst [vmem:[#allocation32_spill] sm:$0xff] %v4055_v5  ;;  %v4058_v36 = vld [vmem:[#allocation14 + $0x178] sm:$0xff] }
 0x7b8   :  { %1419 = vmatpush1.msra.mxu0 %v1376_v37  ;;  %5008 = vst [vmem:[#allocation33_spill] sm:$0xff] %v4058_v36  ;;  %v4061_v37 = vld [vmem:[#allocation14 + $0x170] sm:$0xff] }
 0x7b9   :  { %1606 = vmatmul.mubr.f32.gmra.mxu1 %v3886_v31  ;;  %v1375_v31 = vld [vmem:[#allocation13 + $0x48] sm:$0xff]  ;;  %5009 = vst [vmem:[#allocation34_spill] sm:$0xff] %v4061_v37 }
 0x7ba   :  { %1611 = vmatprep.mubr.f32.mxu1 %v4989_v32  ;;  %1420 = vmatprep.subr.mxu0 %v1375_v31  ;;  %v4064_v31 = vld [vmem:[#allocation14 + $0x168] sm:$0xff] }
 0x7bb   :  { %1421 = vmatpush1.msra.mxu0 %v1374_v38  ;;  %5010 = vst [vmem:[#allocation35_spill] sm:$0xff] %v4064_v31  ;;  %v4067_v38 = vld [vmem:[#allocation14 + $0x160] sm:$0xff] }
 0x7bc   :  { %1422 = vmatprep.subr.mxu0 %v1373_v39  ;;  %5011 = vst [vmem:[#allocation36_spill] sm:$0xff] %v4067_v38  ;;  %v4070_v39 = vld [vmem:[#allocation14 + $0x158] sm:$0xff] }
 0x7bd   :  { %1612 = vmatmul.mubr.f32.gmra.mxu1 %v3895_v51  ;;  %1423 = vmatpush1.msra.mxu0 %v1372_v40  ;;  %v3938_v51 = vld [vmem:[#allocation14 + $0xb8] sm:$0xff]  ;;  %5012 = vst [vmem:[#allocation46_spill] sm:$0xff] %v4070_v39  ;;  %v4073_v40 = vld [vmem:[#allocation14 + $0x150] sm:$0xff] }
 0x7be   :  { %1617 = vmatprep.mubr.f32.mxu1 %v4989_v32  ;;  %1424 = vmatprep.subr.mxu0 %v1371_v41  ;;  %5013 = vst [vmem:[#allocation49_spill] sm:$0xff] %v4073_v40  ;;  %v4076_v41 = vld [vmem:[#allocation14 + $0x148] sm:$0xff] }
 0x7bf   :  { %1425 = vmatpush1.msra.mxu0 %v1370_v42  ;;  %1771 = vmatprep.subr.mxu1 %v3938_v51  ;;  %5014 = vst [vmem:[#allocation48_spill] sm:$0xff] %v4076_v41  ;;  %v4079_v42 = vld [vmem:[#allocation14 + $0x140] sm:$0xff] }
 0x7c0   :  { %1426 = vmatprep.subr.mxu0 %v1369_v43  ;;  %1772 = vmatpush1.msra.mxu1 %v3941_v3  ;;  %5015 = vst [vmem:[#allocation47_spill] sm:$0xff] %v4079_v42  ;;  %v4082_v43 = vld [vmem:[#allocation14 + $0x138] sm:$0xff] }
 0x7c1   :  { %1427 = vmatpush1.msra.mxu0 %v1368_v44  ;;  %1773 = vmatprep.subr.mxu1 %v3944_v48  ;;  %5016 = vst [vmem:[#allocation50_spill] sm:$0xff] %v4082_v43  ;;  %v4085_v44 = vld [vmem:[#allocation14 + $0x130] sm:$0xff] }
 0x7c2   :  { %1428 = vmatprep.subr.mxu0 %v1367_v45  ;;  %1774 = vmatpush1.msra.mxu1 %v3947_v57  ;;  %5017 = vst [vmem:[#allocation45_spill] sm:$0xff] %v4085_v44  ;;  %v4088_v45 = vld [vmem:[#allocation14 + $0x128] sm:$0xff] }
 0x7c3   :  { %1429 = vmatpush1.msra.mxu0 %v1366_v46  ;;  %1775 = vmatprep.subr.mxu1 %v3950_v9  ;;  %5018 = vst [vmem:[#allocation52_spill] sm:$0xff] %v4088_v45  ;;  %v4091_v46 = vld [vmem:[#allocation14 + $0x120] sm:$0xff] }
 0x7c4   :  { %1678 = vmatprep.subr.mxu0 %v3914_v47  ;;  %1776 = vmatpush1.msra.mxu1 %v3953_v10  ;;  %5019 = vst [vmem:[#allocation43_spill] sm:$0xff] %v4091_v46 }
 0x7c5   :  { %1777 = vmatprep.subr.mxu1 %v3956_v12 }
 0x7c6   :  { %1778 = vmatpush1.msra.mxu1 %v3959_v13 }
 0x7c7   :  { %1779 = vmatprep.subr.mxu1 %v3962_v14 }
 0x7c8   :  { %1780 = vmatpush1.msra.mxu1 %v3965_v15 }
 0x7c9   :  { %1781 = vmatprep.subr.mxu1 %v3968_v29 }
 0x7ca   :  { %1782 = vmatpush1.msra.mxu1 %v3971_v49 }
 0x7cb   :  { %1783 = vmatprep.subr.mxu1 %v3974_v62 }
 0x7cc   :  { %1784 = vmatpush1.msra.mxu1 %v3977_v63 }
 0x7cd   :  { %1785 = vmatprep.subr.mxu1 %v3980_v0 }
 0x7ce   :  { %1786 = vmatpush1.msra.mxu1 %v3983_v1 }
 0x7cf   :  { %1787 = vmatprep.subr.mxu1 %v3986_v50 }
 0x7d0   :  { %1788 = vmatpush1.msra.mxu1 %v3989_v54 }
 0x7d1   :  { %1789 = vmatprep.subr.mxu1 %v3992_v8 }
 0x7d2   :  { %1790 = vmatpush1.msra.mxu1 %v3995_v6 }
 0x7d3   :  { %1791 = vmatprep.subr.mxu1 %v3998_v7 }
 0x7d4   :  { %1792 = vmatpush1.msra.mxu1 %v4001_v18 }
 0x7d5   :  { %1793 = vmatprep.subr.mxu1 %v4004_v19 }
 0x7d6   :  { %1794 = vmatpush1.msra.mxu1 %v4007_v20 }
 0x7d7   :  { %1795 = vmatprep.subr.mxu1 %v4010_v56 }
 0x7d8   :  { %1796 = vmatpush2.msra.mxu1 %v4013_v16 }
 0x7d9   :  { %1797 = vmatprep.subr.mxu1 %v4016_v17 }
 0x7da   :  { %1798 = vmatpush2.msra.mxu1 %v4019_v21 }
 0x7db   :  { %1799 = vmatprep.subr.mxu1 %v4022_v22 }
 0x7dc   :  { %1800 = vmatpush2.msra.mxu1 %v4025_v23 }
 0x7dd   :  { %1801 = vmatprep.subr.mxu1 %v4028_v24 }
 0x7de   :  { %1802 = vmatpush2.msra.mxu1 %v4031_v25 }
 0x7df   :  { %1803 = vmatprep.subr.mxu1 %v4034_v26 }
 0x7e0   :  { %1804 = vmatpush2.msra.mxu1 %v4037_v27 }
 0x7e1   :  { %1805 = vmatprep.subr.mxu1 %v4040_v28 }
 0x7e2   :  { %1806 = vmatpush2.msra.mxu1 %v4043_v59 }
 0x7e3   :  { %1807 = vmatprep.subr.mxu1 %v4046_v33 }
 0x7e4   :  { %1808 = vmatpush2.msra.mxu1 %v4049_v34 }
 0x7e5   :  { %1809 = vmatprep.subr.mxu1 %v4052_v35 }
 0x7e6   :  { %1810 = vmatpush2.msra.mxu1 %v4055_v5 }
 0x7e7   :  { %1811 = vmatprep.subr.mxu1 %v4058_v36 }
 0x7e8   :  { %1812 = vmatpush2.msra.mxu1 %v4061_v37 }
 0x7e9   :  { %1813 = vmatprep.subr.mxu1 %v4064_v31 }
 0x7ea   :  { %1814 = vmatpush2.msra.mxu1 %v4067_v38  ;;  %v5025_v38 = vld [vmem:[#allocation41_spill] sm:$0xff] }
 0x7eb   :  { %1815 = vmatprep.subr.mxu1 %v4070_v39 }
 0x7ec   :  { %1816 = vmatpush2.msra.mxu1 %v4073_v40  ;;  %v4094_v40 = vld [vmem:[#allocation14 + $0x118] sm:$0xff] }
 0x7ed   :  { %1817 = vmatprep.subr.mxu1 %v4076_v41  ;;  %5020 = vst [vmem:[#allocation55_spill] sm:$0xff] %v4094_v40  ;;  %v4097_v41 = vld [vmem:[#allocation14 + $0x110] sm:$0xff] }
 0x7ee   :  { %1818 = vmatpush2.msra.mxu1 %v4079_v42  ;;  %5021 = vst [vmem:[#allocation23_spill] sm:$0xff] %v4097_v41  ;;  %v4100_v42 = vld [vmem:[#allocation14 + $0x108] sm:$0xff] }
 0x7ef   :  { %1819 = vmatprep.subr.mxu1 %v4082_v43  ;;  %5022 = vst [vmem:[#allocation26_spill] sm:$0xff] %v4100_v42  ;;  %v4103_v43 = vld [vmem:[#allocation14 + $0x100] sm:$0xff] }
 0x7f0   :  { %1820 = vmatpush2.msra.mxu1 %v4085_v44  ;;  %5023 = vst [vmem:[#allocation56_spill] sm:$0xff] %v4103_v43  ;;  %v5024_v44 = vld [vmem:[#allocation53_spill] sm:$0xff] }
 0x7f1   :  { %1821 = vmatprep.subr.mxu1 %v4088_v45 }
 0x7f2   :  { %1822 = vmatpush2.msra.mxu1 %v4091_v46 }
 0x7f3   :  { %1823 = vmatprep.subr.mxu1 %v4094_v40 }
 0x7f4   :  { %1824 = vmatpush2.msra.mxu1 %v4097_v41 }
 0x7f5   :  { %1825 = vmatprep.subr.mxu1 %v4100_v42 }
 0x7f6   :  { %1826 = vmatpush2.msra.mxu1 %v4103_v43 }
 0x7f7   :  { %1933 = vmatprep.subr.mxu1 %v3914_v47 }
 0x845   :  { %v1306_v45 = vpop.f32.mrf.mxu1 }
 0x846   :  { %v1311_v39 = vadd.f32 %v1306_v45, %v5024_v44  ;;  %v5034_v44 = vld [vmem:[#allocation49_spill] sm:$0xff]  ;;  %v5035_v45 = vld [vmem:[#allocation48_spill] sm:$0xff] }
 0x847   :  { %v1308_v46 = vpop.f32.mrf.mxu1 }
 0x848   :  { %2612 = vtanh.f32 %v1311_v39  ;;  %v1312_v31 = vadd.f32 %v1308_v46, %v5025_v38  ;;  %v5031_v38 = vld [vmem:[#allocation35_spill] sm:$0xff]  ;;  %v5032_v39 = vld [vmem:[#allocation36_spill] sm:$0xff] }
 0x849   :  { %v5036_v46 = vld [vmem:[#allocation47_spill] sm:$0xff] }
 0x84a   :  { %2614 = vtanh.f32 %v1312_v31  ;;  %v5030_v31 = vld [vmem:[#allocation34_spill] sm:$0xff] }
 0x855   :  { %v2613_v40 = vpop.eup %2612 }
 0x856   :  { %1618 = vmatmul.mubr.f32.gmra.mxu1 %v2613_v40  ;;  %v5033_v40 = vld [vmem:[#allocation46_spill] sm:$0xff] }
 0x857   :  { %v2615_v37 = vpop.eup %2614 }
 0x858   :  { %1463 = vmatmul.mubr.f32.vlgmr.msra.gmra.mxu0 %v2615_v37  ;;  %v5029_v37 = vld [vmem:[#allocation54_spill] sm:$0xff] }
 0x859   :  { %1679 = vmatpush1.msra.mxu0 %v3918_v53  ;;  %1468 = vmatprep.mubr.f32.mxu0 %v4989_v32 }
 0x85a   :  { %1680 = vmatprep.subr.mxu0 %v3920_v52 }
 0x85b   :  { %1681 = vmatpush1.msra.mxu0 %v3923_v58 }
 0x85c   :  { %1682 = vmatprep.subr.mxu0 %v3926_v60  ;;  %1469 = vmatmul.mubr.f32.gmra.mxu0 %v3893_v55  ;;  %v5028_v55 = vld [vmem:[#allocation22_spill] sm:$0xff] }
 0x85d   :  { %1683 = vmatpush1.msra.mxu0 %v3929_v11  ;;  %1474 = vmatprep.mubr.f32.mxu0 %v4989_v32 }
 0x85e   :  { %1684 = vmatprep.subr.mxu0 %v3932_v2 }
 0x85f   :  { %1685 = vmatpush1.msra.mxu0 %v3935_v61 }
 0x860   :  { %1686 = vmatprep.subr.mxu0 %v3938_v51  ;;  %1475 = vmatmul.mubr.f32.gmra.mxu0 %v3884_v30  ;;  %v5026_v30 = vld [vmem:[#allocation25_spill] sm:$0xff] }
 0x861   :  { %1687 = vmatpush1.msra.mxu0 %v3941_v3  ;;  %1480 = vmatprep.mubr.f32.mxu0 %v4989_v32 }
 0x862   :  { %1688 = vmatprep.subr.mxu0 %v3944_v48 }
 0x863   :  { %1689 = vmatpush1.msra.mxu0 %v3947_v57 }
 0x864   :  { %1690 = vmatprep.subr.mxu0 %v3950_v9  ;;  %1481 = vmatmul.mubr.f32.gmra.mxu0 %v3826_v4  ;;  %v5027_v4 = vld [vmem:[#allocation24_spill] sm:$0xff] }
 0x865   :  { %1691 = vmatpush1.msra.mxu0 %v3953_v10  ;;  %1486 = vmatprep.mubr.f32.mxu0 %v4989_v32 }
 0x866   :  { %1692 = vmatprep.subr.mxu0 %v3956_v12 }
 0x867   :  { %1693 = vmatpush1.msra.mxu0 %v3959_v13 }
 0x868   :  { %1694 = vmatprep.subr.mxu0 %v3962_v14  ;;  %1487 = vmatmul.mubr.f32.gmra.mxu0 %v5026_v30  ;;  %v5037_v30 = vld [vmem:[#allocation50_spill] sm:$0xff] }
 0x869   :  { %1695 = vmatpush1.msra.mxu0 %v3965_v15  ;;  %1492 = vmatprep.mubr.f32.mxu0 %v4989_v32 }
 0x86a   :  { %1696 = vmatprep.subr.mxu0 %v3968_v29 }
 0x86b   :  { %1697 = vmatpush1.msra.mxu0 %v3971_v49 }
 0x86c   :  { %1698 = vmatprep.subr.mxu0 %v3974_v62  ;;  %1493 = vmatmul.mubr.f32.gmra.mxu0 %v5027_v4  ;;  %v5038_v4 = vld [vmem:[#allocation45_spill] sm:$0xff] }
 0x86d   :  { %1699 = vmatpush1.msra.mxu0 %v3977_v63  ;;  %1498 = vmatprep.mubr.f32.mxu0 %v4989_v32 }
 0x86e   :  { %1700 = vmatprep.subr.mxu0 %v3980_v0 }
 0x86f   :  { %1701 = vmatpush1.msra.mxu0 %v3983_v1 }
 0x870   :  { %1702 = vmatprep.subr.mxu0 %v3986_v50  ;;  %1499 = vmatmul.mubr.f32.gmra.mxu0 %v5028_v55  ;;  %v5039_v55 = vld [vmem:[#allocation52_spill] sm:$0xff] }
 0x871   :  { %1703 = vmatpush1.msra.mxu0 %v3989_v54  ;;  %1504 = vmatprep.mubr.f32.mxu0 %v4989_v32 }
 0x872   :  { %1704 = vmatprep.subr.mxu0 %v3992_v8 }
 0x873   :  { %1705 = vmatpush1.msra.mxu0 %v3995_v6 }
 0x874   :  { %1706 = vmatprep.subr.mxu0 %v3998_v7  ;;  %1505 = vmatmul.mubr.f32.gmra.mxu0 %v5029_v37  ;;  %v5040_v37 = vld [vmem:[#allocation43_spill] sm:$0xff] }
 0x875   :  { %1707 = vmatpush1.msra.mxu0 %v4001_v18  ;;  %1742 = vmatprep.mubr.f32.mxu0 %v4989_v32 }
 0x876   :  { %1708 = vmatprep.subr.mxu0 %v4004_v19 }
 0x877   :  { %1709 = vmatpush1.msra.mxu0 %v4007_v20 }
 0x878   :  { %1710 = vmatprep.subr.mxu0 %v4010_v56 }
 0x879   :  { %1711 = vmatpush2.msra.mxu0 %v4013_v16 }
 0x87a   :  { %1712 = vmatprep.subr.mxu0 %v4016_v17 }
 0x87b   :  { %1713 = vmatpush2.msra.mxu0 %v4019_v21 }
 0x87c   :  { %1714 = vmatprep.subr.mxu0 %v4022_v22 }
 0x87d   :  { %1715 = vmatpush2.msra.mxu0 %v4025_v23 }
 0x87e   :  { %1716 = vmatprep.subr.mxu0 %v4028_v24 }
 0x87f   :  { %1717 = vmatpush2.msra.mxu0 %v4031_v25 }
 0x880   :  { %1718 = vmatprep.subr.mxu0 %v4034_v26 }
 0x881   :  { %1719 = vmatpush2.msra.mxu0 %v4037_v27 }
 0x882   :  { %1720 = vmatprep.subr.mxu0 %v4040_v28 }
 0x883   :  { %1721 = vmatpush2.msra.mxu0 %v4043_v59 }
 0x884   :  { %1722 = vmatprep.subr.mxu0 %v4046_v33 }
 0x885   :  { %1723 = vmatpush2.msra.mxu0 %v4049_v34 }
 0x886   :  { %1724 = vmatprep.subr.mxu0 %v4052_v35 }
 0x887   :  { %1725 = vmatpush2.msra.mxu0 %v4055_v5 }
 0x888   :  { %1726 = vmatprep.subr.mxu0 %v4058_v36 }
 0x889   :  { %1727 = vmatpush2.msra.mxu0 %v5030_v31  ;;  %v5041_v31 = vld [vmem:[#allocation55_spill] sm:$0xff] }
 0x88a   :  { %1728 = vmatprep.subr.mxu0 %v5031_v38 }
 0x88b   :  { %1729 = vmatpush2.msra.mxu0 %v5032_v39 }
 0x88c   :  { %1730 = vmatprep.subr.mxu0 %v5033_v40 }
 0x88d   :  { %1731 = vmatpush2.msra.mxu0 %v5034_v44 }
 0x88e   :  { %1732 = vmatprep.subr.mxu0 %v5035_v45 }
 0x88f   :  { %1733 = vmatpush2.msra.mxu0 %v5036_v46 }
 0x890   :  { %1734 = vmatprep.subr.mxu0 %v5037_v30 }
 0x891   :  { %1735 = vmatpush2.msra.mxu0 %v5038_v4 }
 0x892   :  { %1736 = vmatprep.subr.mxu0 %v5039_v55 }
 0x893   :  { %1737 = vmatpush2.msra.mxu0 %v5040_v37 }
 0x894   :  { %1738 = vmatprep.subr.mxu0 %v5041_v31 }
 0x895   :  { %1739 = vmatpush2.msra.mxu0 %v4097_v41 }
 0x896   :  { %1740 = vmatprep.subr.mxu0 %v4100_v42 }
 0x897   :  { %1741 = vmatpush2.msra.mxu0 %v4103_v43 }
 0x898   :  { %1743 = vmatmul.mubr.f32.vlgmr.msra.gmra.mxu0 %v4989_v32  ;;  %1848 = vmatprep.subr.mxu0 %v3914_v47  ;;  %v5042_v32 = vld [vmem:[#allocation34_spill] sm:$0xff] }
 0x899   :  { %1849 = vmatpush1.msra.mxu0 %v3918_v53 }
 0x89a   :  { %1850 = vmatprep.subr.mxu0 %v3920_v52 }
 0x89b   :  { %1851 = vmatpush1.msra.mxu0 %v3923_v58 }
 0x89c   :  { %1852 = vmatprep.subr.mxu0 %v3926_v60 }
 0x89d   :  { %1853 = vmatpush1.msra.mxu0 %v3929_v11 }
 0x89e   :  { %1854 = vmatprep.subr.mxu0 %v3932_v2 }
 0x89f   :  { %1855 = vmatpush1.msra.mxu0 %v3935_v61 }
 0x8a0   :  { %1856 = vmatprep.subr.mxu0 %v3938_v51 }
 0x8a1   :  { %1857 = vmatpush1.msra.mxu0 %v3941_v3 }
 0x8a2   :  { %1858 = vmatprep.subr.mxu0 %v3944_v48 }
 0x8a3   :  { %1859 = vmatpush1.msra.mxu0 %v3947_v57 }
 0x8a4   :  { %1860 = vmatprep.subr.mxu0 %v3950_v9 }
 0x8a5   :  { %1861 = vmatpush1.msra.mxu0 %v3953_v10 }
 0x8a6   :  { %1862 = vmatprep.subr.mxu0 %v3956_v12 }
 0x8a7   :  { %1863 = vmatpush1.msra.mxu0 %v3959_v13 }
 0x8a8   :  { %1864 = vmatprep.subr.mxu0 %v3962_v14 }
 0x8a9   :  { %1865 = vmatpush1.msra.mxu0 %v3965_v15 }
 0x8aa   :  { %1866 = vmatprep.subr.mxu0 %v3968_v29 }
 0x8ab   :  { %1867 = vmatpush1.msra.mxu0 %v3971_v49 }
 0x8ac   :  { %1868 = vmatprep.subr.mxu0 %v3974_v62 }
 0x8ad   :  { %1869 = vmatpush1.msra.mxu0 %v3977_v63 }
 0x8ae   :  { %1870 = vmatprep.subr.mxu0 %v3980_v0 }
 0x8af   :  { %1871 = vmatpush1.msra.mxu0 %v3983_v1 }
 0x8b0   :  { %1872 = vmatprep.subr.mxu0 %v3986_v50 }
 0x8b1   :  { %1873 = vmatpush1.msra.mxu0 %v3989_v54 }
 0x8b2   :  { %1874 = vmatprep.subr.mxu0 %v3992_v8 }
 0x8b3   :  { %1875 = vmatpush1.msra.mxu0 %v3995_v6 }
 0x8b4   :  { %1876 = vmatprep.subr.mxu0 %v3998_v7 }
 0x8b5   :  { %1877 = vmatpush1.msra.mxu0 %v4001_v18 }
 0x8b6   :  { %1878 = vmatprep.subr.mxu0 %v4004_v19 }
 0x8b7   :  { %1879 = vmatpush1.msra.mxu0 %v4007_v20 }
 0x8b8   :  { %1880 = vmatprep.subr.mxu0 %v4010_v56 }
 0x8b9   :  { %1881 = vmatpush2.msra.mxu0 %v4013_v16 }
 0x8ba   :  { %1882 = vmatprep.subr.mxu0 %v4016_v17 }
 0x8bb   :  { %1883 = vmatpush2.msra.mxu0 %v4019_v21 }
 0x8bc   :  { %1884 = vmatprep.subr.mxu0 %v4022_v22 }
 0x8bd   :  { %1885 = vmatpush2.msra.mxu0 %v4025_v23 }
 0x8be   :  { %1886 = vmatprep.subr.mxu0 %v4028_v24 }
 0x8bf   :  { %1887 = vmatpush2.msra.mxu0 %v4031_v25 }
 0x8c0   :  { %1888 = vmatprep.subr.mxu0 %v4034_v26 }
 0x8c1   :  { %1889 = vmatpush2.msra.mxu0 %v4037_v27 }
 0x8c2   :  { %1890 = vmatprep.subr.mxu0 %v4040_v28 }
 0x8c3   :  { %1891 = vmatpush2.msra.mxu0 %v4043_v59 }
 0x8c4   :  { %1892 = vmatprep.subr.mxu0 %v4046_v33 }
 0x8c5   :  { %1893 = vmatpush2.msra.mxu0 %v4049_v34 }
 0x8c6   :  { %1894 = vmatprep.subr.mxu0 %v4052_v35 }
 0x8c7   :  { %1895 = vmatpush2.msra.mxu0 %v4055_v5 }
 0x8c8   :  { %1896 = vmatprep.subr.mxu0 %v4058_v36 }
 0x8c9   :  { %1897 = vmatpush2.msra.mxu0 %v5042_v32 }
 0x8ca   :  { %1898 = vmatprep.subr.mxu0 %v5031_v38 }
 0x8cb   :  { %1899 = vmatpush2.msra.mxu0 %v5032_v39 }
 0x8cc   :  { %1900 = vmatprep.subr.mxu0 %v5033_v40 }
 0x8cd   :  { %1901 = vmatpush2.msra.mxu0 %v5034_v44 }
 0x8ce   :  { %1902 = vmatprep.subr.mxu0 %v5035_v45  ;;  %v1577_v45 = vpop.f32.mrf.mxu1 }
 0x8cf   :  { %1903 = vmatpush2.msra.mxu0 %v5036_v46 }
 0x8d0   :  { %1904 = vmatprep.subr.mxu0 %v5037_v30  ;;  %v1579_v46 = vpop.f32.mrf.mxu1 }
 0x8d1   :  { %1905 = vmatpush2.msra.mxu0 %v5038_v4 }
 0x8d2   :  { %1906 = vmatprep.subr.mxu0 %v5039_v55  ;;  %v1583_v44 = vpop.f32.mrf.mxu1 }
 0x8d3   :  { %1907 = vmatpush2.msra.mxu0 %v5040_v37  ;;  %v5043_v37 = vld [vmem:[#allocation40_spill] sm:$0xff] }
 0x8d4   :  { %1908 = vmatprep.subr.mxu0 %v5041_v31  ;;  %v1585_v30 = vpop.f32.mrf.mxu1  ;;  %v1624_v31 = vld [vmem:[%s4760_s8] sm:$0x3]  ;;  %v5045_v5 = vsub.s32 0, %v5043_v37 }
 0x8d5   :  { %1909 = vmatpush2.msra.mxu0 %v4097_v41  ;;  %v5044_v41 = vsub.s32 1, %v5043_v37 }
 0x8d6   :  { %1910 = vmatprep.subr.mxu0 %v4100_v42  ;;  %v1589_v40 = vpop.f32.mrf.mxu1  ;;  %v1629_v35 = vrot.slane %v1624_v31, %v5045_v5 }
 0x8d7   :  { %1911 = vmatpush2.msra.mxu0 %v4103_v43  ;;  %v1633_v38 = vrot.slane %v1624_v31, %v5044_v41 }
 0x8d8   :  { %2010 = vmatprep.subr.mxu0 %v3914_v47  ;;  %v1591_v4 = vpop.f32.mrf.mxu1 }
 0x8da   :  { %v1595_v39 = vpop.f32.mrf.mxu1 }
 0x8dc   :  { %v1597_v42 = vpop.f32.mrf.mxu1 }
 0x8de   :  { %v1601_v33 = vpop.f32.mrf.mxu1 }
 0x8e0   :  { %v1603_v41 = vpop.f32.mrf.mxu1 }
 0x8e2   :  { %v1607_v5 = vpop.f32.mrf.mxu1 }
 0x918   :  { %v1464_v55 = vpop.f32.mrf.mxu0 }
 0x91a   :  { %v1466_v32 = vpop.f32.mrf.mxu0 }
 0x91b   :  { %v1580_v43 = vadd.f32 %v1579_v46, %v1466_v32 }
 0x91c   :  { %v1470_v36 = vpop.f32.mrf.mxu0 }
 0x91d   :  { %v1584_v47 = vadd.f32 %v1583_v44, %v1470_v36  ;;  %v4261_v34 = vadd.f32 %v1633_v38, %v1580_v43 }
 0x91e   :  { %v1472_v59 = vpop.f32.mrf.mxu0 }
 0x91f   :  { %5046 = vst [vmem:[#allocation53_spill] sm:$0xff] %v4261_v34  ;;  %v1586_v28 = vadd.f32 %v1585_v30, %v1472_v59  ;;  %v4263_v27 = vadd.f32 %v1629_v35, %v1584_v47 }
 0x920   :  { %v1476_v26 = vpop.f32.mrf.mxu0 }
 0x921   :  { %v1590_v25 = vadd.f32 %v1589_v40, %v1476_v26  ;;  %v4265_v24 = vadd.f32 %v1633_v38, %v1586_v28  ;;  %v1609_v26 = vpop.f32.mrf.mxu1 }
 0x922   :  { %v1478_v23 = vpop.f32.mrf.mxu0 }
 0x923   :  { %5047 = vst [vmem:[#allocation41_spill] sm:$0xff] %v4265_v24  ;;  %v1592_v22 = vadd.f32 %v1591_v4, %v1478_v23  ;;  %v4267_v46 = vadd.f32 %v1629_v35, %v1590_v25 }
 0x924   :  { %v1482_v36 = vpop.f32.mrf.mxu0 }
 0x925   :  { %5048 = vst [vmem:[#allocation25_spill] sm:$0xff] %v4267_v46  ;;  %v1596_v44 = vadd.f32 %v1595_v39, %v1482_v36  ;;  %v4269_v37 = vadd.f32 %v1633_v38, %v1592_v22  ;;  %v1613_v22 = vpop.f32.mrf.mxu1  ;;  %v5084_v46 = vld [vmem:[#allocation26_spill] sm:$0xff] }
 0x926   :  { %v1484_v43 = vpop.f32.mrf.mxu0 }
 0x927   :  { %5049 = vst [vmem:[#allocation24_spill] sm:$0xff] %v4269_v37  ;;  %v1598_v31 = vadd.f32 %v1597_v42, %v1484_v43  ;;  %v4271_v32 = vadd.f32 %v1629_v35, %v1596_v44 }
 0x928   :  { %v1488_v47 = vpop.f32.mrf.mxu0 }
 0x929   :  { %5050 = vst [vmem:[#allocation22_spill] sm:$0xff] %v4271_v32  ;;  %v1602_v59 = vadd.f32 %v1601_v33, %v1488_v47  ;;  %v4273_v30 = vadd.f32 %v1633_v38, %v1598_v31  ;;  %v1615_v33 = vpop.f32.mrf.mxu1  ;;  %v5082_v32 = vld [vmem:[#allocation55_spill] sm:$0xff] }
 0x92a   :  { %v1490_v28 = vpop.f32.mrf.mxu0 }
 0x92b   :  { %5051 = vst [vmem:[#allocation54_spill] sm:$0xff] %v4273_v30  ;;  %v1604_v40 = vadd.f32 %v1603_v41, %v1490_v28  ;;  %v4275_v34 = vadd.f32 %v1629_v35, %v1602_v59  ;;  %v1619_v41 = vpop.f32.mrf.mxu1 }
 0x92c   :  { %v1494_v23 = vpop.f32.mrf.mxu0 }
 0x92d   :  { %5052 = vst [vmem:[#allocation40_spill] sm:$0xff] %v4275_v34  ;;  %v1608_v25 = vadd.f32 %v1607_v5, %v1494_v23  ;;  %v4277_v4 = vadd.f32 %v1633_v38, %v1604_v40 }
 0x92e   :  { %v1496_v39 = vpop.f32.mrf.mxu0 }
 0x92f   :  { %5053 = vst [vmem:[#allocation57_spill] sm:$0xff] %v4277_v4  ;;  %v1610_v36 = vadd.f32 %v1609_v26, %v1496_v39  ;;  %v4279_v24 = vadd.f32 %v1629_v35, %v1608_v25  ;;  %v1578_v26 = vadd.f32 %v1577_v45, %v1464_v55  ;;  %v1621_v25 = vpop.f32.mrf.mxu1  ;;  %v5062_v45 = vld [vmem:[#allocation42_spill] sm:$0xff]  ;;  %v5063_v55 = vld [vmem:[#allocation28_spill] sm:$0xff]  ;;  %v5081_v4 = vld [vmem:[#allocation43_spill] sm:$0xff] }
 0x930   :  { %v1500_v42 = vpop.f32.mrf.mxu0 }
 0x931   :  { %5054 = vst [vmem:[#allocation58_spill] sm:$0xff] %v4279_v24  ;;  %v1614_v44 = vadd.f32 %v1613_v22, %v1500_v42  ;;  %v4281_v43 = vadd.f32 %v1633_v38, %v1610_v36  ;;  %v1636_v24 = vadd.f32 %v1629_v35, %v1578_v26  ;;  %v5071_v26 = vld [vmem:[#allocation34_spill] sm:$0xff] }
 0x932   :  { %v1502_v31 = vpop.f32.mrf.mxu0 }
 0x933   :  { %5055 = vst [vmem:[#allocation59_spill] sm:$0xff] %v4281_v43  ;;  %v1616_v47 = vadd.f32 %v1615_v33, %v1502_v31  ;;  %v4283_v37 = vadd.f32 %v1629_v35, %v1614_v44  ;;  %v5065_v31 = vld [vmem:[#allocation51_spill] sm:$0xff] }
 0x934   :  { %v1506_v59 = vpop.f32.mrf.mxu0  ;;  %v5083_v43 = vld [vmem:[#allocation23_spill] sm:$0xff] }
 0x935   :  { %5056 = vst [vmem:[#allocation60_spill] sm:$0xff] %v4283_v37  ;;  %v1620_v28 = vadd.f32 %v1619_v41, %v1506_v59  ;;  %v4285_v5 = vadd.f32 %v1633_v38, %v1616_v47  ;;  %v5066_v47 = vld [vmem:[#allocation29_spill] sm:$0xff]  ;;  %v5067_v41 = vld [vmem:[#allocation30_spill] sm:$0xff]  ;;  %v5068_v59 = vld [vmem:[#allocation31_spill] sm:$0xff] }
 0x936   :  { %v1508_v23 = vpop.f32.mrf.mxu0  ;;  %v5080_v37 = vld [vmem:[#allocation52_spill] sm:$0xff] }
 0x937   :  { %v4287_v40 = vadd.f32 %v1629_v35, %v1620_v28  ;;  %v1622_v39 = vadd.f32 %v1621_v25, %v1508_v23  ;;  %v5060_v35 = vld [vmem:[#allocation39_spill] sm:$0xff]  ;;  %v5069_v28 = vld [vmem:[#allocation32_spill] sm:$0xff]  ;;  %v5070_v23 = vld [vmem:[#allocation33_spill] sm:$0xff] }
 0x938   :  { %v5072_v25 = vld [vmem:[#allocation35_spill] sm:$0xff] }
 0x939   :  { %5057 = vst [vmem:[#allocation61_spill] sm:$0xff] %v4287_v40  ;;  %v1651_v36 = vadd.f32 %v1633_v38, %v1622_v39  ;;  %v5061_v38 = vld [vmem:[#allocation21_spill] sm:$0xff]  ;;  %v5073_v39 = vld [vmem:[#allocation36_spill] sm:$0xff] }
 0x93a   :  { %v5079_v40 = vld [vmem:[#allocation45_spill] sm:$0xff] }
 0x958   :  { %v1744_v22 = vpop.f32.mrf.mxu0 }
 0x959   :  { %v1749_v42 = vadd.f32 %v1744_v22, %v1636_v24  ;;  %v5058_v24 = vld [vmem:[#allocation37_spill] sm:$0xff]  ;;  %v5074_v22 = vld [vmem:[#allocation46_spill] sm:$0xff] }
 0x95a   :  { %v1746_v30 = vpop.f32.mrf.mxu0 }
 0x95b   :  { %v1750_v34 = vadd.f32 %v1746_v30, %v1651_v36  ;;  %v5064_v30 = vld [vmem:[#allocation44_spill] sm:$0xff]  ;;  %v5075_v36 = vld [vmem:[#allocation49_spill] sm:$0xff] }
 0x95d   :  { %2616 = vtanh.f32 %v1750_v34  ;;  %v5059_v34 = vld [vmem:[#allocation38_spill] sm:$0xff] }
 0x95e   :  { %2618 = vtanh.f32 %v1749_v42  ;;  %v5076_v42 = vld [vmem:[#allocation48_spill] sm:$0xff] }
 0x96a   :  { %v2617_v44 = vpop.eup %2616 }
 0x96b   :  { %v2619_v33 = vpop.eup %2618  ;;  %1827 = vmatprep.mubr.f32.mxu1 %v2617_v44  ;;  %v5077_v44 = vld [vmem:[#allocation47_spill] sm:$0xff] }
 0x96c   :  { %1828 = vmatmul.mubr.f32.vlgmr.msra.gmra.mxu1 %v2619_v33  ;;  %v5078_v33 = vld [vmem:[#allocation50_spill] sm:$0xff] }
 0x96d   :  { %1934 = vmatpush1.msra.mxu1 %v3918_v53 }
 0x96e   :  { %1935 = vmatprep.subr.mxu1 %v3920_v52 }
 0x96f   :  { %1936 = vmatpush1.msra.mxu1 %v3923_v58 }
 0x970   :  { %1937 = vmatprep.subr.mxu1 %v3926_v60 }
 0x971   :  { %1938 = vmatpush1.msra.mxu1 %v3929_v11 }
 0x972   :  { %1939 = vmatprep.subr.mxu1 %v3932_v2 }
 0x973   :  { %1940 = vmatpush1.msra.mxu1 %v3935_v61 }
 0x974   :  { %1941 = vmatprep.subr.mxu1 %v3938_v51 }
 0x975   :  { %1942 = vmatpush1.msra.mxu1 %v3941_v3 }
 0x976   :  { %1943 = vmatprep.subr.mxu1 %v3944_v48 }
 0x977   :  { %1944 = vmatpush1.msra.mxu1 %v3947_v57 }
 0x978   :  { %1945 = vmatprep.subr.mxu1 %v3950_v9 }
 0x979   :  { %1946 = vmatpush1.msra.mxu1 %v3953_v10 }
 0x97a   :  { %1947 = vmatprep.subr.mxu1 %v3956_v12 }
 0x97b   :  { %1948 = vmatpush1.msra.mxu1 %v3959_v13 }
 0x97c   :  { %1949 = vmatprep.subr.mxu1 %v3962_v14 }
 0x97d   :  { %1950 = vmatpush1.msra.mxu1 %v3965_v15 }
 0x97e   :  { %1951 = vmatprep.subr.mxu1 %v3968_v29 }
 0x97f   :  { %1952 = vmatpush1.msra.mxu1 %v3971_v49 }
 0x980   :  { %1953 = vmatprep.subr.mxu1 %v3974_v62 }
 0x981   :  { %1954 = vmatpush1.msra.mxu1 %v3977_v63 }
 0x982   :  { %1955 = vmatprep.subr.mxu1 %v3980_v0 }
 0x983   :  { %1956 = vmatpush1.msra.mxu1 %v3983_v1 }
 0x984   :  { %1957 = vmatprep.subr.mxu1 %v3986_v50 }
 0x985   :  { %1958 = vmatpush1.msra.mxu1 %v3989_v54 }
 0x986   :  { %1959 = vmatprep.subr.mxu1 %v3992_v8 }
 0x987   :  { %1960 = vmatpush1.msra.mxu1 %v3995_v6 }
 0x988   :  { %1961 = vmatprep.subr.mxu1 %v3998_v7 }
 0x989   :  { %1962 = vmatpush1.msra.mxu1 %v4001_v18 }
 0x98a   :  { %1963 = vmatprep.subr.mxu1 %v4004_v19 }
 0x98b   :  { %1964 = vmatpush1.msra.mxu1 %v4007_v20 }
 0x98c   :  { %1965 = vmatprep.subr.mxu1 %v4010_v56 }
 0x98d   :  { %1966 = vmatpush2.msra.mxu1 %v4013_v16 }
 0x98e   :  { %1967 = vmatprep.subr.mxu1 %v4016_v17 }
 0x98f   :  { %1968 = vmatpush2.msra.mxu1 %v4019_v21 }
 0x990   :  { %1969 = vmatprep.subr.mxu1 %v5058_v24 }
 0x991   :  { %1970 = vmatpush2.msra.mxu1 %v5059_v34 }
 0x992   :  { %1971 = vmatprep.subr.mxu1 %v5060_v35 }
 0x993   :  { %1972 = vmatpush2.msra.mxu1 %v5061_v38 }
 0x994   :  { %1973 = vmatprep.subr.mxu1 %v5062_v45 }
 0x995   :  { %1974 = vmatpush2.msra.mxu1 %v5063_v55 }
 0x996   :  { %1975 = vmatprep.subr.mxu1 %v5064_v30 }
 0x997   :  { %1976 = vmatpush2.msra.mxu1 %v5065_v31 }
 0x998   :  { %1977 = vmatprep.subr.mxu1 %v5066_v47 }
 0x999   :  { %1978 = vmatpush2.msra.mxu1 %v5067_v41 }
 0x99a   :  { %1979 = vmatprep.subr.mxu1 %v5068_v59 }
 0x99b   :  { %1980 = vmatpush2.msra.mxu1 %v5069_v28 }
 0x99c   :  { %1981 = vmatprep.subr.mxu1 %v5070_v23 }
 0x99d   :  { %1982 = vmatpush2.msra.mxu1 %v5071_v26 }
 0x99e   :  { %1983 = vmatprep.subr.mxu1 %v5072_v25 }
 0x99f   :  { %1984 = vmatpush2.msra.mxu1 %v5073_v39 }
 0x9a0   :  { %1985 = vmatprep.subr.mxu1 %v5074_v22  ;;  %v5085_v22 = vld [vmem:[#allocation56_spill] sm:$0xff] }
 0x9a1   :  { %1986 = vmatpush2.msra.mxu1 %v5075_v36  ;;  %v5086_v36 = vld [vmem:[#allocation27_spill] sm:$0xff] }
 0x9a2   :  { %1987 = vmatprep.subr.mxu1 %v5076_v42 }
 0x9a3   :  { %1988 = vmatpush2.msra.mxu1 %v5077_v44 }
 0x9a4   :  { %1989 = vmatprep.subr.mxu1 %v5078_v33 }
 0x9a5   :  { %1990 = vmatpush2.msra.mxu1 %v5079_v40 }
 0x9a6   :  { %1991 = vmatprep.subr.mxu1 %v5080_v37 }
 0x9a7   :  { %1992 = vmatpush2.msra.mxu1 %v5081_v4 }
 0x9a8   :  { %1993 = vmatprep.subr.mxu1 %v5082_v32 }
 0x9a9   :  { %1994 = vmatpush2.msra.mxu1 %v5083_v43 }
 0x9aa   :  { %1995 = vmatprep.subr.mxu1 %v5084_v46 }
 0x9ab   :  { %1996 = vmatpush2.msra.mxu1 %v5085_v22 }
 0x9ac   :  { %2087 = vmatprep.subr.mxu1 %v5086_v36 }
 0xa2c   :  { %v1829_v42 = vpop.f32.mrf.mxu1 }
 0xa2d   :  { %v1834_v44 = vadd.f32 %v1829_v42, %v4263_v27  ;;  %v5087_v27 = vld [vmem:[#allocation46_spill] sm:$0xff]  ;;  %v5092_v42 = vld [vmem:[#allocation45_spill] sm:$0xff] }
 0xa2e   :  { %v1831_v33 = vpop.f32.mrf.mxu1 }
 0xa2f   :  { %v1835_v40 = vadd.f32 %v1831_v33, %v4285_v5  ;;  %v5090_v5 = vld [vmem:[#allocation47_spill] sm:$0xff] }
 0xa30   :  { %v5094_v33 = vld [vmem:[#allocation43_spill] sm:$0xff] }
 0xa31   :  { %2620 = vtanh.f32 %v1835_v40  ;;  %v5091_v40 = vld [vmem:[#allocation50_spill] sm:$0xff] }
 0xa32   :  { %2622 = vtanh.f32 %v1834_v44  ;;  %v5093_v44 = vld [vmem:[#allocation52_spill] sm:$0xff] }
 0xa3e   :  { %v2621_v37 = vpop.eup %2620 }
 0xa3f   :  { %v2623_v4 = vpop.eup %2622  ;;  %1912 = vmatprep.mubr.f32.mxu0 %v2621_v37  ;;  %v5088_v37 = vld [vmem:[#allocation49_spill] sm:$0xff] }
 0xa40   :  { %1913 = vmatmul.mubr.f32.vlgmr.msra.gmra.mxu0 %v2623_v4  ;;  %v5089_v4 = vld [vmem:[#allocation48_spill] sm:$0xff] }
 0xa41   :  { %2011 = vmatpush1.msra.mxu0 %v3918_v53 }
 0xa42   :  { %2012 = vmatprep.subr.mxu0 %v3920_v52 }
 0xa43   :  { %2013 = vmatpush1.msra.mxu0 %v3923_v58 }
 0xa44   :  { %2014 = vmatprep.subr.mxu0 %v3926_v60 }
 0xa45   :  { %2015 = vmatpush1.msra.mxu0 %v3929_v11 }
 0xa46   :  { %2016 = vmatprep.subr.mxu0 %v3932_v2 }
 0xa47   :  { %2017 = vmatpush1.msra.mxu0 %v3935_v61 }
 0xa48   :  { %2018 = vmatprep.subr.mxu0 %v3938_v51 }
 0xa49   :  { %2019 = vmatpush1.msra.mxu0 %v3941_v3 }
 0xa4a   :  { %2020 = vmatprep.subr.mxu0 %v3944_v48 }
 0xa4b   :  { %2021 = vmatpush1.msra.mxu0 %v3947_v57 }
 0xa4c   :  { %2022 = vmatprep.subr.mxu0 %v3950_v9 }
 0xa4d   :  { %2023 = vmatpush1.msra.mxu0 %v3953_v10 }
 0xa4e   :  { %2024 = vmatprep.subr.mxu0 %v3956_v12 }
 0xa4f   :  { %2025 = vmatpush1.msra.mxu0 %v3959_v13 }
 0xa50   :  { %2026 = vmatprep.subr.mxu0 %v3962_v14 }
 0xa51   :  { %2027 = vmatpush1.msra.mxu0 %v3965_v15 }
 0xa52   :  { %2028 = vmatprep.subr.mxu0 %v3968_v29 }
 0xa53   :  { %2029 = vmatpush1.msra.mxu0 %v3971_v49 }
 0xa54   :  { %2030 = vmatprep.subr.mxu0 %v3974_v62 }
 0xa55   :  { %2031 = vmatpush1.msra.mxu0 %v3977_v63 }
 0xa56   :  { %2032 = vmatprep.subr.mxu0 %v3980_v0 }
 0xa57   :  { %2033 = vmatpush1.msra.mxu0 %v3983_v1 }
 0xa58   :  { %2034 = vmatprep.subr.mxu0 %v3986_v50 }
 0xa59   :  { %2035 = vmatpush1.msra.mxu0 %v3989_v54 }
 0xa5a   :  { %2036 = vmatprep.subr.mxu0 %v3992_v8 }
 0xa5b   :  { %2037 = vmatpush1.msra.mxu0 %v3995_v6 }
 0xa5c   :  { %2038 = vmatprep.subr.mxu0 %v3998_v7 }
 0xa5d   :  { %2039 = vmatpush1.msra.mxu0 %v4001_v18 }
 0xa5e   :  { %2040 = vmatprep.subr.mxu0 %v4004_v19 }
 0xa5f   :  { %2041 = vmatpush1.msra.mxu0 %v4007_v20 }
 0xa60   :  { %2042 = vmatprep.subr.mxu0 %v4010_v56 }
 0xa61   :  { %2043 = vmatpush2.msra.mxu0 %v4013_v16 }
 0xa62   :  { %2044 = vmatprep.subr.mxu0 %v4016_v17 }
 0xa63   :  { %2045 = vmatpush2.msra.mxu0 %v4019_v21 }
 0xa64   :  { %2046 = vmatprep.subr.mxu0 %v5058_v24 }
 0xa65   :  { %2047 = vmatpush2.msra.mxu0 %v5059_v34 }
 0xa66   :  { %2048 = vmatprep.subr.mxu0 %v5060_v35 }
 0xa67   :  { %2049 = vmatpush2.msra.mxu0 %v5061_v38 }
 0xa68   :  { %2050 = vmatprep.subr.mxu0 %v5062_v45 }
 0xa69   :  { %2051 = vmatpush2.msra.mxu0 %v5063_v55 }
 0xa6a   :  { %2052 = vmatprep.subr.mxu0 %v5064_v30 }
 0xa6b   :  { %2053 = vmatpush2.msra.mxu0 %v5065_v31 }
 0xa6c   :  { %2054 = vmatprep.subr.mxu0 %v5066_v47 }
 0xa6d   :  { %2055 = vmatpush2.msra.mxu0 %v5067_v41 }
 0xa6e   :  { %2056 = vmatprep.subr.mxu0 %v5068_v59 }
 0xa6f   :  { %2057 = vmatpush2.msra.mxu0 %v5069_v28 }
 0xa70   :  { %2058 = vmatprep.subr.mxu0 %v5070_v23 }
 0xa71   :  { %2059 = vmatpush2.msra.mxu0 %v5071_v26 }
 0xa72   :  { %2060 = vmatprep.subr.mxu0 %v5072_v25 }
 0xa73   :  { %2061 = vmatpush2.msra.mxu0 %v5073_v39 }
 0xa74   :  { %2062 = vmatprep.subr.mxu0 %v5087_v27  ;;  %v5096_v27 = vld [vmem:[#allocation59_spill] sm:$0xff] }
 0xa75   :  { %2063 = vmatpush2.msra.mxu0 %v5088_v37 }
 0xa76   :  { %2064 = vmatprep.subr.mxu0 %v5089_v4 }
 0xa77   :  { %2065 = vmatpush2.msra.mxu0 %v5090_v5  ;;  %v5095_v5 = vld [vmem:[#allocation25_spill] sm:$0xff] }
 0xa78   :  { %2066 = vmatprep.subr.mxu0 %v5091_v40 }
 0xa79   :  { %2067 = vmatpush2.msra.mxu0 %v5092_v42 }
 0xa7a   :  { %2068 = vmatprep.subr.mxu0 %v5093_v44 }
 0xa7b   :  { %2069 = vmatpush2.msra.mxu0 %v5094_v33 }
 0xa7c   :  { %2070 = vmatprep.subr.mxu0 %v5082_v32 }
 0xa7d   :  { %2071 = vmatpush2.msra.mxu0 %v5083_v43 }
 0xa7e   :  { %2072 = vmatprep.subr.mxu0 %v5084_v46 }
 0xa7f   :  { %2073 = vmatpush2.msra.mxu0 %v5085_v22 }
 0xa80   :  { %2164 = vmatprep.subr.mxu0 %v5086_v36  ;;  %v4600_v36 = vld [vmem:[#allocation14 + $0x1c0] sm:$0xff] }
 0xb00   :  { %v1914_v4 = vpop.f32.mrf.mxu0 }
 0xb01   :  { %v1919_v37 = vadd.f32 %v1914_v4, %v5095_v5  ;;  %v4609_v4 = vld [vmem:[#allocation14 + $0x1a8] sm:$0xff]  ;;  %v4612_v5 = vld [vmem:[#allocation14 + $0x1a0] sm:$0xff] }
 0xb02   :  { %v1916_v40 = vpop.f32.mrf.mxu0 }
 0xb03   :  { %v1920_v42 = vadd.f32 %v1916_v40, %v5096_v27  ;;  %v4603_v27 = vld [vmem:[#allocation14 + $0x1b8] sm:$0xff] }
 0xb04   :  { %v4615_v40 = vld [vmem:[#allocation14 + $0x198] sm:$0xff] }
 0xb05   :  { %2624 = vtanh.f32 %v1920_v42  ;;  %v4618_v42 = vld [vmem:[#allocation14 + $0x190] sm:$0xff] }
 0xb06   :  { %2626 = vtanh.f32 %v1919_v37  ;;  %v4606_v37 = vld [vmem:[#allocation14 + $0x1b0] sm:$0xff] }
 0xb12   :  { %v2625_v44 = vpop.eup %2624 }
 0xb13   :  { %v2627_v33 = vpop.eup %2626  ;;  %1997 = vmatprep.mubr.f32.mxu1 %v2625_v44  ;;  %v4621_v44 = vld [vmem:[#allocation14 + $0x188] sm:$0xff] }
 0xb14   :  { %1998 = vmatmul.mubr.f32.vlgmr.msra.gmra.mxu1 %v2627_v33  ;;  %v4624_v33 = vld [vmem:[#allocation14 + $0x180] sm:$0xff] }
 0xb15   :  { %2088 = vmatpush1.msra.mxu1 %v3918_v53  ;;  %v5097_v53 = vld [vmem:[#allocation46_spill] sm:$0xff] }
 0xb16   :  { %2089 = vmatprep.subr.mxu1 %v3920_v52  ;;  %v5098_v52 = vld [vmem:[#allocation49_spill] sm:$0xff] }
 0xb17   :  { %2090 = vmatpush1.msra.mxu1 %v3923_v58  ;;  %v5099_v58 = vld [vmem:[#allocation48_spill] sm:$0xff] }
 0xb18   :  { %2091 = vmatprep.subr.mxu1 %v3926_v60  ;;  %v5100_v60 = vld [vmem:[#allocation47_spill] sm:$0xff] }
 0xb19   :  { %2092 = vmatpush1.msra.mxu1 %v3929_v11  ;;  %v5101_v11 = vld [vmem:[#allocation50_spill] sm:$0xff] }
 0xb1a   :  { %2093 = vmatprep.subr.mxu1 %v3932_v2  ;;  %v5102_v2 = vld [vmem:[#allocation45_spill] sm:$0xff] }
 0xb1b   :  { %2094 = vmatpush1.msra.mxu1 %v3935_v61  ;;  %v5103_v61 = vld [vmem:[#allocation52_spill] sm:$0xff] }
 0xb1c   :  { %2095 = vmatprep.subr.mxu1 %v3938_v51  ;;  %v5104_v51 = vld [vmem:[#allocation43_spill] sm:$0xff] }
 0xb1d   :  { %2096 = vmatpush1.msra.mxu1 %v3941_v3  ;;  %v2712_v3 = vld [vmem:[#allocation14 + $0xf8] sm:$0xff] }
 0xb1e   :  { %2097 = vmatprep.subr.mxu1 %v3944_v48 }
 0xb1f   :  { %2098 = vmatpush1.msra.mxu1 %v3947_v57  ;;  %v5105_v57 = vld [vmem:[#allocation22_spill] sm:$0xff] }
 0xb20   :  { %2099 = vmatprep.subr.mxu1 %v3950_v9 }
 0xb21   :  { %2100 = vmatpush1.msra.mxu1 %v3953_v10 }
 0xb22   :  { %2101 = vmatprep.subr.mxu1 %v3956_v12  ;;  %v5106_v12 = vld [vmem:[#allocation57_spill] sm:$0xff] }
 0xb23   :  { %2102 = vmatpush1.msra.mxu1 %v3959_v13 }
 0xb24   :  { %2103 = vmatprep.subr.mxu1 %v3962_v14 }
 0xb25   :  { %2104 = vmatpush1.msra.mxu1 %v3965_v15 }
 0xb26   :  { %2105 = vmatprep.subr.mxu1 %v3968_v29  ;;  %v4486_v29 = vld [vmem:[#allocation14 + $0xf0] sm:$0xff] }
 0xb27   :  { %2106 = vmatpush1.msra.mxu1 %v3971_v49  ;;  %v4489_v49 = vld [vmem:[#allocation14 + $0xe8] sm:$0xff] }
 0xb28   :  { %2107 = vmatprep.subr.mxu1 %v3974_v62  ;;  %v4492_v62 = vld [vmem:[#allocation14 + $0xe0] sm:$0xff] }
 0xb29   :  { %2108 = vmatpush1.msra.mxu1 %v3977_v63  ;;  %v4495_v63 = vld [vmem:[#allocation14 + $0xd8] sm:$0xff] }
 0xb2a   :  { %2109 = vmatprep.subr.mxu1 %v3980_v0  ;;  %v4498_v0 = vld [vmem:[#allocation14 + $0xd0] sm:$0xff] }
 0xb2b   :  { %2110 = vmatpush1.msra.mxu1 %v3983_v1  ;;  %v4501_v1 = vld [vmem:[#allocation14 + $0xc8] sm:$0xff] }
 0xb2c   :  { %2111 = vmatprep.subr.mxu1 %v3986_v50  ;;  %v4504_v50 = vld [vmem:[#allocation14 + $0xc0] sm:$0xff] }
 0xb2d   :  { %2112 = vmatpush1.msra.mxu1 %v3989_v54  ;;  %v4507_v54 = vld [vmem:[#allocation14 + $0xb8] sm:$0xff] }
 0xb2e   :  { %2113 = vmatprep.subr.mxu1 %v3992_v8  ;;  %v4510_v8 = vld [vmem:[#allocation14 + $0xb0] sm:$0xff] }
 0xb2f   :  { %2114 = vmatpush1.msra.mxu1 %v3995_v6  ;;  %v4513_v6 = vld [vmem:[#allocation14 + $0xa8] sm:$0xff] }
 0xb30   :  { %2115 = vmatprep.subr.mxu1 %v3998_v7  ;;  %v4516_v7 = vld [vmem:[#allocation14 + $0xa0] sm:$0xff] }
 0xb31   :  { %2116 = vmatpush1.msra.mxu1 %v4001_v18  ;;  %v4519_v18 = vld [vmem:[#allocation14 + $0x98] sm:$0xff] }
 0xb32   :  { %2117 = vmatprep.subr.mxu1 %v4004_v19  ;;  %v4522_v19 = vld [vmem:[#allocation14 + $0x90] sm:$0xff] }
 0xb33   :  { %2118 = vmatpush1.msra.mxu1 %v4007_v20  ;;  %v4525_v20 = vld [vmem:[#allocation14 + $0x88] sm:$0xff] }
 0xb34   :  { %2119 = vmatprep.subr.mxu1 %v4010_v56  ;;  %v4528_v56 = vld [vmem:[#allocation14 + $0x80] sm:$0xff] }
 0xb35   :  { %2120 = vmatpush2.msra.mxu1 %v4013_v16  ;;  %v4531_v16 = vld [vmem:[#allocation14 + $0x78] sm:$0xff] }
 0xb36   :  { %2121 = vmatprep.subr.mxu1 %v4016_v17  ;;  %v4534_v17 = vld [vmem:[#allocation14 + $0x70] sm:$0xff] }
 0xb37   :  { %2122 = vmatpush2.msra.mxu1 %v4019_v21  ;;  %v4537_v21 = vld [vmem:[#allocation14 + $0x68] sm:$0xff] }
 0xb38   :  { %2123 = vmatprep.subr.mxu1 %v5058_v24  ;;  %v4549_v24 = vld [vmem:[#allocation14 + $0x48] sm:$0xff] }
 0xb39   :  { %2124 = vmatpush2.msra.mxu1 %v5059_v34  ;;  %v4552_v34 = vld [vmem:[#allocation14 + $0x40] sm:$0xff] }
 0xb3a   :  { %2125 = vmatprep.subr.mxu1 %v5060_v35  ;;  %v4555_v35 = vld [vmem:[#allocation14 + $0x38] sm:$0xff] }
 0xb3b   :  { %2126 = vmatpush2.msra.mxu1 %v5061_v38  ;;  %v4558_v38 = vld [vmem:[#allocation14 + $0x30] sm:$0xff] }
 0xb3c   :  { %2127 = vmatprep.subr.mxu1 %v5062_v45  ;;  %v4561_v45 = vld [vmem:[#allocation14 + $0x28] sm:$0xff] }
 0xb3d   :  { %2128 = vmatpush2.msra.mxu1 %v5063_v55  ;;  %v4564_v55 = vld [vmem:[#allocation14 + $0x20] sm:$0xff] }
 0xb3e   :  { %2129 = vmatprep.subr.mxu1 %v5064_v30  ;;  %v4567_v30 = vld [vmem:[#allocation14 + $0x18] sm:$0xff] }
 0xb3f   :  { %2130 = vmatpush2.msra.mxu1 %v5065_v31  ;;  %v4570_v31 = vld [vmem:[#allocation14 + $0x10] sm:$0xff] }
 0xb40   :  { %2131 = vmatprep.subr.mxu1 %v5066_v47  ;;  %v4573_v47 = vld [vmem:[#allocation14 + $0x8] sm:$0xff] }
 0xb41   :  { %2132 = vmatpush2.msra.mxu1 %v5067_v41  ;;  %v4576_v41 = vld [vmem:[#allocation14] sm:$0xff] }
 0xb42   :  { %2133 = vmatprep.subr.mxu1 %v5068_v59  ;;  %v4579_v59 = vld [vmem:[#allocation14 + $0x1f8] sm:$0xff] }
 0xb43   :  { %2134 = vmatpush2.msra.mxu1 %v5069_v28  ;;  %v4582_v28 = vld [vmem:[#allocation14 + $0x1f0] sm:$0xff] }
 0xb44   :  { %2135 = vmatprep.subr.mxu1 %v5070_v23  ;;  %v4585_v23 = vld [vmem:[#allocation14 + $0x1e8] sm:$0xff] }
 0xb45   :  { %2136 = vmatpush2.msra.mxu1 %v5071_v26  ;;  %v4588_v26 = vld [vmem:[#allocation14 + $0x1e0] sm:$0xff] }
 0xb46   :  { %2137 = vmatprep.subr.mxu1 %v5072_v25  ;;  %v4591_v25 = vld [vmem:[#allocation14 + $0x1d8] sm:$0xff] }
 0xb47   :  { %2138 = vmatpush2.msra.mxu1 %v5073_v39  ;;  %v4594_v39 = vld [vmem:[#allocation14 + $0x1d0] sm:$0xff] }
 0xb48   :  { %2139 = vmatprep.subr.mxu1 %v5097_v53  ;;  %v4627_v53 = vld [vmem:[#allocation14 + $0x178] sm:$0xff] }
 0xb49   :  { %2140 = vmatpush2.msra.mxu1 %v5098_v52  ;;  %v4630_v52 = vld [vmem:[#allocation14 + $0x170] sm:$0xff] }
 0xb4a   :  { %2141 = vmatprep.subr.mxu1 %v5099_v58  ;;  %v4633_v58 = vld [vmem:[#allocation14 + $0x168] sm:$0xff] }
 0xb4b   :  { %2142 = vmatpush2.msra.mxu1 %v5100_v60  ;;  %v4636_v60 = vld [vmem:[#allocation14 + $0x160] sm:$0xff] }
 0xb4c   :  { %2143 = vmatprep.subr.mxu1 %v5101_v11  ;;  %v4639_v11 = vld [vmem:[#allocation14 + $0x158] sm:$0xff] }
 0xb4d   :  { %2144 = vmatpush2.msra.mxu1 %v5102_v2  ;;  %v4642_v2 = vld [vmem:[#allocation14 + $0x150] sm:$0xff] }
 0xb4e   :  { %2145 = vmatprep.subr.mxu1 %v5103_v61  ;;  %v4645_v61 = vld [vmem:[#allocation14 + $0x148] sm:$0xff] }
 0xb4f   :  { %2146 = vmatpush2.msra.mxu1 %v5104_v51  ;;  %5107 = vst [vmem:[#allocation37_spill] sm:$0xff] %v4645_v61  ;;  %v4648_v51 = vld [vmem:[#allocation14 + $0x140] sm:$0xff] }
 0xb50   :  { %2147 = vmatprep.subr.mxu1 %v5082_v32  ;;  %v4543_v32 = vld [vmem:[#allocation14 + $0x58] sm:$0xff]  ;;  %5108 = vst [vmem:[#allocation38_spill] sm:$0xff] %v4648_v51 }
 0xb51   :  { %2148 = vmatpush2.msra.mxu1 %v5083_v43  ;;  %v4546_v43 = vld [vmem:[#allocation14 + $0x50] sm:$0xff] }
 0xb52   :  { %2149 = vmatprep.subr.mxu1 %v5084_v46  ;;  %v4540_v46 = vld [vmem:[#allocation14 + $0x60] sm:$0xff] }
 0xb53   :  { %2150 = vmatpush2.msra.mxu1 %v5085_v22  ;;  %v4597_v22 = vld [vmem:[#allocation14 + $0x1c8] sm:$0xff] }
 0xb54   :  { %2241 = vmatprep.subr.mxu1 %v2712_v3  ;;  %v4651_v3 = vld [vmem:[#allocation14 + $0x138] sm:$0xff] }
 0xb55   :  { %5109 = vst [vmem:[#allocation39_spill] sm:$0xff] %v4651_v3 }
 0xbd4   :  { %v1999_v48 = vpop.f32.mrf.mxu1 }
 0xbd5   :  { %v2004_v9 = vadd.f32 %v1999_v48, %v5105_v57  ;;  %v4654_v48 = vld [vmem:[#allocation14 + $0x130] sm:$0xff]  ;;  %v4657_v57 = vld [vmem:[#allocation14 + $0x128] sm:$0xff] }
 0xbd6   :  { %v2001_v10 = vpop.f32.mrf.mxu1  ;;  %5110 = vst [vmem:[#allocation21_spill] sm:$0xff] %v4654_v48  ;;  %5111 = vst [vmem:[#allocation42_spill] sm:$0xff] %v4657_v57 }
 0xbd7   :  { %v2005_v13 = vadd.f32 %v2001_v10, %v5106_v12  ;;  %v4663_v10 = vld [vmem:[#allocation14 + $0x118] sm:$0xff]  ;;  %v4666_v12 = vld [vmem:[#allocation14 + $0x110] sm:$0xff] }
 0xbd8   :  { %5113 = vst [vmem:[#allocation44_spill] sm:$0xff] %v4663_v10 }
 0xbd9   :  { %2628 = vtanh.f32 %v2005_v13  ;;  %v4669_v13 = vld [vmem:[#allocation14 + $0x108] sm:$0xff] }
 0xbda   :  { %2630 = vtanh.f32 %v2004_v9  ;;  %v4660_v9 = vld [vmem:[#allocation14 + $0x120] sm:$0xff] }
 0xbdb   :  { %5112 = vst [vmem:[#allocation28_spill] sm:$0xff] %v4660_v9 }
 0xbe6   :  { %v2629_v14 = vpop.eup %2628 }
 0xbe7   :  { %v2631_v15 = vpop.eup %2630  ;;  %2074 = vmatprep.mubr.f32.mxu0 %v2629_v14  ;;  %v4672_v14 = vld [vmem:[#allocation14 + $0x100] sm:$0xff] }
 0xbe8   :  { %2075 = vmatmul.mubr.f32.vlgmr.msra.gmra.mxu0 %v2631_v15 }
 0xbe9   :  { %2165 = vmatpush1.msra.mxu0 %v4486_v29 }
 0xbea   :  { %2166 = vmatprep.subr.mxu0 %v4489_v49 }
 0xbeb   :  { %2167 = vmatpush1.msra.mxu0 %v4492_v62 }
 0xbec   :  { %2168 = vmatprep.subr.mxu0 %v4495_v63 }
 0xbed   :  { %2169 = vmatpush1.msra.mxu0 %v4498_v0 }
 0xbee   :  { %2170 = vmatprep.subr.mxu0 %v4501_v1 }
 0xbef   :  { %2171 = vmatpush1.msra.mxu0 %v4504_v50 }
 0xbf0   :  { %2172 = vmatprep.subr.mxu0 %v4507_v54 }
 0xbf1   :  { %2173 = vmatpush1.msra.mxu0 %v4510_v8 }
 0xbf2   :  { %2174 = vmatprep.subr.mxu0 %v4513_v6 }
 0xbf3   :  { %2175 = vmatpush1.msra.mxu0 %v4516_v7 }
 0xbf4   :  { %2176 = vmatprep.subr.mxu0 %v4519_v18 }
 0xbf5   :  { %2177 = vmatpush1.msra.mxu0 %v4522_v19 }
 0xbf6   :  { %2178 = vmatprep.subr.mxu0 %v4525_v20 }
 0xbf7   :  { %2179 = vmatpush1.msra.mxu0 %v4528_v56 }
 0xbf8   :  { %2180 = vmatprep.subr.mxu0 %v4531_v16 }
 0xbf9   :  { %2181 = vmatpush1.msra.mxu0 %v4534_v17 }
 0xbfa   :  { %2182 = vmatprep.subr.mxu0 %v4537_v21 }
 0xbfb   :  { %2183 = vmatpush1.msra.mxu0 %v4540_v46 }
 0xbfc   :  { %2184 = vmatprep.subr.mxu0 %v4543_v32 }
 0xbfd   :  { %2185 = vmatpush1.msra.mxu0 %v4546_v43 }
 0xbfe   :  { %2186 = vmatprep.subr.mxu0 %v4549_v24 }
 0xbff   :  { %2187 = vmatpush1.msra.mxu0 %v4552_v34 }
 0xc00   :  { %2188 = vmatprep.subr.mxu0 %v4555_v35 }
 0xc01   :  { %2189 = vmatpush1.msra.mxu0 %v4558_v38 }
 0xc02   :  { %2190 = vmatprep.subr.mxu0 %v4561_v45 }
 0xc03   :  { %2191 = vmatpush1.msra.mxu0 %v4564_v55 }
 0xc04   :  { %2192 = vmatprep.subr.mxu0 %v4567_v30 }
 0xc05   :  { %2193 = vmatpush1.msra.mxu0 %v4570_v31 }
 0xc06   :  { %2194 = vmatprep.subr.mxu0 %v4573_v47 }
 0xc07   :  { %2195 = vmatpush1.msra.mxu0 %v4576_v41 }
 0xc08   :  { %2196 = vmatprep.subr.mxu0 %v4579_v59 }
 0xc09   :  { %2197 = vmatpush2.msra.mxu0 %v4582_v28 }
 0xc0a   :  { %2198 = vmatprep.subr.mxu0 %v4585_v23 }
 0xc0b   :  { %2199 = vmatpush2.msra.mxu0 %v4588_v26 }
 0xc0c   :  { %2200 = vmatprep.subr.mxu0 %v4591_v25 }
 0xc0d   :  { %2201 = vmatpush2.msra.mxu0 %v4594_v39 }
 0xc0e   :  { %2202 = vmatprep.subr.mxu0 %v4597_v22 }
 0xc0f   :  { %2203 = vmatpush2.msra.mxu0 %v4600_v36 }
 0xc10   :  { %2204 = vmatprep.subr.mxu0 %v4603_v27 }
 0xc11   :  { %2205 = vmatpush2.msra.mxu0 %v4606_v37 }
 0xc12   :  { %2206 = vmatprep.subr.mxu0 %v4609_v4 }
 0xc13   :  { %2207 = vmatpush2.msra.mxu0 %v4612_v5 }
 0xc14   :  { %2208 = vmatprep.subr.mxu0 %v4615_v40 }
 0xc15   :  { %2209 = vmatpush2.msra.mxu0 %v4618_v42 }
 0xc16   :  { %2210 = vmatprep.subr.mxu0 %v4621_v44 }
 0xc17   :  { %2211 = vmatpush2.msra.mxu0 %v4624_v33 }
 0xc18   :  { %2212 = vmatprep.subr.mxu0 %v4627_v53 }
 0xc19   :  { %2213 = vmatpush2.msra.mxu0 %v4630_v52 }
 0xc1a   :  { %2214 = vmatprep.subr.mxu0 %v4633_v58 }
 0xc1b   :  { %2215 = vmatpush2.msra.mxu0 %v4636_v60 }
 0xc1c   :  { %2216 = vmatprep.subr.mxu0 %v4639_v11 }
 0xc1d   :  { %2217 = vmatpush2.msra.mxu0 %v4642_v2 }
 0xc1e   :  { %2218 = vmatprep.subr.mxu0 %v4645_v61 }
 0xc1f   :  { %2219 = vmatpush2.msra.mxu0 %v4648_v51 }
 0xc20   :  { %2220 = vmatprep.subr.mxu0 %v4651_v3  ;;  %v5115_v3 = vld [vmem:[#allocation54_spill] sm:$0xff] }
 0xc21   :  { %2221 = vmatpush2.msra.mxu0 %v4654_v48 }
 0xc22   :  { %2222 = vmatprep.subr.mxu0 %v4657_v57  ;;  %v5114_v57 = vld [vmem:[#allocation40_spill] sm:$0xff] }
 0xc23   :  { %2223 = vmatpush2.msra.mxu0 %v4660_v9 }
 0xc24   :  { %2224 = vmatprep.subr.mxu0 %v4663_v10 }
 0xc25   :  { %2225 = vmatpush2.msra.mxu0 %v4666_v12 }
 0xc26   :  { %2226 = vmatprep.subr.mxu0 %v4669_v13 }
 0xc27   :  { %2227 = vmatpush2.msra.mxu0 %v4672_v14 }
 0xca8   :  { %v2076_v15 = vpop.f32.mrf.mxu0 }
 0xca9   :  { %v2081_v48 = vadd.f32 %v2076_v15, %v5114_v57 }
 0xcaa   :  { %v2078_v9 = vpop.f32.mrf.mxu0 }
 0xcab   :  { %v2082_v51 = vadd.f32 %v2078_v9, %v5115_v3 }
 0xcad   :  { %2632 = vtanh.f32 %v2082_v51  ;;  %v2316_v51 = vld [vmem:[#allocation16] sm:$0xff] }
 0xcae   :  { %2634 = vtanh.f32 %v2081_v48  ;;  %v5127_v48 = vld [vmem:[#allocation61_spill] sm:$0xff] }
 0xcba   :  { %v2633_v10 = vpop.eup %2632 }
 0xcbb   :  { %v2635_v61 = vpop.eup %2634  ;;  %2151 = vmatprep.mubr.f32.mxu1 %v2633_v10  ;;  %v5128_v10 = vld [vmem:[#allocation53_spill] sm:$0xff] }
 0xcbc   :  { %2152 = vmatmul.mubr.f32.vlgmr.msra.gmra.mxu1 %v2635_v61  ;;  %v2332_v61 = vld [vmem:[#allocation16 + $0x80] sm:$0xff] }
 0xcbd   :  { %2242 = vmatpush1.msra.mxu1 %v4486_v29  ;;  %v5116_v29 = vld [vmem:[#allocation37_spill] sm:$0xff] }
 0xcbe   :  { %2243 = vmatprep.subr.mxu1 %v4489_v49  ;;  %v5117_v49 = vld [vmem:[#allocation38_spill] sm:$0xff] }
 0xcbf   :  { %2244 = vmatpush1.msra.mxu1 %v4492_v62  ;;  %v5118_v62 = vld [vmem:[#allocation39_spill] sm:$0xff] }
 0xcc0   :  { %2245 = vmatprep.subr.mxu1 %v4495_v63  ;;  %v5119_v63 = vld [vmem:[#allocation21_spill] sm:$0xff] }
 0xcc1   :  { %2246 = vmatpush1.msra.mxu1 %v4498_v0  ;;  %v5120_v0 = vld [vmem:[#allocation42_spill] sm:$0xff] }
 0xcc2   :  { %2247 = vmatprep.subr.mxu1 %v4501_v1  ;;  %v5121_v1 = vld [vmem:[#allocation28_spill] sm:$0xff] }
 0xcc3   :  { %2248 = vmatpush1.msra.mxu1 %v4504_v50  ;;  %v5122_v50 = vld [vmem:[#allocation44_spill] sm:$0xff] }
 0xcc4   :  { %2249 = vmatprep.subr.mxu1 %v4507_v54 }
 0xcc5   :  { %2250 = vmatpush1.msra.mxu1 %v4510_v8  ;;  %v5123_v8 = vld [vmem:[#allocation58_spill] sm:$0xff] }
 0xcc6   :  { %2251 = vmatprep.subr.mxu1 %v4513_v6 }
 0xcc7   :  { %2252 = vmatpush1.msra.mxu1 %v4516_v7 }
 0xcc8   :  { %2253 = vmatprep.subr.mxu1 %v4519_v18  ;;  %v5124_v18 = vld [vmem:[#allocation24_spill] sm:$0xff] }
 0xcc9   :  { %2254 = vmatpush1.msra.mxu1 %v4522_v19 }
 0xcca   :  { %2255 = vmatprep.subr.mxu1 %v4525_v20 }
 0xccb   :  { %2256 = vmatpush1.msra.mxu1 %v4528_v56 }
 0xccc   :  { %2257 = vmatprep.subr.mxu1 %v4531_v16  ;;  %v2347_v16 = vld [vmem:[#allocation16 + $0xf8] sm:$0xff] }
 0xccd   :  { %2258 = vmatpush1.msra.mxu1 %v4534_v17  ;;  %v2331_v17 = vld [vmem:[#allocation16 + $0x78] sm:$0xff]  ;;  %2489 = vmatprep.subr.mxu0 %v2347_v16 }
 0xcce   :  { %2259 = vmatprep.subr.mxu1 %v4537_v21  ;;  %v2346_v21 = vld [vmem:[#allocation16 + $0xf0] sm:$0xff] }
 0xccf   :  { %2260 = vmatpush1.msra.mxu1 %v4540_v46  ;;  %v2330_v46 = vld [vmem:[#allocation16 + $0x70] sm:$0xff] }
 0xcd0   :  { %2261 = vmatprep.subr.mxu1 %v4543_v32  ;;  %v2345_v32 = vld [vmem:[#allocation16 + $0xe8] sm:$0xff] }
 0xcd1   :  { %2262 = vmatpush1.msra.mxu1 %v4546_v43  ;;  %v2329_v43 = vld [vmem:[#allocation16 + $0x68] sm:$0xff] }
 0xcd2   :  { %2263 = vmatprep.subr.mxu1 %v4549_v24  ;;  %v2344_v24 = vld [vmem:[#allocation16 + $0xe0] sm:$0xff] }
 0xcd3   :  { %2264 = vmatpush1.msra.mxu1 %v4552_v34  ;;  %v2328_v34 = vld [vmem:[#allocation16 + $0x60] sm:$0xff] }
 0xcd4   :  { %2265 = vmatprep.subr.mxu1 %v4555_v35  ;;  %v2343_v35 = vld [vmem:[#allocation16 + $0xd8] sm:$0xff] }
 0xcd5   :  { %2266 = vmatpush1.msra.mxu1 %v4558_v38  ;;  %v2327_v38 = vld [vmem:[#allocation16 + $0x58] sm:$0xff] }
 0xcd6   :  { %2267 = vmatprep.subr.mxu1 %v4561_v45  ;;  %v2342_v45 = vld [vmem:[#allocation16 + $0xd0] sm:$0xff] }
 0xcd7   :  { %2268 = vmatpush1.msra.mxu1 %v4564_v55  ;;  %v2326_v55 = vld [vmem:[#allocation16 + $0x50] sm:$0xff] }
 0xcd8   :  { %2269 = vmatprep.subr.mxu1 %v4567_v30 }
 0xcd9   :  { %2270 = vmatpush1.msra.mxu1 %v4570_v31  ;;  %v5125_v31 = vld [vmem:[#allocation60_spill] sm:$0xff] }
 0xcda   :  { %2271 = vmatprep.subr.mxu1 %v4573_v47 }
 0xcdb   :  { %2272 = vmatpush1.msra.mxu1 %v4576_v41 }
 0xcdc   :  { %2273 = vmatprep.subr.mxu1 %v4579_v59  ;;  %v5126_v59 = vld [vmem:[#allocation41_spill] sm:$0xff] }
 0xcdd   :  { %2274 = vmatpush2.msra.mxu1 %v4582_v28 }
 0xcde   :  { %2275 = vmatprep.subr.mxu1 %v4585_v23 }
 0xcdf   :  { %2276 = vmatpush2.msra.mxu1 %v4588_v26 }
 0xce0   :  { %2277 = vmatprep.subr.mxu1 %v4591_v25  ;;  %v2341_v25 = vld [vmem:[#allocation16 + $0xc8] sm:$0xff] }
 0xce1   :  { %2278 = vmatpush2.msra.mxu1 %v4594_v39  ;;  %v2325_v39 = vld [vmem:[#allocation16 + $0x48] sm:$0xff] }
 0xce2   :  { %2279 = vmatprep.subr.mxu1 %v4597_v22  ;;  %v2340_v22 = vld [vmem:[#allocation16 + $0xc0] sm:$0xff] }
 0xce3   :  { %2280 = vmatpush2.msra.mxu1 %v4600_v36  ;;  %v2324_v36 = vld [vmem:[#allocation16 + $0x40] sm:$0xff] }
 0xce4   :  { %2281 = vmatprep.subr.mxu1 %v4603_v27  ;;  %v2339_v27 = vld [vmem:[#allocation16 + $0xb8] sm:$0xff] }
 0xce5   :  { %2282 = vmatpush2.msra.mxu1 %v4606_v37  ;;  %v2323_v37 = vld [vmem:[#allocation16 + $0x38] sm:$0xff] }
 0xce6   :  { %2283 = vmatprep.subr.mxu1 %v4609_v4  ;;  %v2338_v4 = vld [vmem:[#allocation16 + $0xb0] sm:$0xff] }
 0xce7   :  { %2284 = vmatpush2.msra.mxu1 %v4612_v5  ;;  %v2322_v5 = vld [vmem:[#allocation16 + $0x30] sm:$0xff] }
 0xce8   :  { %2285 = vmatprep.subr.mxu1 %v4615_v40  ;;  %v2337_v40 = vld [vmem:[#allocation16 + $0xa8] sm:$0xff] }
 0xce9   :  { %2286 = vmatpush2.msra.mxu1 %v4618_v42  ;;  %v2321_v42 = vld [vmem:[#allocation16 + $0x28] sm:$0xff] }
 0xcea   :  { %2287 = vmatprep.subr.mxu1 %v4621_v44  ;;  %v2336_v44 = vld [vmem:[#allocation16 + $0xa0] sm:$0xff] }
 0xceb   :  { %2288 = vmatpush2.msra.mxu1 %v4624_v33  ;;  %v2320_v33 = vld [vmem:[#allocation16 + $0x20] sm:$0xff] }
 0xcec   :  { %2289 = vmatprep.subr.mxu1 %v4627_v53  ;;  %v2335_v53 = vld [vmem:[#allocation16 + $0x98] sm:$0xff] }
 0xced   :  { %2290 = vmatpush2.msra.mxu1 %v4630_v52  ;;  %v2319_v52 = vld [vmem:[#allocation16 + $0x18] sm:$0xff] }
 0xcee   :  { %2291 = vmatprep.subr.mxu1 %v4633_v58  ;;  %v2334_v58 = vld [vmem:[#allocation16 + $0x90] sm:$0xff] }
 0xcef   :  { %2292 = vmatpush2.msra.mxu1 %v4636_v60  ;;  %v2318_v60 = vld [vmem:[#allocation16 + $0x10] sm:$0xff] }
 0xcf0   :  { %2293 = vmatprep.subr.mxu1 %v4639_v11  ;;  %v2333_v11 = vld [vmem:[#allocation16 + $0x88] sm:$0xff] }
 0xcf1   :  { %2294 = vmatpush2.msra.mxu1 %v4642_v2  ;;  %v2317_v2 = vld [vmem:[#allocation16 + $0x8] sm:$0xff] }
 0xcf2   :  { %2295 = vmatprep.subr.mxu1 %v5116_v29  ;;  %v2464_v29 = vld [vmem:[%s4762_s10] ss:$0 sm:$0xff] }
 0xcf3   :  { %2296 = vmatpush2.msra.mxu1 %v5117_v49 }
 0xcf4   :  { %2297 = vmatprep.subr.mxu1 %v5118_v62 }
 0xcf5   :  { %2298 = vmatpush2.msra.mxu1 %v5119_v63 }
 0xcf6   :  { %2299 = vmatprep.subr.mxu1 %v5120_v0 }
 0xcf7   :  { %2300 = vmatpush2.msra.mxu1 %v5121_v1 }
 0xcf8   :  { %2301 = vmatprep.subr.mxu1 %v5122_v50 }
 0xcf9   :  { %2302 = vmatpush2.msra.mxu1 %v4666_v12 }
 0xcfa   :  { %2303 = vmatprep.subr.mxu1 %v4669_v13 }
 0xcfb   :  { %2304 = vmatpush2.msra.mxu1 %v4672_v14 }
 0xd7c   :  { %v2153_v54 = vpop.f32.mrf.mxu1 }
 0xd7d   :  { %v2158_v6 = vadd.f32 %v2153_v54, %v5123_v8 }
 0xd7e   :  { %v2155_v7 = vpop.f32.mrf.mxu1 }
 0xd7f   :  { %v2159_v19 = vadd.f32 %v2155_v7, %v5124_v18 }
 0xd81   :  { %2636 = vtanh.f32 %v2159_v19 }
 0xd82   :  { %2638 = vtanh.f32 %v2158_v6 }
 0xd8e   :  { %v2637_v20 = vpop.eup %2636 }
 0xd8f   :  { %v2639_v56 = vpop.eup %2638  ;;  %2228 = vmatprep.mubr.f32.mxu0 %v2637_v20 }
 0xd90   :  { %2229 = vmatmul.mubr.f32.vlgmr.msra.gmra.mxu0 %v2639_v56 }
 0xd91   :  { %2490 = vmatpush3.msra.mxu0 %v2331_v17 }
 0xd92   :  { %2491 = vmatprep.subr.mxu0 %v2346_v21 }
 0xd93   :  { %2492 = vmatpush3.msra.mxu0 %v2330_v46 }
 0xd94   :  { %2493 = vmatprep.subr.mxu0 %v2345_v32 }
 0xd95   :  { %2494 = vmatpush3.msra.mxu0 %v2329_v43 }
 0xd96   :  { %2495 = vmatprep.subr.mxu0 %v2344_v24 }
 0xd97   :  { %2496 = vmatpush3.msra.mxu0 %v2328_v34 }
 0xd98   :  { %2497 = vmatprep.subr.mxu0 %v2343_v35 }
 0xd99   :  { %2498 = vmatpush3.msra.mxu0 %v2327_v38 }
 0xd9a   :  { %2499 = vmatprep.subr.mxu0 %v2342_v45 }
 0xd9b   :  { %2500 = vmatpush3.msra.mxu0 %v2326_v55 }
 0xd9c   :  { %2501 = vmatprep.subr.mxu0 %v2341_v25 }
 0xd9d   :  { %2502 = vmatpush3.msra.mxu0 %v2325_v39 }
 0xd9e   :  { %2503 = vmatprep.subr.mxu0 %v2340_v22 }
 0xd9f   :  { %2504 = vmatpush3.msra.mxu0 %v2324_v36 }
 0xda0   :  { %2505 = vmatprep.subr.mxu0 %v2339_v27 }
 0xda1   :  { %2506 = vmatpush3.msra.mxu0 %v2323_v37 }
 0xda2   :  { %2507 = vmatprep.subr.mxu0 %v2338_v4 }
 0xda3   :  { %2508 = vmatpush3.msra.mxu0 %v2322_v5 }
 0xda4   :  { %2509 = vmatprep.subr.mxu0 %v2337_v40 }
 0xda5   :  { %2510 = vmatpush3.msra.mxu0 %v2321_v42 }
 0xda6   :  { %2511 = vmatprep.subr.mxu0 %v2336_v44 }
 0xda7   :  { %2512 = vmatpush3.msra.mxu0 %v2320_v33 }
 0xda8   :  { %2513 = vmatprep.subr.mxu0 %v2335_v53 }
 0xda9   :  { %2514 = vmatpush3.msra.mxu0 %v2319_v52 }
 0xdaa   :  { %2515 = vmatprep.subr.mxu0 %v2334_v58 }
 0xdab   :  { %2516 = vmatpush3.msra.mxu0 %v2318_v60 }
 0xdac   :  { %2517 = vmatprep.subr.mxu0 %v2333_v11 }
 0xdad   :  { %2518 = vmatpush3.msra.mxu0 %v2317_v2 }
 0xdae   :  { %2519 = vmatprep.subr.mxu0 %v2332_v61 }
 0xdaf   :  { %2520 = vmatpush3.msra.mxu0 %v2316_v51 }
 0xe50   :  { %v2230_v30 = vpop.f32.mrf.mxu0 }
 0xe51   :  { %v2235_v47 = vadd.f32 %v2230_v30, %v5125_v31 }
 0xe52   :  { %v2232_v41 = vpop.f32.mrf.mxu0 }
 0xe53   :  { %v2236_v28 = vadd.f32 %v2232_v41, %v5126_v59 }
 0xe55   :  { %2640 = vtanh.f32 %v2236_v28 }
 0xe56   :  { %2642 = vtanh.f32 %v2235_v47 }
 0xe62   :  { %v2641_v23 = vpop.eup %2640 }
 0xe63   :  { %v2643_v26 = vpop.eup %2642  ;;  %2305 = vmatprep.mubr.f32.mxu1 %v2641_v23 }
 0xe64   :  { %2306 = vmatmul.mubr.f32.vlgmr.msra.gmra.mxu1 %v2643_v26 }
 0xf24   :  { %v2307_v3 = vpop.f32.mrf.mxu1 }
 0xf25   :  { %v2312_v57 = vadd.f32 %v2307_v3, %v5127_v48 }
 0xf26   :  { %v2309_v9 = vpop.f32.mrf.mxu1 }
 0xf27   :  { %v2313_v12 = vadd.f32 %v2309_v9, %v5128_v10 }
 0xf29   :  { %2644 = vtanh.f32 %v2313_v12 }
 0xf2a   :  { %2646 = vtanh.f32 %v2312_v57 }
 0xf36   :  { %v2645_v13 = vpop.eup %2644 }
 0xf37   :  { %v2647_v14 = vpop.eup %2646  ;;  %2419 = vmatprep.mubr.f32.mxu0 %v2645_v13 }
 0xf38   :  { %2420 = vmatmul.mubr.f32.vlgmr.msra.gmra.mxu0 %v2647_v14 }
 0xff8   :  { %v2521_v15 = vpop.f32.mrf.mxu0 }
 0xffa   :  { %v2522_v49 = vpop.f32.mrf.mxu0 }
 0xffb   :  { %v2523_v62 = vadd.f32 %v2522_v49, %v2521_v15 }
 0xffd   :  { %v2422_v63 = vadd.f32 %v2523_v62, %v2464_v29 }
 0xfff   :  { %2425 = vst [vmem:[%s4763_s11] sm:$0xff] %v2422_v63 }
0x1000   :  { %2430 = vsyncpa [#allocation7], 1 }
0x1001   :  { %2431 = vsyncpa [#allocation9], 1 }
0x1002   :  { %2432 = vsyncpa [#allocation12], 1 }
0x1003   :  { %2433 = vsyncpa [#allocation15], 1 }

</bundles_post_ra>
